<compile_context>
chip_gen: v7x
topology: tpu7x:2x2x1
jax: 0.10.0
libtpu: 0.0.40
codegen_flags: <defaults>
</compile_context>

<pallas_src>
import functools
import math

import jax
import jax.numpy as jnp
from jax.experimental import pallas as pl
from jax.experimental.pallas import tpu as pltpu

LRELU_SLOPE = 0.1

# (cin, cout, (KH, KW), (SH, SW), (PH, PW)) for self.convs + self.conv_post
LAYER_CFGS = [
    (1,   32,  (5, 37), (2, 18), (2, 18)),
    (32,  64,  (3, 3),  (2, 2),  (1, 1)),
    (64,  128, (3, 3),  (2, 2),  (1, 1)),
    (128, 256, (3, 3),  (2, 2),  (1, 1)),
    (256, 512, (3, 3),  (2, 2),  (1, 1)),
    (512, 1,   (3, 3),  (1, 1),  (1, 1)),   # conv_post
]


def _round_up(x, m):
    return ((x + m - 1) // m) * m


def _tiling_budget():
    """Chip-aware tile / scoped-VMEM budget.

    Conservative default (TM<=1024, 48 MiB) is safe on v7x's 64 MiB/TC VMEM;
    on 128 MiB-VMEM parts (v5e/v6e) we allow fatter tiles to amortize the
    per-grid-step overhead and keep the resident weight hot over more rows.
    """
    tm_max, vmem_limit = 1024, 48 * 1024 * 1024
    try:
        info = pltpu.get_tpu_info()
        if getattr(info, "vmem_capacity_bytes", 0) >= 100 * 1024 * 1024:
            tm_max, vmem_limit = 2048, 64 * 1024 * 1024
    except Exception:
        pass
    return tm_max, vmem_limit


TM_MAX, VMEM_LIMIT = _tiling_budget()


def _choose_tiling(M, tm_max=TM_MAX):
    """Pick (tm, Mp) for the M axis.

    * tm is a multiple of 16 (bf16 packs two rows per sublane; 8-row bf16
      blocks are sub-native and trigger relayout work).
    * The number of tiles is derived from M (not M rounded up to a fixed TM),
      so e.g. M=520 pads to 544, not 1024.
    * At least 2 tiles whenever there is enough work, so both v7x TensorCores
      get a tile under dimension_semantics=("parallel",).
    """
    n = max(1, -(-M // tm_max))
    if n == 1 and M >= 32:
        n = 2
    tm = _round_up(-(-M // n), 16)
    return tm, n * tm


# ---------------------------------------------------------------------------
# Pallas kernel: fused (patches @ W) + bias (+ leaky_relu), tiled over M
# ---------------------------------------------------------------------------
def _conv_mm_kernel(patch_ref, w_ref, b_ref, o_ref, *, slope, apply_act):
    # bf16 x bf16 -> f32 on the MXU; epilogue in f32; store bf16 (lane-dense).
    acc = jnp.dot(patch_ref[...], w_ref[...], preferred_element_type=jnp.float32)
    acc = acc + b_ref[...]                       # (TM, Cp) + (1, Cp)
    if apply_act:
        acc = jnp.where(acc >= 0, acc, acc * slope)
    o_ref[...] = acc.astype(o_ref.dtype)


def conv_matmul(patches, w2d, bias2d, *, tm, apply_act, slope=LRELU_SLOPE):
    """patches: (Mp, Kp) bf16, w2d: (Kp, Cp) bf16, bias2d: (1, Cp) f32.

    Mp % tm == 0, Kp % 128 == 0, Cp % 128 == 0 (lane-dense output stores).
    Returns (Mp, Cp) bfloat16.
    """
    Mp, Kp = patches.shape
    _, Cp = w2d.shape
    grid = (Mp // tm,)

    bytes_accessed = (Mp * Kp * patches.dtype.itemsize
                      + Kp * Cp * w2d.dtype.itemsize
                      + Cp * bias2d.dtype.itemsize
                      + Mp * Cp * 2)
    cost = pl.CostEstimate(flops=2 * Mp * Kp * Cp, transcendentals=0,
                           bytes_accessed=bytes_accessed)

    return pl.pallas_call(
        functools.partial(_conv_mm_kernel, slope=slope, apply_act=apply_act),
        out_shape=jax.ShapeDtypeStruct((Mp, Cp), jnp.bfloat16),
        grid_spec=pltpu.PrefetchScalarGridSpec(
            num_scalar_prefetch=0,
            grid=grid,
            in_specs=[
                pl.BlockSpec((tm, Kp), lambda i: (i, 0)),   # patch tile per step
                # Constant index_maps: weight/bias are DMA'd once and stay
                # resident in VMEM across all M tiles.
                pl.BlockSpec((Kp, Cp), lambda i: (0, 0)),
                pl.BlockSpec((1, Cp), lambda i: (0, 0)),
            ],
            out_specs=pl.BlockSpec((tm, Cp), lambda i: (i, 0)),
        ),
        compiler_params=pltpu.CompilerParams(
            dimension_semantics=("parallel",),
            vmem_limit_bytes=VMEM_LIMIT,
        ),
        cost_estimate=cost,
    )(patches, w2d, bias2d)


# ---------------------------------------------------------------------------
# Glue: im2col patch extraction (NHWC, bf16) + per-layer wrapper
# ---------------------------------------------------------------------------
def im2col(x_nhwc, k, s, p):
    N, H, W, C = x_nhwc.shape
    KH, KW = k
    SH, SW = s
    PH, PW = p
    xp = jnp.pad(x_nhwc, ((0, 0), (PH, PH), (PW, PW), (0, 0)))
    Ho = (H + 2 * PH - KH) // SH + 1
    Wo = (W + 2 * PW - KW) // SW + 1
    cols = []
    for kh in range(KH):
        for kw in range(KW):
            cols.append(xp[:, kh:kh + SH * Ho:SH, kw:kw + SW * Wo:SW, :])
    patches = jnp.stack(cols, axis=3)                      # (N, Ho, Wo, KH*KW, C)
    patches = patches.reshape(N * Ho * Wo, KH * KW * C)    # (M, K)
    return patches, N, Ho, Wo


def conv_layer(x_nhwc, w2d, bias2d, cfg, *, apply_act):
    cin, cout, k, s, p = cfg
    # x_nhwc is already bf16, so the patch array is gathered/materialized in
    # bf16 (half the HBM traffic of the f32 path).
    patches, N, Ho, Wo = im2col(x_nhwc, k, s, p)           # (M, K) bf16
    M, K = patches.shape
    Kp, Cp = w2d.shape                                     # padded at init time

    tm, Mp = _choose_tiling(M)
    patches = jnp.pad(patches, ((0, Mp - M), (0, Kp - K)))

    out = conv_matmul(patches, w2d, bias2d, tm=tm, apply_act=apply_act)  # (Mp, Cp) bf16
    out = out[:M, :cout]
    return out.reshape(N, Ho, Wo, cout)


# ---------------------------------------------------------------------------
# Parameter setup (spectral-norm reparametrization applied at init)
# ---------------------------------------------------------------------------
def init_params(key, n_power_iters=5):
    """Deterministic synthetic Conv2d params with spectral normalization applied."""
    weights = []
    for i, (cin, cout, k, s, p) in enumerate(LAYER_CFGS):
        kw_, kb_, ku_ = jax.random.split(jax.random.fold_in(key, i), 3)
        KH, KW = k
        fan_in = cin * KH * KW
        bound = 1.0 / math.sqrt(fan_in)
        w = jax.random.uniform(kw_, (cout, cin, KH, KW), jnp.float32, -bound, bound)
        b = jax.random.uniform(kb_, (cout,), jnp.float32, -bound, bound)

        # spectral_norm: W / sigma_max(W.reshape(cout, -1)), sigma via deterministic
        # power iteration (torch's persistent u/v buffers approximated at init time).
        wm = w.reshape(cout, -1)
        u = jax.random.normal(ku_, (cout,), jnp.float32)
        u = u / (jnp.linalg.norm(u) + 1e-12)
        v = None
        for _ in range(n_power_iters):
            v = wm.T @ u
            v = v / (jnp.linalg.norm(v) + 1e-12)
            u = wm @ v
            u = u / (jnp.linalg.norm(u) + 1e-12)
        sigma = u @ (wm @ v)
        w = w / sigma

        # (Cout, Cin, KH, KW) -> (KH, KW, Cin, Cout) -> (K, Cout): matches im2col
        # patch ordering (kh, kw, cin).
        K = KH * KW * cin
        w2d = jnp.transpose(w, (2, 3, 1, 0)).reshape(K, cout)

        # Pad K to a multiple of 128 (zero rows) and pad Cout up to a multiple of
        # 128 (zero cols) so all output stores are lane-dense; store weight bf16.
        Kp = _round_up(K, 128)
        Cp = _round_up(cout, 128)
        w2d = jnp.pad(w2d, ((0, Kp - K), (0, Cp - cout))).astype(jnp.bfloat16)
        b2d = jnp.pad(b.reshape(1, cout), ((0, 0), (0, Cp - cout))).astype(jnp.float32)
        weights.append({"w2d": w2d, "b": b2d})
    return weights


# ---------------------------------------------------------------------------
# Forward pass (mirrors SpectrogramDiscriminator.forward_single / forward)
# ---------------------------------------------------------------------------
def forward_single(x_nchw, weights):
    # NCHW -> NHWC, cast to bf16 once; the whole conv chain stays bf16 NHWC.
    x = jnp.transpose(x_nchw, (0, 2, 3, 1)).astype(jnp.bfloat16)
    fmap = []
    for layer_w, cfg in zip(weights[:-1], LAYER_CFGS[:-1]):
        x = conv_layer(x, layer_w["w2d"], layer_w["b"], cfg, apply_act=True)
        # fmap copies stay bf16 (half the writeback); NCHW layout kept for
        # parity with the torch module's output convention.
        fmap.append(jnp.transpose(x, (0, 3, 1, 2)))

    x = conv_layer(x, weights[-1]["w2d"], weights[-1]["b"], LAYER_CFGS[-1],
                   apply_act=False)                    # conv_post (no activation)
    x = jnp.transpose(x, (0, 3, 1, 2))                 # (N, 1, Ho, Wo)
    x = x.reshape(x.shape[0], -1).astype(jnp.float32)  # torch.flatten(x, 1, -1)
    return x, fmap


@jax.jit
def forward(y, y_hat, weights):
    # Batch y and y_hat together: one pass, half the pallas_call launches,
    # each layer's weights loaded from HBM once.  Conv is per-sample, so this
    # is numerically identical to two independent passes.
    n = y.shape[0]
    x = jnp.concatenate([y, y_hat], axis=0)
    logits, fmaps = forward_single(x, weights)
    y_d_rs = [logits[:n]]
    y_d_gs = [logits[n:]]
    fmap_rs = [f[:n] for f in fmaps]
    fmap_gs = [f[n:] for f in fmaps]
    return y_d_rs, y_d_gs, fmap_rs, fmap_gs


# ---------------------------------------------------------------------------
if __name__ == "__main__":
    key = jax.random.PRNGKey(0)
    k_params, k_y, k_yh = jax.random.split(key, 3)

    weights = init_params(k_params)

    # small spectrogram-like inputs: (batch=2, channels=1, freq=16, frames=64)
    y = jax.random.normal(k_y, (2, 1, 16, 64), jnp.float32)
    y_hat = jax.random.normal(k_yh, (2, 1, 16, 64), jnp.float32)

    result = forward(y, y_hat, weights)
    jax.block_until_ready(result)

    y_d_rs, y_d_gs, fmap_rs, fmap_gs = result
    assert y_d_rs[0].shape == (2, 1) and y_d_gs[0].shape == (2, 1)
    assert len(fmap_rs) == 5 and len(fmap_gs) == 5
    expected_ch = [32, 64, 128, 256, 512]
    for f, c in zip(fmap_rs, expected_ch):
        assert f.shape[0] == 2 and f.shape[1] == c
    print("KERNEL_OK")
</pallas_src>

<mosaic_0001>
module attributes {stable_mosaic.version = 11 : i64} {
  func.func @_conv_mm_kernel(%arg0: i32, %arg1: memref<64x256xbf16, #tpu.memory_space<vmem>>, %arg2: memref<256x128xbf16, #tpu.memory_space<vmem>>, %arg3: memref<1x128xf32, #tpu.memory_space<vmem>>, %arg4: memref<64x128xbf16, #tpu.memory_space<vmem>>) attributes {dimension_semantics = [#tpu.dimension_semantics<parallel>], iteration_bounds = array<i64: 2>, scalar_prefetch = 0 : i64, scratch_operands = 0 : i64, tpu.core_type = #tpu.core_type<tc>, window_params = [{transform_indices = @transform_0, window_bounds = array<i64: 64, 256>}, {pipeline_mode = #tpu.pipeline_mode<synchronous>, transform_indices = @transform_1, window_bounds = array<i64: 256, 128>}, {pipeline_mode = #tpu.pipeline_mode<synchronous>, transform_indices = @transform_2, window_bounds = array<i64: 1, 128>}, {transform_indices = @transform_3, window_bounds = array<i64: 64, 128>}]} {
    %c0 = arith.constant 0 : index
    %c0_0 = arith.constant 0 : index
    %0 = vector.load %arg1[%c0, %c0_0] : memref<64x256xbf16, #tpu.memory_space<vmem>>, vector<64x256xbf16>
    %c0_1 = arith.constant 0 : index
    %c0_2 = arith.constant 0 : index
    %1 = vector.load %arg2[%c0_1, %c0_2] : memref<256x128xbf16, #tpu.memory_space<vmem>>, vector<256x128xbf16>
    %cst = arith.constant dense<0.000000e+00> : vector<64x128xf32>
    %2 = tpu.matmul %0, %1, %cst {dimension_numbers = #tpu.dot_dimension_numbers<[1], [0], [0], [1], [0, 0, 1, 1], [], []>} : vector<64x256xbf16>, vector<256x128xbf16>, vector<64x128xf32> -> vector<64x128xf32>
    %c0_3 = arith.constant 0 : index
    %c0_4 = arith.constant 0 : index
    %3 = vector.load %arg3[%c0_3, %c0_4] : memref<1x128xf32, #tpu.memory_space<vmem>>, vector<1x128xf32>
    %4 = vector.broadcast %3 : vector<1x128xf32> to vector<64x128xf32>
    %5 = arith.addf %2, %4 : vector<64x128xf32>
    %cst_5 = arith.constant 0.000000e+00 : f32
    %6 = vector.broadcast %cst_5 : f32 to vector<64x128xf32>
    %7 = arith.cmpf oge, %5, %6 : vector<64x128xf32>
    %cst_6 = arith.constant 1.000000e-01 : f32
    %8 = vector.broadcast %cst_6 : f32 to vector<64x128xf32>
    %9 = arith.mulf %5, %8 : vector<64x128xf32>
    %10 = arith.select %7, %5, %9 : vector<64x128xi1>, vector<64x128xf32>
    %11 = arith.truncf %10 : vector<64x128xf32> to vector<64x128xbf16>
    %c0_7 = arith.constant 0 : index
    %c0_8 = arith.constant 0 : index
    %12 = vector.load %arg4[%c0_7, %c0_8] : memref<64x128xbf16, #tpu.memory_space<vmem>>, vector<64x128xbf16>
    tpu.vector_store %arg4[%c0_7, %c0_8], %11 {strides = array<i32>} : memref<64x128xbf16, #tpu.memory_space<vmem>>, vector<64x128xbf16>,
    return
  }
  func.func @transform_0(%arg0: i32) -> (i32, i32) {
    %c0_i32 = arith.constant 0 : i32
    %c0_i32_0 = arith.constant 0 : i32
    return %arg0, %c0_i32 : i32, i32
  }
  func.func @transform_1(%arg0: i32) -> (i32, i32) {
    %c0_i32 = arith.constant 0 : i32
    %c0_i32_0 = arith.constant 0 : i32
    %c0_i32_1 = arith.constant 0 : i32
    return %c0_i32, %c0_i32_0 : i32, i32
  }
  func.func @transform_2(%arg0: i32) -> (i32, i32) {
    %c0_i32 = arith.constant 0 : i32
    %c0_i32_0 = arith.constant 0 : i32
    %c0_i32_1 = arith.constant 0 : i32
    return %c0_i32, %c0_i32_0 : i32, i32
  }
  func.func @transform_3(%arg0: i32) -> (i32, i32) {
    %c0_i32 = arith.constant 0 : i32
    %c0_i32_0 = arith.constant 0 : i32
    return %arg0, %c0_i32 : i32, i32
  }
}

module attributes {stable_mosaic.version = 11 : i64} {
  func.func @_conv_mm_kernel(%arg0: i32, %arg1: memref<16x384xbf16, #tpu.memory_space<vmem>>, %arg2: memref<384x128xbf16, #tpu.memory_space<vmem>>, %arg3: memref<1x128xf32, #tpu.memory_space<vmem>>, %arg4: memref<16x128xbf16, #tpu.memory_space<vmem>>) attributes {dimension_semantics = [#tpu.dimension_semantics<parallel>], iteration_bounds = array<i64: 2>, scalar_prefetch = 0 : i64, scratch_operands = 0 : i64, tpu.core_type = #tpu.core_type<tc>, window_params = [{transform_indices = @transform_0, window_bounds = array<i64: 16, 384>}, {pipeline_mode = #tpu.pipeline_mode<synchronous>, transform_indices = @transform_1, window_bounds = array<i64: 384, 128>}, {pipeline_mode = #tpu.pipeline_mode<synchronous>, transform_indices = @transform_2, window_bounds = array<i64: 1, 128>}, {transform_indices = @transform_3, window_bounds = array<i64: 16, 128>}]} {
    %c0 = arith.constant 0 : index
    %c0_0 = arith.constant 0 : index
    %0 = vector.load %arg1[%c0, %c0_0] : memref<16x384xbf16, #tpu.memory_space<vmem>>, vector<16x384xbf16>
    %c0_1 = arith.constant 0 : index
    %c0_2 = arith.constant 0 : index
    %1 = vector.load %arg2[%c0_1, %c0_2] : memref<384x128xbf16, #tpu.memory_space<vmem>>, vector<384x128xbf16>
    %cst = arith.constant dense<0.000000e+00> : vector<16x128xf32>
    %2 = tpu.matmul %0, %1, %cst {dimension_numbers = #tpu.dot_dimension_numbers<[1], [0], [0], [1], [0, 0, 1, 1], [], []>} : vector<16x384xbf16>, vector<384x128xbf16>, vector<16x128xf32> -> vector<16x128xf32>
    %c0_3 = arith.constant 0 : index
    %c0_4 = arith.constant 0 : index
    %3 = vector.load %arg3[%c0_3, %c0_4] : memref<1x128xf32, #tpu.memory_space<vmem>>, vector<1x128xf32>
    %4 = vector.broadcast %3 : vector<1x128xf32> to vector<16x128xf32>
    %5 = arith.addf %2, %4 : vector<16x128xf32>
    %cst_5 = arith.constant 0.000000e+00 : f32
    %6 = vector.broadcast %cst_5 : f32 to vector<16x128xf32>
    %7 = arith.cmpf oge, %5, %6 : vector<16x128xf32>
    %cst_6 = arith.constant 1.000000e-01 : f32
    %8 = vector.broadcast %cst_6 : f32 to vector<16x128xf32>
    %9 = arith.mulf %5, %8 : vector<16x128xf32>
    %10 = arith.select %7, %5, %9 : vector<16x128xi1>, vector<16x128xf32>
    %11 = arith.truncf %10 : vector<16x128xf32> to vector<16x128xbf16>
    %c0_7 = arith.constant 0 : index
    %c0_8 = arith.constant 0 : index
    %12 = vector.load %arg4[%c0_7, %c0_8] : memref<16x128xbf16, #tpu.memory_space<vmem>>, vector<16x128xbf16>
    tpu.vector_store %arg4[%c0_7, %c0_8], %11 {strides = array<i32>} : memref<16x128xbf16, #tpu.memory_space<vmem>>, vector<16x128xbf16>,
    return
  }
  func.func @transform_0(%arg0: i32) -> (i32, i32) {
    %c0_i32 = arith.constant 0 : i32
    %c0_i32_0 = arith.constant 0 : i32
    return %arg0, %c0_i32 : i32, i32
  }
  func.func @transform_1(%arg0: i32) -> (i32, i32) {
    %c0_i32 = arith.constant 0 : i32
    %c0_i32_0 = arith.constant 0 : i32
    %c0_i32_1 = arith.constant 0 : i32
    return %c0_i32, %c0_i32_0 : i32, i32
  }
  func.func @transform_2(%arg0: i32) -> (i32, i32) {
    %c0_i32 = arith.constant 0 : i32
    %c0_i32_0 = arith.constant 0 : i32
    %c0_i32_1 = arith.constant 0 : i32
    return %c0_i32, %c0_i32_0 : i32, i32
  }
  func.func @transform_3(%arg0: i32) -> (i32, i32) {
    %c0_i32 = arith.constant 0 : i32
    %c0_i32_0 = arith.constant 0 : i32
    return %arg0, %c0_i32 : i32, i32
  }
}

module attributes {stable_mosaic.version = 11 : i64} {
  func.func @_conv_mm_kernel(%arg0: i32, %arg1: memref<16x640xbf16, #tpu.memory_space<vmem>>, %arg2: memref<640x128xbf16, #tpu.memory_space<vmem>>, %arg3: memref<1x128xf32, #tpu.memory_space<vmem>>, %arg4: memref<16x128xbf16, #tpu.memory_space<vmem>>) attributes {dimension_semantics = [#tpu.dimension_semantics<parallel>], iteration_bounds = array<i64: 1>, scalar_prefetch = 0 : i64, scratch_operands = 0 : i64, tpu.core_type = #tpu.core_type<tc>, window_params = [{transform_indices = @transform_0, window_bounds = array<i64: 16, 640>}, {pipeline_mode = #tpu.pipeline_mode<synchronous>, transform_indices = @transform_1, window_bounds = array<i64: 640, 128>}, {pipeline_mode = #tpu.pipeline_mode<synchronous>, transform_indices = @transform_2, window_bounds = array<i64: 1, 128>}, {transform_indices = @transform_3, window_bounds = array<i64: 16, 128>}]} {
    %c0 = arith.constant 0 : index
    %c0_0 = arith.constant 0 : index
    %0 = vector.load %arg1[%c0, %c0_0] : memref<16x640xbf16, #tpu.memory_space<vmem>>, vector<16x640xbf16>
    %c0_1 = arith.constant 0 : index
    %c0_2 = arith.constant 0 : index
    %1 = vector.load %arg2[%c0_1, %c0_2] : memref<640x128xbf16, #tpu.memory_space<vmem>>, vector<640x128xbf16>
    %cst = arith.constant dense<0.000000e+00> : vector<16x128xf32>
    %2 = tpu.matmul %0, %1, %cst {dimension_numbers = #tpu.dot_dimension_numbers<[1], [0], [0], [1], [0, 0, 1, 1], [], []>} : vector<16x640xbf16>, vector<640x128xbf16>, vector<16x128xf32> -> vector<16x128xf32>
    %c0_3 = arith.constant 0 : index
    %c0_4 = arith.constant 0 : index
    %3 = vector.load %arg3[%c0_3, %c0_4] : memref<1x128xf32, #tpu.memory_space<vmem>>, vector<1x128xf32>
    %4 = vector.broadcast %3 : vector<1x128xf32> to vector<16x128xf32>
    %5 = arith.addf %2, %4 : vector<16x128xf32>
    %cst_5 = arith.constant 0.000000e+00 : f32
    %6 = vector.broadcast %cst_5 : f32 to vector<16x128xf32>
    %7 = arith.cmpf oge, %5, %6 : vector<16x128xf32>
    %cst_6 = arith.constant 1.000000e-01 : f32
    %8 = vector.broadcast %cst_6 : f32 to vector<16x128xf32>
    %9 = arith.mulf %5, %8 : vector<16x128xf32>
    %10 = arith.select %7, %5, %9 : vector<16x128xi1>, vector<16x128xf32>
    %11 = arith.truncf %10 : vector<16x128xf32> to vector<16x128xbf16>
    %c0_7 = arith.constant 0 : index
    %c0_8 = arith.constant 0 : index
    %12 = vector.load %arg4[%c0_7, %c0_8] : memref<16x128xbf16, #tpu.memory_space<vmem>>, vector<16x128xbf16>
    tpu.vector_store %arg4[%c0_7, %c0_8], %11 {strides = array<i32>} : memref<16x128xbf16, #tpu.memory_space<vmem>>, vector<16x128xbf16>,
    return
  }
  func.func @transform_0(%arg0: i32) -> (i32, i32) {
    %c0_i32 = arith.constant 0 : i32
    %c0_i32_0 = arith.constant 0 : i32
    return %arg0, %c0_i32 : i32, i32
  }
  func.func @transform_1(%arg0: i32) -> (i32, i32) {
    %c0_i32 = arith.constant 0 : i32
    %c0_i32_0 = arith.constant 0 : i32
    %c0_i32_1 = arith.constant 0 : i32
    return %c0_i32, %c0_i32_0 : i32, i32
  }
  func.func @transform_2(%arg0: i32) -> (i32, i32) {
    %c0_i32 = arith.constant 0 : i32
    %c0_i32_0 = arith.constant 0 : i32
    %c0_i32_1 = arith.constant 0 : i32
    return %c0_i32, %c0_i32_0 : i32, i32
  }
  func.func @transform_3(%arg0: i32) -> (i32, i32) {
    %c0_i32 = arith.constant 0 : i32
    %c0_i32_0 = arith.constant 0 : i32
    return %arg0, %c0_i32 : i32, i32
  }
}

module attributes {stable_mosaic.version = 11 : i64} {
  func.func @_conv_mm_kernel(%arg0: i32, %arg1: memref<16x1152xbf16, #tpu.memory_space<vmem>>, %arg2: memref<1152x256xbf16, #tpu.memory_space<vmem>>, %arg3: memref<1x256xf32, #tpu.memory_space<vmem>>, %arg4: memref<16x256xbf16, #tpu.memory_space<vmem>>) attributes {dimension_semantics = [#tpu.dimension_semantics<parallel>], iteration_bounds = array<i64: 1>, scalar_prefetch = 0 : i64, scratch_operands = 0 : i64, tpu.core_type = #tpu.core_type<tc>, window_params = [{transform_indices = @transform_0, window_bounds = array<i64: 16, 1152>}, {pipeline_mode = #tpu.pipeline_mode<synchronous>, transform_indices = @transform_1, window_bounds = array<i64: 1152, 256>}, {pipeline_mode = #tpu.pipeline_mode<synchronous>, transform_indices = @transform_2, window_bounds = array<i64: 1, 256>}, {transform_indices = @transform_3, window_bounds = array<i64: 16, 256>}]} {
    %c0 = arith.constant 0 : index
    %c0_0 = arith.constant 0 : index
    %0 = vector.load %arg1[%c0, %c0_0] : memref<16x1152xbf16, #tpu.memory_space<vmem>>, vector<16x1152xbf16>
    %c0_1 = arith.constant 0 : index
    %c0_2 = arith.constant 0 : index
    %1 = vector.load %arg2[%c0_1, %c0_2] : memref<1152x256xbf16, #tpu.memory_space<vmem>>, vector<1152x256xbf16>
    %cst = arith.constant dense<0.000000e+00> : vector<16x256xf32>
    %2 = tpu.matmul %0, %1, %cst {dimension_numbers = #tpu.dot_dimension_numbers<[1], [0], [0], [1], [0, 0, 1, 1], [], []>} : vector<16x1152xbf16>, vector<1152x256xbf16>, vector<16x256xf32> -> vector<16x256xf32>
    %c0_3 = arith.constant 0 : index
    %c0_4 = arith.constant 0 : index
    %3 = vector.load %arg3[%c0_3, %c0_4] : memref<1x256xf32, #tpu.memory_space<vmem>>, vector<1x256xf32>
    %4 = vector.broadcast %3 : vector<1x256xf32> to vector<16x256xf32>
    %5 = arith.addf %2, %4 : vector<16x256xf32>
    %cst_5 = arith.constant 0.000000e+00 : f32
    %6 = vector.broadcast %cst_5 : f32 to vector<16x256xf32>
    %7 = arith.cmpf oge, %5, %6 : vector<16x256xf32>
    %cst_6 = arith.constant 1.000000e-01 : f32
    %8 = vector.broadcast %cst_6 : f32 to vector<16x256xf32>
    %9 = arith.mulf %5, %8 : vector<16x256xf32>
    %10 = arith.select %7, %5, %9 : vector<16x256xi1>, vector<16x256xf32>
    %11 = arith.truncf %10 : vector<16x256xf32> to vector<16x256xbf16>
    %c0_7 = arith.constant 0 : index
    %c0_8 = arith.constant 0 : index
    %12 = vector.load %arg4[%c0_7, %c0_8] : memref<16x256xbf16, #tpu.memory_space<vmem>>, vector<16x256xbf16>
    tpu.vector_store %arg4[%c0_7, %c0_8], %11 {strides = array<i32>} : memref<16x256xbf16, #tpu.memory_space<vmem>>, vector<16x256xbf16>,
    return
  }
  func.func @transform_0(%arg0: i32) -> (i32, i32) {
    %c0_i32 = arith.constant 0 : i32
    %c0_i32_0 = arith.constant 0 : i32
    return %arg0, %c0_i32 : i32, i32
  }
  func.func @transform_1(%arg0: i32) -> (i32, i32) {
    %c0_i32 = arith.constant 0 : i32
    %c0_i32_0 = arith.constant 0 : i32
    %c0_i32_1 = arith.constant 0 : i32
    return %c0_i32, %c0_i32_0 : i32, i32
  }
  func.func @transform_2(%arg0: i32) -> (i32, i32) {
    %c0_i32 = arith.constant 0 : i32
    %c0_i32_0 = arith.constant 0 : i32
    %c0_i32_1 = arith.constant 0 : i32
    return %c0_i32, %c0_i32_0 : i32, i32
  }
  func.func @transform_3(%arg0: i32) -> (i32, i32) {
    %c0_i32 = arith.constant 0 : i32
    %c0_i32_0 = arith.constant 0 : i32
    return %arg0, %c0_i32 : i32, i32
  }
}

module attributes {stable_mosaic.version = 11 : i64} {
  func.func @_conv_mm_kernel(%arg0: i32, %arg1: memref<16x2304xbf16, #tpu.memory_space<vmem>>, %arg2: memref<2304x512xbf16, #tpu.memory_space<vmem>>, %arg3: memref<1x512xf32, #tpu.memory_space<vmem>>, %arg4: memref<16x512xbf16, #tpu.memory_space<vmem>>) attributes {dimension_semantics = [#tpu.dimension_semantics<parallel>], iteration_bounds = array<i64: 1>, scalar_prefetch = 0 : i64, scratch_operands = 0 : i64, tpu.core_type = #tpu.core_type<tc>, window_params = [{transform_indices = @transform_0, window_bounds = array<i64: 16, 2304>}, {pipeline_mode = #tpu.pipeline_mode<synchronous>, transform_indices = @transform_1, window_bounds = array<i64: 2304, 512>}, {pipeline_mode = #tpu.pipeline_mode<synchronous>, transform_indices = @transform_2, window_bounds = array<i64: 1, 512>}, {transform_indices = @transform_3, window_bounds = array<i64: 16, 512>}]} {
    %c0 = arith.constant 0 : index
    %c0_0 = arith.constant 0 : index
    %0 = vector.load %arg1[%c0, %c0_0] : memref<16x2304xbf16, #tpu.memory_space<vmem>>, vector<16x2304xbf16>
    %c0_1 = arith.constant 0 : index
    %c0_2 = arith.constant 0 : index
    %1 = vector.load %arg2[%c0_1, %c0_2] : memref<2304x512xbf16, #tpu.memory_space<vmem>>, vector<2304x512xbf16>
    %cst = arith.constant dense<0.000000e+00> : vector<16x512xf32>
    %2 = tpu.matmul %0, %1, %cst {dimension_numbers = #tpu.dot_dimension_numbers<[1], [0], [0], [1], [0, 0, 1, 1], [], []>} : vector<16x2304xbf16>, vector<2304x512xbf16>, vector<16x512xf32> -> vector<16x512xf32>
    %c0_3 = arith.constant 0 : index
    %c0_4 = arith.constant 0 : index
    %3 = vector.load %arg3[%c0_3, %c0_4] : memref<1x512xf32, #tpu.memory_space<vmem>>, vector<1x512xf32>
    %4 = vector.broadcast %3 : vector<1x512xf32> to vector<16x512xf32>
    %5 = arith.addf %2, %4 : vector<16x512xf32>
    %cst_5 = arith.constant 0.000000e+00 : f32
    %6 = vector.broadcast %cst_5 : f32 to vector<16x512xf32>
    %7 = arith.cmpf oge, %5, %6 : vector<16x512xf32>
    %cst_6 = arith.constant 1.000000e-01 : f32
    %8 = vector.broadcast %cst_6 : f32 to vector<16x512xf32>
    %9 = arith.mulf %5, %8 : vector<16x512xf32>
    %10 = arith.select %7, %5, %9 : vector<16x512xi1>, vector<16x512xf32>
    %11 = arith.truncf %10 : vector<16x512xf32> to vector<16x512xbf16>
    %c0_7 = arith.constant 0 : index
    %c0_8 = arith.constant 0 : index
    %12 = vector.load %arg4[%c0_7, %c0_8] : memref<16x512xbf16, #tpu.memory_space<vmem>>, vector<16x512xbf16>
    tpu.vector_store %arg4[%c0_7, %c0_8], %11 {strides = array<i32>} : memref<16x512xbf16, #tpu.memory_space<vmem>>, vector<16x512xbf16>,
    return
  }
  func.func @transform_0(%arg0: i32) -> (i32, i32) {
    %c0_i32 = arith.constant 0 : i32
    %c0_i32_0 = arith.constant 0 : i32
    return %arg0, %c0_i32 : i32, i32
  }
  func.func @transform_1(%arg0: i32) -> (i32, i32) {
    %c0_i32 = arith.constant 0 : i32
    %c0_i32_0 = arith.constant 0 : i32
    %c0_i32_1 = arith.constant 0 : i32
    return %c0_i32, %c0_i32_0 : i32, i32
  }
  func.func @transform_2(%arg0: i32) -> (i32, i32) {
    %c0_i32 = arith.constant 0 : i32
    %c0_i32_0 = arith.constant 0 : i32
    %c0_i32_1 = arith.constant 0 : i32
    return %c0_i32, %c0_i32_0 : i32, i32
  }
  func.func @transform_3(%arg0: i32) -> (i32, i32) {
    %c0_i32 = arith.constant 0 : i32
    %c0_i32_0 = arith.constant 0 : i32
    return %arg0, %c0_i32 : i32, i32
  }
}

module attributes {stable_mosaic.version = 11 : i64} {
  func.func @_conv_mm_kernel(%arg0: i32, %arg1: memref<16x4608xbf16, #tpu.memory_space<vmem>>, %arg2: memref<4608x128xbf16, #tpu.memory_space<vmem>>, %arg3: memref<1x128xf32, #tpu.memory_space<vmem>>, %arg4: memref<16x128xbf16, #tpu.memory_space<vmem>>) attributes {dimension_semantics = [#tpu.dimension_semantics<parallel>], iteration_bounds = array<i64: 1>, scalar_prefetch = 0 : i64, scratch_operands = 0 : i64, tpu.core_type = #tpu.core_type<tc>, window_params = [{transform_indices = @transform_0, window_bounds = array<i64: 16, 4608>}, {pipeline_mode = #tpu.pipeline_mode<synchronous>, transform_indices = @transform_1, window_bounds = array<i64: 4608, 128>}, {pipeline_mode = #tpu.pipeline_mode<synchronous>, transform_indices = @transform_2, window_bounds = array<i64: 1, 128>}, {transform_indices = @transform_3, window_bounds = array<i64: 16, 128>}]} {
    %c0 = arith.constant 0 : index
    %c0_0 = arith.constant 0 : index
    %0 = vector.load %arg1[%c0, %c0_0] : memref<16x4608xbf16, #tpu.memory_space<vmem>>, vector<16x4608xbf16>
    %c0_1 = arith.constant 0 : index
    %c0_2 = arith.constant 0 : index
    %1 = vector.load %arg2[%c0_1, %c0_2] : memref<4608x128xbf16, #tpu.memory_space<vmem>>, vector<4608x128xbf16>
    %cst = arith.constant dense<0.000000e+00> : vector<16x128xf32>
    %2 = tpu.matmul %0, %1, %cst {dimension_numbers = #tpu.dot_dimension_numbers<[1], [0], [0], [1], [0, 0, 1, 1], [], []>} : vector<16x4608xbf16>, vector<4608x128xbf16>, vector<16x128xf32> -> vector<16x128xf32>
    %c0_3 = arith.constant 0 : index
    %c0_4 = arith.constant 0 : index
    %3 = vector.load %arg3[%c0_3, %c0_4] : memref<1x128xf32, #tpu.memory_space<vmem>>, vector<1x128xf32>
    %4 = vector.broadcast %3 : vector<1x128xf32> to vector<16x128xf32>
    %5 = arith.addf %2, %4 : vector<16x128xf32>
    %6 = arith.truncf %5 : vector<16x128xf32> to vector<16x128xbf16>
    %c0_5 = arith.constant 0 : index
    %c0_6 = arith.constant 0 : index
    %7 = vector.load %arg4[%c0_5, %c0_6] : memref<16x128xbf16, #tpu.memory_space<vmem>>, vector<16x128xbf16>
    tpu.vector_store %arg4[%c0_5, %c0_6], %6 {strides = array<i32>} : memref<16x128xbf16, #tpu.memory_space<vmem>>, vector<16x128xbf16>,
    return
  }
  func.func @transform_0(%arg0: i32) -> (i32, i32) {
    %c0_i32 = arith.constant 0 : i32
    %c0_i32_0 = arith.constant 0 : i32
    return %arg0, %c0_i32 : i32, i32
  }
  func.func @transform_1(%arg0: i32) -> (i32, i32) {
    %c0_i32 = arith.constant 0 : i32
    %c0_i32_0 = arith.constant 0 : i32
    %c0_i32_1 = arith.constant 0 : i32
    return %c0_i32, %c0_i32_0 : i32, i32
  }
  func.func @transform_2(%arg0: i32) -> (i32, i32) {
    %c0_i32 = arith.constant 0 : i32
    %c0_i32_0 = arith.constant 0 : i32
    %c0_i32_1 = arith.constant 0 : i32
    return %c0_i32, %c0_i32_0 : i32, i32
  }
  func.func @transform_3(%arg0: i32) -> (i32, i32) {
    %c0_i32 = arith.constant 0 : i32
    %c0_i32_0 = arith.constant 0 : i32
    return %arg0, %c0_i32 : i32, i32
  }
}

</mosaic_0001>

<bundles_post_ra>
// kernel: forward.7
= control target key start
LH: loop header
LB: loop body
LE: loop exit
PB: predicated region body
PF: predicated region fallthrough
CT: control target
= control target key end

     0   :  { %s719_s12 = smov 0   ;;  %s815_s0 = inlined_call_operand.vmem [shape: bf16[32,384], index: 0, kind: input, shape index: {}]   ;;  %s816_s1 = inlined_call_operand.vmem [shape: bf16[384,128], index: 1, kind: input, shape index: {}]   ;;  %s817_s2 = inlined_call_operand.vmem [shape: f32[1,128], index: 2, kind: input, shape index: {}]   ;;  %s818_s3 = inlined_call_operand.vmem [shape: bf16[32,128], index: 3, kind: output, shape index: {}]  }
   0x1 LB: > { %s551_s13 = sadd.s32 4294967295, %s695_s12   ;;  %p555_p0 = scmp.ge.s32.totalorder %s695_s12, 1  ;;  %s695_s12 = sphi %s719_s12, %s13_s12  }
   0x2   : > { %p139_p1 = scmp.lt.s32.totalorder %s695_s12, 3 }
   0x4   : > { %p140_p2 = pnand %p555_p0, %p139_p1 }
   0x5   : > { %v661_v0 = vld [vmem:[%s816_s1 + $0x40] sm:$0xff] (!%p140_p2)   ;;  %v697_v2 = vmov (!%p140_p2), 0.0   ;;  %v664_v4 = vld [vmem:[%s816_s1 + $0x48] sm:$0xff] (!%p140_p2)   ;;  %vm698_vm0 = vmmov (!%p140_p2), 0   ;;  %v667_v7 = vld [vmem:[%s816_s1 + $0x50] sm:$0xff] (!%p140_p2)   ;;  %s556_s28 = sshll.u32 (!%p140_p2), %s551_s13, 1 }
   0x6   : > { %143 = sbr.rel (%p140_p2) target bundleno = 265 (0x109), region = 32  ;;  %v662_v1 = vld [vmem:[%s816_s1] sm:$0xff] (!%p140_p2)   ;;  %630 = vmatprep.subr.bf16.mxu1 (!%p140_p2), %v697_v2  ;;  %599 = vmatprep.subr.bf16.mxu0 (!%p140_p2), %v661_v0  ;;  %v665_v5 = vld [vmem:[%s816_s1 + $0x8] sm:$0xff] (!%p140_p2)   ;;  %v668_v8 = vld [vmem:[%s816_s1 + $0x10] sm:$0xff] (!%p140_p2)   ;;  %p165_p3 = scmp.lt.s32.totalorder (!%p140_p2), %s556_s28, 3 }
   0x7   : > { %v663_v3 = vld [vmem:[%s816_s1 + $0x80] sm:$0xff] (!%p140_p2)   ;;  %600 = vmatpush3.bf16.msra.mxu0 (!%p140_p2), %v662_v1  ;;  %646 = vmatprep.mubr.msk.bf16.mxu1 (!%p140_p2), %vm698_vm0, %v697_v2  ;;  %v666_v6 = vld [vmem:[%s816_s1 + $0x88] sm:$0xff] (!%p140_p2)   ;;  %v669_v9 = vld [vmem:[%s816_s1 + $0x90] sm:$0xff] (!%p140_p2)  }
   0x8   : > { %631 = vmatpush3.bf16.msra.mxu1 (!%p140_p2), %v663_v3  ;;  %601 = vmatprep.subr.bf16.mxu0 (!%p140_p2), %v664_v4  ;;  %v670_v10 = vld [vmem:[%s816_s1 + $0x58] sm:$0xff] (!%p140_p2)   ;;  %v673_v13 = vld [vmem:[%s816_s1 + $0x60] sm:$0xff] (!%p140_p2)   ;;  %v676_v16 = vld [vmem:[%s816_s1 + $0x68] sm:$0xff] (!%p140_p2)  }
   0x9   : > { %632 = vmatprep.subr.bf16.mxu1 (!%p140_p2), %v697_v2  ;;  %v671_v11 = vld [vmem:[%s816_s1 + $0x18] sm:$0xff] (!%p140_p2)   ;;  %v674_v14 = vld [vmem:[%s816_s1 + $0x20] sm:$0xff] (!%p140_p2)   ;;  %v677_v17 = vld [vmem:[%s816_s1 + $0x28] sm:$0xff] (!%p140_p2)  }
   0xa   : > { %v672_v12 = vld [vmem:[%s816_s1 + $0x98] sm:$0xff] (!%p140_p2)   ;;  %v675_v15 = vld [vmem:[%s816_s1 + $0xa0] sm:$0xff] (!%p140_p2)   ;;  %v678_v18 = vld [vmem:[%s816_s1 + $0xa8] sm:$0xff] (!%p140_p2)  }
   0xb   : > { %602 = vmatpush3.bf16.msra.mxu0 (!%p140_p2), %v665_v5  ;;  %v679_v19 = vld [vmem:[%s816_s1 + $0x70] sm:$0xff] (!%p140_p2)   ;;  %v682_v22 = vld [vmem:[%s816_s1 + $0x78] sm:$0xff] (!%p140_p2)   ;;  %v560_v30 = vld [vmem:[%s817_s2] ss:$0 sm:$0xff] (!%p140_p2) }
   0xc   : > { %633 = vmatpush3.bf16.msra.mxu1 (!%p140_p2), %v666_v6  ;;  %603 = vmatprep.subr.bf16.mxu0 (!%p140_p2), %v667_v7  ;;  %v680_v20 = vld [vmem:[%s816_s1 + $0x30] sm:$0xff] (!%p140_p2)   ;;  %v683_v24 = vld [vmem:[%s816_s1 + $0x38] sm:$0xff] (!%p140_p2)  }
   0xd   : > { %634 = vmatprep.subr.bf16.mxu1 %v697_v2  ;;  %s820_s28 = smov (!%p165_p3, %s556_s28), 3  ;;  %v681_v21 = vld [vmem:[%s816_s1 + $0xb0] sm:$0xff]   ;;  %v687_v25 = vld [vmem:[%s816_s1 + $0xb8] sm:$0xff]  }
   0xe   : > { %s650_s21 = smul.u32 12, %s820_s28  ;;  %s559_s18 = sshll.u32 %s820_s28, 2 }
   0xf   : > { %604 = vmatpush3.bf16.msra.mxu0 %v668_v8 }
  0x10   : > { %635 = vmatpush3.bf16.msra.mxu1 %v669_v9  ;;  %605 = vmatprep.subr.bf16.mxu0 %v670_v10  ;;  %s169_s6 = scalar_lea.vmem %s815_s0, %s650_s21  ;;  %s175_s21 = scalar_lea.vmem %s818_s3, %s559_s18 }
  0x11   : > { %636 = vmatprep.subr.bf16.mxu1 %v697_v2  ;;  %v686_v23 = vld [vmem:[%s169_s6 + $0x4] ss:$12 sps:$4 sm:$0xff]   ;;  %v684_v26 = vld [vmem:[%s169_s6] ss:$12 sps:$4 sm:$0xff]   ;;  %v688_v27 = vld [vmem:[%s169_s6 + $0x8] ss:$12 sps:$4 sm:$0xff]  }
  0x12   : > { %429 = vmatprep.mubr.bf16.mxu0 %v686_v23 }
  0x13   : > { %606 = vmatpush3.bf16.msra.mxu0 %v671_v11 }
  0x14   : > { %637 = vmatpush3.bf16.msra.mxu1 %v672_v12  ;;  %607 = vmatprep.subr.bf16.mxu0 %v673_v13 }
  0x15   : > { %638 = vmatprep.subr.bf16.mxu1 %v697_v2 }
  0x17   : > { %608 = vmatpush3.bf16.msra.mxu0 %v674_v14 }
  0x18   : > { %639 = vmatpush3.bf16.msra.mxu1 %v675_v15  ;;  %609 = vmatprep.subr.bf16.mxu0 %v676_v16 }
  0x19   : > { %640 = vmatprep.subr.bf16.mxu1 %v697_v2 }
  0x1b   : > { %610 = vmatpush3.bf16.msra.mxu0 %v677_v17 }
  0x1c   : > { %641 = vmatpush3.bf16.msra.mxu1 %v678_v18  ;;  %611 = vmatprep.subr.bf16.mxu0 %v679_v19 }
  0x1d   : > { %642 = vmatprep.subr.bf16.mxu1 %v697_v2 }
  0x1f   : > { %612 = vmatpush3.bf16.msra.mxu0 %v680_v20 }
  0x20   : > { %643 = vmatpush3.bf16.msra.mxu1 %v681_v21  ;;  %613 = vmatprep.subr.bf16.mxu0 %v682_v22 }
  0x21   : > { %644 = vmatprep.subr.bf16.mxu1 %v697_v2 }
  0x23   : > { %614 = vmatpush3.bf16.msra.mxu0 %v683_v24 }
  0x24   : > { %645 = vmatpush3.bf16.msra.mxu1 %v687_v25 }
  0x26   : > { %430 = vmatmul.mubr.bf16.vlgmr.msra.gmra.mrb[0].mxu0 %v684_v26 }
  0x27   : > { %647 = vmatmul.mubr.bf16.vlgmr.msra.gmra.mrb[0].mxu1 %v688_v27 }
  0xf9   : > { %v615_v28 = vpop.f32.mrb[0].mxu0 }
  0xfa   : > { %v616_v29 = vpop.f32.mrb[1].mxu0  ;;  %v472_v31 = vpop.f32.mrb[0].mxu1 }
  0xfb   : > { %v617_v32 = vadd.f32 %v616_v29, %v615_v28  ;;  %v618_v33 = vpop.f32.mrb[2].mxu0  ;;  %v648_v34 = vpop.f32.mrb[1].mxu1 }
  0xfc   : > { %v619_v35 = vpop.f32.mrb[3].mxu0  ;;  %v475_v36 = vpop.f32.mrb[2].mxu1 }
  0xfd   : > { %v432_v37 = vadd.f32 %v617_v32, %v560_v30  ;;  %v620_v38 = vadd.f32 %v619_v35, %v618_v33  ;;  %v649_v39 = vpop.f32.mrb[3].mxu1 }
  0xff   : > { %v473_v40 = vadd.f32 %v472_v31, %v432_v37  ;;  %v435_v41 = vadd.f32 %v620_v38, %v560_v30 }
 0x101   : > { %v481_v42 = vmul.f32 0.1, %v473_v40  ;;  %v476_v43 = vadd.f32 %v475_v36, %v435_v41  ;;  %vm479_vm1 = vcmp.ge.f32.partialorder %v473_v40, 0.0 }
 0x103   : > { %vm480_vm2 = vcmp.ge.f32.partialorder %v476_v43, 0.0  ;;  %v482_v44 = vmul.f32 0.1, %v476_v43  ;;  %v483_v45 = vsel %vm479_vm1, %v473_v40, %v481_v42 }
 0x105   : > { %v484_v46 = vsel %vm480_vm2, %v476_v43, %v482_v44 }
 0x106   : > { %v597_v47 = vpack.c.bf16 %v484_v46, %v483_v45 }
 0x108   : > { %598 = vst [vmem:[%s175_s21] sm:$0xff] %v597_v47  }
 0x109 PF: > { %s13_s12 = sadd.s32 1, %s695_s12  }
 0x10a   : > { %p10_p4 = scmp.ge.s32.totalorder %s13_s12, 4  }
 0x10c   :  { %12 = sbr.rel (!%p10_p4) target bundleno = 1 (0x1), region = 62 }

// kernel: forward.6
= control target key start
LH: loop header
LB: loop body
LE: loop exit
PB: predicated region body
PF: predicated region fallthrough
CT: control target
= control target key end

     0   :  { %s743_s12 = smov 0   ;;  %s831_s0 = inlined_call_operand.vmem [shape: bf16[128,256], index: 0, kind: input, shape index: {}]   ;;  %s832_s1 = inlined_call_operand.vmem [shape: bf16[256,128], index: 1, kind: input, shape index: {}]   ;;  %s833_s2 = inlined_call_operand.vmem [shape: f32[1,128], index: 2, kind: input, shape index: {}]   ;;  %s834_s3 = inlined_call_operand.vmem [shape: bf16[128,128], index: 3, kind: output, shape index: {}]  }
   0x1 LB: > { %s546_s13 = sadd.s32 4294967295, %s721_s12   ;;  %p550_p0 = scmp.ge.s32.totalorder %s721_s12, 1  ;;  %s721_s12 = sphi %s743_s12, %s13_s12  }
   0x2   : > { %p139_p1 = scmp.lt.s32.totalorder %s721_s12, 3 }
   0x4   : > { %p140_p2 = pnand %p550_p0, %p139_p1 }
   0x5   : > { %v687_v0 = vld [vmem:[%s832_s1 + $0x40] sm:$0xff] (!%p140_p2)   ;;  %s551_s16 = sshll.u32 (!%p140_p2), %s546_s13, 3  ;;  %v689_v2 = vld [vmem:[%s832_s1 + $0x48] sm:$0xff] (!%p140_p2)   ;;  %v691_v4 = vld [vmem:[%s832_s1 + $0x50] sm:$0xff] (!%p140_p2)  }
   0x6   : > { %143 = sbr.rel (%p140_p2) target bundleno = 272 (0x110), region = 32  ;;  %v688_v1 = vld [vmem:[%s832_s1] sm:$0xff] (!%p140_p2)   ;;  %623 = vmatprep.subr.bf16.mxu0 (!%p140_p2), %v687_v0  ;;  %663 = vmatprep.subr.bf16.mxu1 (!%p140_p2), %v687_v0  ;;  %v690_v3 = vld [vmem:[%s832_s1 + $0x8] sm:$0xff] (!%p140_p2)   ;;  %p165_p3 = scmp.lt.s32.totalorder (!%p140_p2), %s551_s16, 15  ;;  %v692_v5 = vld [vmem:[%s832_s1 + $0x10] sm:$0xff] (!%p140_p2)  }
   0x7   : > { %624 = vmatpush3.bf16.msra.mxu0 (!%p140_p2), %v688_v1  ;;  %671 = vmatpush3.bf16.msra.mxu1 (!%p140_p2), %v688_v1  ;;  %v693_v6 = vld [vmem:[%s832_s1 + $0x58] sm:$0xff] (!%p140_p2)   ;;  %v695_v8 = vld [vmem:[%s832_s1 + $0x60] sm:$0xff] (!%p140_p2)   ;;  %v697_v10 = vld [vmem:[%s832_s1 + $0x68] sm:$0xff] (!%p140_p2)  }
   0x8   : > { %625 = vmatprep.subr.bf16.mxu0 (!%p140_p2), %v689_v2  ;;  %664 = vmatprep.subr.bf16.mxu1 (!%p140_p2), %v689_v2  ;;  %v694_v7 = vld [vmem:[%s832_s1 + $0x18] sm:$0xff] (!%p140_p2)   ;;  %v696_v9 = vld [vmem:[%s832_s1 + $0x20] sm:$0xff] (!%p140_p2)   ;;  %v698_v13 = vld [vmem:[%s832_s1 + $0x28] sm:$0xff] (!%p140_p2)  }
   0x9   : > { %v699_v14 = vld [vmem:[%s832_s1 + $0x70] sm:$0xff] (!%p140_p2)   ;;  %v701_v16 = vld [vmem:[%s832_s1 + $0x78] sm:$0xff] (!%p140_p2)   ;;  %v556_v26 = vld [vmem:[%s833_s2] ss:$0 sm:$0xff] (!%p140_p2) }
   0xa   : > { %v700_v15 = vld [vmem:[%s832_s1 + $0x30] sm:$0xff] (!%p140_p2)   ;;  %v702_v17 = vld [vmem:[%s832_s1 + $0x38] sm:$0xff] (!%p140_p2)  }
   0xb   : > { %626 = vmatpush3.bf16.msra.mxu0 (!%p140_p2), %v690_v3  ;;  %672 = vmatpush3.bf16.msra.mxu1 (!%p140_p2), %v690_v3 }
   0xc   : > { %627 = vmatprep.subr.bf16.mxu0 (!%p140_p2), %v691_v4  ;;  %665 = vmatprep.subr.bf16.mxu1 (!%p140_p2), %v691_v4 }
   0xd   : > { %s836_s16 = smov (!%p165_p3, %s551_s16), 15 }
   0xe   : > { %s591_s4 = sshll.u32 %s836_s16, 3  ;;  %s555_s28 = sshll.u32 %s836_s16, 2 }
   0xf   : > { %628 = vmatpush3.bf16.msra.mxu0 %v692_v5  ;;  %673 = vmatpush3.bf16.msra.mxu1 %v692_v5  ;;  %s784_s9 = scalar_lea.vmem %s831_s0, %s591_s4  ;;  %s822_s4 = scalar_lea.vmem %s834_s3, %s555_s28 }
  0x10   : > { %629 = vmatprep.subr.bf16.mxu0 %v693_v6  ;;  %666 = vmatprep.subr.bf16.mxu1 %v693_v6  ;;  %v705_v11 = vld [vmem:[%s784_s9 + $0x4] ss:$8 sps:$4 sm:$0xff]   ;;  %v703_v18 = vld [vmem:[%s784_s9] ss:$8 sps:$4 sm:$0xff]   ;;  %v709_v20 = vld [vmem:[%s784_s9 + $0x14] ss:$8 sps:$4 sm:$0xff]  }
  0x11   : > { %v708_v12 = vld [vmem:[%s784_s9 + $0x24] ss:$8 sps:$4 sm:$0xff]   ;;  %393 = vmatprep.mubr.bf16.mxu0 %v705_v11  ;;  %v706_v19 = vld [vmem:[%s784_s9 + $0x20] ss:$8 sps:$4 sm:$0xff]   ;;  %v711_v21 = vld [vmem:[%s784_s9 + $0x34] ss:$8 sps:$4 sm:$0xff]  }
  0x12   : > { %409 = vmatprep.mubr.bf16.mxu1 %v708_v12  ;;  %v713_v22 = vld [vmem:[%s784_s9 + $0x10] ss:$8 sps:$4 sm:$0xff]  }
  0x13   : > { %630 = vmatpush3.bf16.msra.mxu0 %v694_v7  ;;  %674 = vmatpush3.bf16.msra.mxu1 %v694_v7  ;;  %v714_v23 = vld [vmem:[%s784_s9 + $0x30] ss:$8 sps:$4 sm:$0xff]  }
  0x14   : > { %631 = vmatprep.subr.bf16.mxu0 %v695_v8  ;;  %667 = vmatprep.subr.bf16.mxu1 %v695_v8 }
  0x17   : > { %632 = vmatpush3.bf16.msra.mxu0 %v696_v9  ;;  %675 = vmatpush3.bf16.msra.mxu1 %v696_v9 }
  0x18   : > { %633 = vmatprep.subr.bf16.mxu0 %v697_v10  ;;  %668 = vmatprep.subr.bf16.mxu1 %v697_v10 }
  0x1b   : > { %634 = vmatpush3.bf16.msra.mxu0 %v698_v13  ;;  %676 = vmatpush3.bf16.msra.mxu1 %v698_v13 }
  0x1c   : > { %635 = vmatprep.subr.bf16.mxu0 %v699_v14  ;;  %669 = vmatprep.subr.bf16.mxu1 %v699_v14 }
  0x1f   : > { %636 = vmatpush3.bf16.msra.mxu0 %v700_v15  ;;  %677 = vmatpush3.bf16.msra.mxu1 %v700_v15 }
  0x20   : > { %637 = vmatprep.subr.bf16.mxu0 %v701_v16  ;;  %670 = vmatprep.subr.bf16.mxu1 %v701_v16 }
  0x23   : > { %638 = vmatpush3.bf16.msra.mxu0 %v702_v17  ;;  %678 = vmatpush3.bf16.msra.mxu1 %v702_v17 }
  0x26   : > { %394 = vmatmul.mubr.bf16.vlgmr.msra.gmra.mrb[0].mxu0 %v703_v18  ;;  %410 = vmatmul.mubr.bf16.vlgmr.msra.gmra.mrb[0].mxu1 %v706_v19 }
  0x27   : > { %401 = vmatprep.mubr.bf16.mxu0 %v709_v20  ;;  %417 = vmatprep.mubr.bf16.mxu1 %v711_v21 }
  0x2e   : > { %402 = vmatmul.mubr.bf16.gmra.mrb[4].mxu0 %v713_v22  ;;  %418 = vmatmul.mubr.bf16.gmra.mrb[4].mxu1 %v714_v23 }
  0xf9   : > { %v639_v24 = vpop.f32.mrb[0].mxu0  ;;  %v651_v25 = vpop.f32.mrb[0].mxu1 }
  0xfa   : > { %v640_v27 = vpop.f32.mrb[1].mxu0  ;;  %v652_v28 = vpop.f32.mrb[1].mxu1 }
  0xfb   : > { %v641_v29 = vadd.f32 %v640_v27, %v639_v24  ;;  %v653_v30 = vadd.f32 %v652_v28, %v651_v25  ;;  %v642_v31 = vpop.f32.mrb[2].mxu0  ;;  %v654_v32 = vpop.f32.mrb[2].mxu1 }
  0xfc   : > { %v643_v33 = vpop.f32.mrb[3].mxu0  ;;  %v655_v34 = vpop.f32.mrb[3].mxu1 }
  0xfd   : > { %v396_v35 = vadd.f32 %v641_v29, %v556_v26  ;;  %v412_v36 = vadd.f32 %v653_v30, %v556_v26  ;;  %v644_v37 = vadd.f32 %v643_v33, %v642_v31  ;;  %v656_v38 = vadd.f32 %v655_v34, %v654_v32 }
  0xff   : > { %v434_v39 = vmul.f32 0.1, %v396_v35  ;;  %v438_v40 = vmul.f32 0.1, %v412_v36  ;;  %vm426_vm0 = vcmp.ge.f32.partialorder %v396_v35, 0.0  ;;  %vm430_vm1 = vcmp.ge.f32.partialorder %v412_v36, 0.0 }
 0x100   : > { %v399_v41 = vadd.f32 %v644_v37, %v556_v26  ;;  %v415_v42 = vadd.f32 %v656_v38, %v556_v26 }
 0x101   : > { %v645_v43 = vpop.f32.mrb[4].mxu0  ;;  %v657_v44 = vpop.f32.mrb[4].mxu1  ;;  %v442_v47 = vsel %vm426_vm0, %v396_v35, %v434_v39  ;;  %v446_v48 = vsel %vm430_vm1, %v412_v36, %v438_v40 }
 0x102   : > { %vm427_vm2 = vcmp.ge.f32.partialorder %v399_v41, 0.0  ;;  %v435_v45 = vmul.f32 0.1, %v399_v41  ;;  %vm431_vm3 = vcmp.ge.f32.partialorder %v415_v42, 0.0  ;;  %v439_v46 = vmul.f32 0.1, %v415_v42 }
 0x103   : > { %v646_v49 = vpop.f32.mrb[5].mxu0  ;;  %v658_v50 = vpop.f32.mrb[5].mxu1 }
 0x104   : > { %v443_v51 = vsel %vm427_vm2, %v399_v41, %v435_v45  ;;  %v447_v52 = vsel %vm431_vm3, %v415_v42, %v439_v46  ;;  %v647_v53 = vadd.f32 %v646_v49, %v645_v43  ;;  %v659_v54 = vadd.f32 %v658_v50, %v657_v44  ;;  %v648_v55 = vpop.f32.mrb[6].mxu0  ;;  %v660_v56 = vpop.f32.mrb[6].mxu1 }
 0x105   : > { %v603_v57 = vpack.c.bf16 %v443_v51, %v442_v47  ;;  %v613_v58 = vpack.c.bf16 %v447_v52, %v446_v48  ;;  %v649_v59 = vpop.f32.mrb[7].mxu0  ;;  %v661_v60 = vpop.f32.mrb[7].mxu1 }
 0x106   : > { %v404_v61 = vadd.f32 %v647_v53, %v556_v26  ;;  %v420_v62 = vadd.f32 %v659_v54, %v556_v26  ;;  %v650_v63 = vadd.f32 %v649_v59, %v648_v55  ;;  %v662_v0 = vadd.f32 %v661_v60, %v660_v56 }
 0x107   : > { %604 = vst [vmem:[%s822_s4] sm:$0xff] %v603_v57   ;;  %621 = vst [vmem:[%s822_s4 + $0x10] sm:$0xff] %v613_v58  }
 0x108   : > { %v436_v1 = vmul.f32 0.1, %v404_v61  ;;  %v440_v2 = vmul.f32 0.1, %v420_v62  ;;  %v407_v3 = vadd.f32 %v650_v63, %v556_v26  ;;  %v423_v4 = vadd.f32 %v662_v0, %v556_v26 }
 0x109   : > { %vm428_vm4 = vcmp.ge.f32.partialorder %v404_v61, 0.0  ;;  %vm432_vm5 = vcmp.ge.f32.partialorder %v420_v62, 0.0 }
 0x10a   : > { %vm429_vm6 = vcmp.ge.f32.partialorder %v407_v3, 0.0  ;;  %v437_v5 = vmul.f32 0.1, %v407_v3  ;;  %vm433_vm7 = vcmp.ge.f32.partialorder %v423_v4, 0.0  ;;  %v441_v6 = vmul.f32 0.1, %v423_v4 }
 0x10b   : > { %v444_v7 = vsel %vm428_vm4, %v404_v61, %v436_v1  ;;  %v448_v8 = vsel %vm432_vm5, %v420_v62, %v440_v2 }
 0x10c   : > { %v445_v9 = vsel %vm429_vm6, %v407_v3, %v437_v5  ;;  %v449_v10 = vsel %vm433_vm7, %v423_v4, %v441_v6 }
 0x10d   : > { %v608_v11 = vpack.c.bf16 %v445_v9, %v444_v7  ;;  %v618_v12 = vpack.c.bf16 %v449_v10, %v448_v8 }
 0x10f   : > { %620 = vst [vmem:[%s822_s4 + $0x8] sm:$0xff] %v608_v11   ;;  %622 = vst [vmem:[%s822_s4 + $0x18] sm:$0xff] %v618_v12  }
 0x110 PF: > { %s13_s12 = sadd.s32 1, %s721_s12  }
 0x111   : > { %p10_p4 = scmp.ge.s32.totalorder %s13_s12, 4  }
 0x113   :  { %12 = sbr.rel (!%p10_p4) target bundleno = 1 (0x1), region = 62 }

// kernel: forward.8
= control target key start
LH: loop header
LB: loop body
LE: loop exit
PB: predicated region body
PF: predicated region fallthrough
CT: control target
= control target key end

     0   :  { %v694_v33 = vmov 0.0   ;;  %vm695_vm0 = vmmov 0   ;;  %s857_s1 = inlined_call_operand.vmem [shape: bf16[640,128], index: 1, kind: input, shape index: {}]   ;;  %s858_s0 = inlined_call_operand.vmem [shape: bf16[16,640], index: 0, kind: input, shape index: {}]   ;;  %s859_s2 = inlined_call_operand.vmem [shape: f32[1,128], index: 2, kind: input, shape index: {}]   ;;  %s860_s3 = inlined_call_operand.vmem [shape: bf16[16,128], index: 3, kind: output, shape index: {}]  }
   0x1   :  { %v647_v0 = vld [vmem:[%s857_s1 + $0x40] sm:$0xff]   ;;  %v651_v4 = vld [vmem:[%s857_s1 + $0x48] sm:$0xff]   ;;  %v655_v8 = vld [vmem:[%s857_s1 + $0x50] sm:$0xff]  }
   0x2   :  { %v648_v1 = vld [vmem:[%s857_s1] sm:$0xff]   ;;  %572 = vmatprep.subr.bf16.mxu0 %v647_v0  ;;  %v652_v5 = vld [vmem:[%s857_s1 + $0x8] sm:$0xff]   ;;  %v656_v9 = vld [vmem:[%s857_s1 + $0x10] sm:$0xff]  }
   0x3   :  { %v649_v2 = vld [vmem:[%s857_s1 + $0xc0] sm:$0xff]   ;;  %573 = vmatpush3.bf16.msra.mxu0 %v648_v1  ;;  %v653_v6 = vld [vmem:[%s857_s1 + $0xc8] sm:$0xff]   ;;  %v657_v10 = vld [vmem:[%s857_s1 + $0xd0] sm:$0xff]  }
   0x4   :  { %v650_v3 = vld [vmem:[%s857_s1 + $0x80] sm:$0xff]   ;;  %594 = vmatprep.subr.bf16.mxu1 %v649_v2  ;;  %574 = vmatprep.subr.bf16.mxu0 %v651_v4  ;;  %v654_v7 = vld [vmem:[%s857_s1 + $0x88] sm:$0xff]   ;;  %v658_v11 = vld [vmem:[%s857_s1 + $0x90] sm:$0xff]  }
   0x5   :  { %595 = vmatpush3.bf16.msra.mxu1 %v650_v3  ;;  %v659_v12 = vld [vmem:[%s857_s1 + $0x58] sm:$0xff]   ;;  %v663_v16 = vld [vmem:[%s857_s1 + $0x60] sm:$0xff]   ;;  %v667_v20 = vld [vmem:[%s857_s1 + $0x68] sm:$0xff]  }
   0x6   :  { %596 = vmatprep.subr.bf16.mxu1 %v653_v6  ;;  %v660_v13 = vld [vmem:[%s857_s1 + $0x18] sm:$0xff]   ;;  %v664_v17 = vld [vmem:[%s857_s1 + $0x20] sm:$0xff]   ;;  %v668_v21 = vld [vmem:[%s857_s1 + $0x28] sm:$0xff]  }
   0x7   :  { %575 = vmatpush3.bf16.msra.mxu0 %v652_v5  ;;  %v661_v14 = vld [vmem:[%s857_s1 + $0xd8] sm:$0xff]   ;;  %v665_v18 = vld [vmem:[%s857_s1 + $0xe0] sm:$0xff]   ;;  %v669_v22 = vld [vmem:[%s857_s1 + $0xe8] sm:$0xff]  }
   0x8   :  { %576 = vmatprep.subr.bf16.mxu0 %v655_v8  ;;  %v662_v15 = vld [vmem:[%s857_s1 + $0x98] sm:$0xff]   ;;  %v666_v19 = vld [vmem:[%s857_s1 + $0xa0] sm:$0xff]   ;;  %v670_v23 = vld [vmem:[%s857_s1 + $0xa8] sm:$0xff]  }
   0x9   :  { %597 = vmatpush3.bf16.msra.mxu1 %v654_v7  ;;  %v671_v24 = vld [vmem:[%s857_s1 + $0x70] sm:$0xff]   ;;  %v675_v28 = vld [vmem:[%s857_s1 + $0x78] sm:$0xff]   ;;  %v684_v36 = vld [vmem:[%s858_s0 + $0xc] ss:$20 sps:$4 sm:$0xff]  }
   0xa   :  { %598 = vmatprep.subr.bf16.mxu1 %v657_v10  ;;  %v672_v25 = vld [vmem:[%s857_s1 + $0x30] sm:$0xff]   ;;  %v676_v29 = vld [vmem:[%s857_s1 + $0x38] sm:$0xff]   ;;  %v685_v37 = vld [vmem:[%s857_s1 + $0x100] sm:$0xff]   ;;  %447 = vmatprep.mubr.bf16.mxu1 %v684_v36 }
   0xb   :  { %577 = vmatpush3.bf16.msra.mxu0 %v656_v9  ;;  %v673_v26 = vld [vmem:[%s857_s1 + $0xf0] sm:$0xff]   ;;  %v677_v30 = vld [vmem:[%s857_s1 + $0xf8] sm:$0xff]   ;;  %v686_v38 = vld [vmem:[%s857_s1 + $0x108] sm:$0xff]  }
   0xc   :  { %578 = vmatprep.subr.bf16.mxu0 %v659_v12  ;;  %v674_v27 = vld [vmem:[%s857_s1 + $0xb0] sm:$0xff]   ;;  %v680_v32 = vld [vmem:[%s858_s0 + $0x4] ss:$20 sps:$4 sm:$0xff]   ;;  %v682_v35 = vld [vmem:[%s858_s0 + $0x8] ss:$20 sps:$4 sm:$0xff]  }
   0xd   :  { %599 = vmatpush3.bf16.msra.mxu1 %v658_v11  ;;  %v678_v31 = vld [vmem:[%s858_s0] ss:$20 sps:$4 sm:$0xff]   ;;  %v681_v34 = vld [vmem:[%s857_s1 + $0xb8] sm:$0xff]   ;;  %406 = vmatprep.mubr.bf16.mxu0 %v680_v32  ;;  %v690_v42 = vld [vmem:[%s857_s1 + $0x128] sm:$0xff]  }
   0xe   :  { %600 = vmatprep.subr.bf16.mxu1 %v661_v14  ;;  %v687_v39 = vld [vmem:[%s857_s1 + $0x110] sm:$0xff]   ;;  %v688_v40 = vld [vmem:[%s857_s1 + $0x118] sm:$0xff]   ;;  %v689_v41 = vld [vmem:[%s857_s1 + $0x120] sm:$0xff]  }
   0xf   :  { %579 = vmatpush3.bf16.msra.mxu0 %v660_v13  ;;  %v691_v43 = vld [vmem:[%s857_s1 + $0x130] sm:$0xff]   ;;  %v692_v44 = vld [vmem:[%s857_s1 + $0x138] sm:$0xff]   ;;  %v517_v47 = vld [vmem:[%s859_s2] ss:$0 sm:$0xff] }
  0x10   :  { %580 = vmatprep.subr.bf16.mxu0 %v663_v16  ;;  %v693_v45 = vld [vmem:[%s858_s0 + $0x10] ss:$20 sps:$4 sm:$0xff]  }
  0x11   :  { %601 = vmatpush3.bf16.msra.mxu1 %v662_v15 }
  0x12   :  { %602 = vmatprep.subr.bf16.mxu1 %v665_v18 }
  0x13   :  { %581 = vmatpush3.bf16.msra.mxu0 %v664_v17 }
  0x14   :  { %582 = vmatprep.subr.bf16.mxu0 %v667_v20 }
  0x15   :  { %603 = vmatpush3.bf16.msra.mxu1 %v666_v19 }
  0x16   :  { %604 = vmatprep.subr.bf16.mxu1 %v669_v22 }
  0x17   :  { %583 = vmatpush3.bf16.msra.mxu0 %v668_v21 }
  0x18   :  { %584 = vmatprep.subr.bf16.mxu0 %v671_v24 }
  0x19   :  { %605 = vmatpush3.bf16.msra.mxu1 %v670_v23 }
  0x1a   :  { %606 = vmatprep.subr.bf16.mxu1 %v673_v26 }
  0x1b   :  { %585 = vmatpush3.bf16.msra.mxu0 %v672_v25 }
  0x1c   :  { %586 = vmatprep.subr.bf16.mxu0 %v675_v28 }
  0x1d   :  { %607 = vmatpush3.bf16.msra.mxu1 %v674_v27 }
  0x1e   :  { %608 = vmatprep.subr.bf16.mxu1 %v677_v30 }
  0x1f   :  { %587 = vmatpush3.bf16.msra.mxu0 %v676_v29 }
  0x20   :  { %625 = vmatprep.subr.bf16.mxu0 %v694_v33 }
  0x21   :  { %609 = vmatpush3.bf16.msra.mxu1 %v681_v34 }
  0x22   :  { %407 = vmatmul.mubr.bf16.vlgmr.msra.gmra.mrb[0].mxu0 %v678_v31 }
  0x23   :  { %641 = vmatprep.mubr.msk.bf16.mxu0 %vm695_vm0, %v694_v33  ;;  %626 = vmatpush3.bf16.msra.mxu0 %v685_v37 }
  0x24   :  { %448 = vmatmul.mubr.bf16.vlgmr.msra.gmra.mrb[0].mxu1 %v682_v35  ;;  %627 = vmatprep.subr.bf16.mxu0 %v694_v33 }
  0x27   :  { %628 = vmatpush3.bf16.msra.mxu0 %v686_v38 }
  0x28   :  { %629 = vmatprep.subr.bf16.mxu0 %v694_v33 }
  0x2b   :  { %630 = vmatpush3.bf16.msra.mxu0 %v687_v39 }
  0x2c   :  { %631 = vmatprep.subr.bf16.mxu0 %v694_v33 }
  0x2f   :  { %632 = vmatpush3.bf16.msra.mxu0 %v688_v40 }
  0x30   :  { %633 = vmatprep.subr.bf16.mxu0 %v694_v33 }
  0x33   :  { %634 = vmatpush3.bf16.msra.mxu0 %v689_v41 }
  0x34   :  { %635 = vmatprep.subr.bf16.mxu0 %v694_v33 }
  0x37   :  { %636 = vmatpush3.bf16.msra.mxu0 %v690_v42 }
  0x38   :  { %637 = vmatprep.subr.bf16.mxu0 %v694_v33 }
  0x3b   :  { %638 = vmatpush3.bf16.msra.mxu0 %v691_v43 }
  0x3c   :  { %639 = vmatprep.subr.bf16.mxu0 %v694_v33 }
  0x3f   :  { %640 = vmatpush3.bf16.msra.mxu0 %v692_v44 }
  0x42   :  { %642 = vmatmul.mubr.bf16.vlgmr.msra.gmra.mrb[4].mxu0 %v693_v45 }
  0xf5   :  { %v588_v46 = vpop.f32.mrb[0].mxu0 }
  0xf6   :  { %v589_v48 = vpop.f32.mrb[1].mxu0 }
  0xf7   :  { %v590_v49 = vadd.f32 %v589_v48, %v588_v46  ;;  %v591_v50 = vpop.f32.mrb[2].mxu0  ;;  %v610_v51 = vpop.f32.mrb[0].mxu1 }
  0xf8   :  { %v592_v52 = vpop.f32.mrb[3].mxu0  ;;  %v611_v55 = vpop.f32.mrb[1].mxu1 }
  0xf9   :  { %v409_v53 = vadd.f32 %v590_v49, %v517_v47  ;;  %v593_v54 = vadd.f32 %v592_v52, %v591_v50  ;;  %v612_v56 = vadd.f32 %v611_v55, %v610_v51  ;;  %v613_v57 = vpop.f32.mrb[2].mxu1 }
  0xfa   :  { %v614_v59 = vpop.f32.mrb[3].mxu1 }
  0xfb   :  { %v412_v58 = vadd.f32 %v593_v54, %v517_v47  ;;  %v615_v60 = vadd.f32 %v614_v59, %v613_v57  ;;  %v450_v61 = vadd.f32 %v612_v56, %v409_v53 }
  0xfd   :  { %v453_v62 = vadd.f32 %v615_v60, %v412_v58 }
 0x115   :  { %v490_v63 = vpop.f32.mrb[4].mxu0 }
 0x116   :  { %v491_v0 = vadd.f32 %v490_v63, %v450_v61  ;;  %v643_v1 = vpop.f32.mrb[5].mxu0 }
 0x117   :  { %v493_v2 = vpop.f32.mrb[6].mxu0 }
 0x118   :  { %v499_v3 = vmul.f32 0.1, %v491_v0  ;;  %v494_v4 = vadd.f32 %v493_v2, %v453_v62  ;;  %v644_v5 = vpop.f32.mrb[7].mxu0  ;;  %vm497_vm1 = vcmp.ge.f32.partialorder %v491_v0, 0.0 }
 0x11a   :  { %vm498_vm2 = vcmp.ge.f32.partialorder %v494_v4, 0.0  ;;  %v500_v6 = vmul.f32 0.1, %v494_v4  ;;  %v501_v7 = vsel %vm497_vm1, %v491_v0, %v499_v3 }
 0x11c   :  { %v502_v8 = vsel %vm498_vm2, %v494_v4, %v500_v6 }
 0x11d   :  { %v570_v9 = vpack.c.bf16 %v502_v8, %v501_v7 }
 0x11f   :  { %571 = vst [vmem:[%s860_s3] sm:$0xff] %v570_v9  }

// kernel: forward.9
= control target key start
LH: loop header
LB: loop body
LE: loop exit
PB: predicated region body
PF: predicated region fallthrough
CT: control target
= control target key end

     0   :  { %s2088_s1 = inlined_call_operand.vmem [shape: bf16[1152,256], index: 1, kind: input, shape index: {}]   ;;  %s2089_s0 = inlined_call_operand.vmem [shape: bf16[16,1152], index: 0, kind: input, shape index: {}]   ;;  %s2090_s2 = inlined_call_operand.vmem [shape: f32[1,256], index: 2, kind: input, shape index: {}]   ;;  %s2091_s3 = inlined_call_operand.vmem [shape: bf16[16,256], index: 3, kind: output, shape index: {}]  }
   0x1   :  { %v1370_v0 = vld [vmem:[%s2088_s1 + $0x4] ss:$8 sps:$4 sm:$0xff]   ;;  %v1374_v2 = vld [vmem:[%s2088_s1] ss:$8 sps:$4 sm:$0xff]   ;;  %v1376_v4 = vld [vmem:[%s2088_s1 + $0x14] ss:$8 sps:$4 sm:$0xff]  }
   0x2   :  { %v1372_v1 = vld [vmem:[%s2088_s1 + $0x204] ss:$8 sps:$4 sm:$0xff]   ;;  %947 = vmatprep.subr.bf16.mxu1 %v1370_v0  ;;  %v1375_v3 = vld [vmem:[%s2088_s1 + $0x200] ss:$8 sps:$4 sm:$0xff]   ;;  %v1378_v5 = vld [vmem:[%s2088_s1 + $0x214] ss:$8 sps:$4 sm:$0xff]  }
   0x3   :  { %1033 = vmatprep.subr.bf16.mxu0 %v1372_v1  ;;  %948 = vmatpush1.bf16.msra.mxu1 %v1374_v2  ;;  %v1380_v6 = vld [vmem:[%s2088_s1 + $0x10] ss:$8 sps:$4 sm:$0xff]   ;;  %v1382_v8 = vld [vmem:[%s2088_s1 + $0x24] ss:$8 sps:$4 sm:$0xff]   ;;  %v1386_v10 = vld [vmem:[%s2088_s1 + $0x20] ss:$8 sps:$4 sm:$0xff]  }
   0x4   :  { %1034 = vmatpush1.bf16.msra.mxu0 %v1375_v3  ;;  %949 = vmatprep.subr.bf16.mxu1 %v1376_v4  ;;  %v1381_v7 = vld [vmem:[%s2088_s1 + $0x210] ss:$8 sps:$4 sm:$0xff]   ;;  %v1384_v9 = vld [vmem:[%s2088_s1 + $0x224] ss:$8 sps:$4 sm:$0xff]   ;;  %v1387_v11 = vld [vmem:[%s2088_s1 + $0x220] ss:$8 sps:$4 sm:$0xff]  }
   0x5   :  { %1035 = vmatprep.subr.bf16.mxu0 %v1378_v5  ;;  %v1388_v12 = vld [vmem:[%s2088_s1 + $0x34] ss:$8 sps:$4 sm:$0xff]   ;;  %v1392_v14 = vld [vmem:[%s2088_s1 + $0x30] ss:$8 sps:$4 sm:$0xff]   ;;  %v1394_v16 = vld [vmem:[%s2088_s1 + $0x44] ss:$8 sps:$4 sm:$0xff]  }
   0x6   :  { %v1390_v13 = vld [vmem:[%s2088_s1 + $0x234] ss:$8 sps:$4 sm:$0xff]   ;;  %v1393_v15 = vld [vmem:[%s2088_s1 + $0x230] ss:$8 sps:$4 sm:$0xff]   ;;  %v1396_v17 = vld [vmem:[%s2088_s1 + $0x244] ss:$8 sps:$4 sm:$0xff]  }
   0x7   :  { %950 = vmatpush1.bf16.msra.mxu1 %v1380_v6  ;;  %v1398_v18 = vld [vmem:[%s2088_s1 + $0x40] ss:$8 sps:$4 sm:$0xff]   ;;  %v1400_v20 = vld [vmem:[%s2088_s1 + $0x54] ss:$8 sps:$4 sm:$0xff]   ;;  %v1404_v22 = vld [vmem:[%s2088_s1 + $0x50] ss:$8 sps:$4 sm:$0xff]  }
   0x8   :  { %1036 = vmatpush1.bf16.msra.mxu0 %v1381_v7  ;;  %951 = vmatprep.subr.bf16.mxu1 %v1382_v8  ;;  %v1399_v19 = vld [vmem:[%s2088_s1 + $0x240] ss:$8 sps:$4 sm:$0xff]   ;;  %v1402_v21 = vld [vmem:[%s2088_s1 + $0x254] ss:$8 sps:$4 sm:$0xff]   ;;  %v1405_v23 = vld [vmem:[%s2088_s1 + $0x250] ss:$8 sps:$4 sm:$0xff]  }
   0x9   :  { %1037 = vmatprep.subr.bf16.mxu0 %v1384_v9  ;;  %v1406_v24 = vld [vmem:[%s2088_s1 + $0x64] ss:$8 sps:$4 sm:$0xff]   ;;  %v1410_v26 = vld [vmem:[%s2088_s1 + $0x60] ss:$8 sps:$4 sm:$0xff]   ;;  %v1412_v28 = vld [vmem:[%s2088_s1 + $0x74] ss:$8 sps:$4 sm:$0xff]  }
   0xa   :  { %v1408_v25 = vld [vmem:[%s2088_s1 + $0x264] ss:$8 sps:$4 sm:$0xff]   ;;  %v1411_v27 = vld [vmem:[%s2088_s1 + $0x260] ss:$8 sps:$4 sm:$0xff]   ;;  %v1414_v29 = vld [vmem:[%s2088_s1 + $0x274] ss:$8 sps:$4 sm:$0xff]  }
   0xb   :  { %952 = vmatpush1.bf16.msra.mxu1 %v1386_v10  ;;  %v1416_v30 = vld [vmem:[%s2088_s1 + $0x70] ss:$8 sps:$4 sm:$0xff]   ;;  %v1418_v32 = vld [vmem:[%s2088_s1 + $0x84] ss:$8 sps:$4 sm:$0xff]   ;;  %v1422_v34 = vld [vmem:[%s2088_s1 + $0x80] ss:$8 sps:$4 sm:$0xff]  }
   0xc   :  { %1038 = vmatpush1.bf16.msra.mxu0 %v1387_v11  ;;  %953 = vmatprep.subr.bf16.mxu1 %v1388_v12  ;;  %v1417_v31 = vld [vmem:[%s2088_s1 + $0x270] ss:$8 sps:$4 sm:$0xff]   ;;  %v1420_v33 = vld [vmem:[%s2088_s1 + $0x284] ss:$8 sps:$4 sm:$0xff]   ;;  %v1423_v35 = vld [vmem:[%s2088_s1 + $0x280] ss:$8 sps:$4 sm:$0xff]  }
   0xd   :  { %1039 = vmatprep.subr.bf16.mxu0 %v1390_v13  ;;  %v1424_v36 = vld [vmem:[%s2088_s1 + $0x94] ss:$8 sps:$4 sm:$0xff]   ;;  %v1428_v38 = vld [vmem:[%s2088_s1 + $0x90] ss:$8 sps:$4 sm:$0xff]   ;;  %v1430_v40 = vld [vmem:[%s2088_s1 + $0xa4] ss:$8 sps:$4 sm:$0xff]  }
   0xe   :  { %v1426_v37 = vld [vmem:[%s2088_s1 + $0x294] ss:$8 sps:$4 sm:$0xff]   ;;  %v1429_v39 = vld [vmem:[%s2088_s1 + $0x290] ss:$8 sps:$4 sm:$0xff]   ;;  %v1432_v41 = vld [vmem:[%s2088_s1 + $0x2a4] ss:$8 sps:$4 sm:$0xff]  }
   0xf   :  { %954 = vmatpush1.bf16.msra.mxu1 %v1392_v14  ;;  %v1434_v42 = vld [vmem:[%s2088_s1 + $0xa0] ss:$8 sps:$4 sm:$0xff]   ;;  %v1436_v44 = vld [vmem:[%s2088_s1 + $0xb4] ss:$8 sps:$4 sm:$0xff]   ;;  %v1440_v46 = vld [vmem:[%s2088_s1 + $0xb0] ss:$8 sps:$4 sm:$0xff]  }
  0x10   :  { %1040 = vmatpush1.bf16.msra.mxu0 %v1393_v15  ;;  %955 = vmatprep.subr.bf16.mxu1 %v1394_v16  ;;  %v1435_v43 = vld [vmem:[%s2088_s1 + $0x2a0] ss:$8 sps:$4 sm:$0xff]   ;;  %v1438_v45 = vld [vmem:[%s2088_s1 + $0x2b4] ss:$8 sps:$4 sm:$0xff]   ;;  %v1441_v47 = vld [vmem:[%s2088_s1 + $0x2b0] ss:$8 sps:$4 sm:$0xff]  }
  0x11   :  { %1041 = vmatprep.subr.bf16.mxu0 %v1396_v17  ;;  %v1468_v48 = vld [vmem:[%s2089_s0 + $0x4] ss:$36 sps:$4 sm:$0xff]   ;;  %v1474_v51 = vld [vmem:[%s2089_s0 + $0x14] ss:$36 sps:$4 sm:$0xff]  }
  0x12   :  { %v1442_v49 = vld [vmem:[%s2088_s1 + $0xc4] ss:$8 sps:$4 sm:$0xff]   ;;  %979 = vmatprep.mubr.bf16.mxu1 %v1468_v48  ;;  %v1446_v52 = vld [vmem:[%s2088_s1 + $0xc0] ss:$8 sps:$4 sm:$0xff]   ;;  %v1448_v54 = vld [vmem:[%s2088_s1 + $0xd4] ss:$8 sps:$4 sm:$0xff]   ;;  %1065 = vmatprep.mubr.bf16.mxu0 %v1474_v51 }
  0x13   :  { %956 = vmatpush1.bf16.msra.mxu1 %v1398_v18  ;;  %v1444_v50 = vld [vmem:[%s2088_s1 + $0x2c4] ss:$8 sps:$4 sm:$0xff]   ;;  %v1447_v53 = vld [vmem:[%s2088_s1 + $0x2c0] ss:$8 sps:$4 sm:$0xff]   ;;  %v1450_v55 = vld [vmem:[%s2088_s1 + $0x2d4] ss:$8 sps:$4 sm:$0xff]  }
  0x14   :  { %1042 = vmatpush1.bf16.msra.mxu0 %v1399_v19  ;;  %957 = vmatprep.subr.bf16.mxu1 %v1400_v20  ;;  %v1452_v56 = vld [vmem:[%s2088_s1 + $0xd0] ss:$8 sps:$4 sm:$0xff]   ;;  %v1454_v58 = vld [vmem:[%s2088_s1 + $0xe4] ss:$8 sps:$4 sm:$0xff]   ;;  %v1458_v60 = vld [vmem:[%s2088_s1 + $0xe0] ss:$8 sps:$4 sm:$0xff]  }
  0x15   :  { %1043 = vmatprep.subr.bf16.mxu0 %v1402_v21  ;;  %v1453_v57 = vld [vmem:[%s2088_s1 + $0x2d0] ss:$8 sps:$4 sm:$0xff]   ;;  %v1456_v59 = vld [vmem:[%s2088_s1 + $0x2e4] ss:$8 sps:$4 sm:$0xff]   ;;  %v1459_v61 = vld [vmem:[%s2088_s1 + $0x2e0] ss:$8 sps:$4 sm:$0xff]  }
  0x16   :  { %v1460_v62 = vld [vmem:[%s2088_s1 + $0xf4] ss:$8 sps:$4 sm:$0xff]   ;;  %v1464_v0 = vld [vmem:[%s2088_s1 + $0xf0] ss:$8 sps:$4 sm:$0xff]   ;;  %v1471_v2 = vld [vmem:[%s2088_s1 + $0x104] ss:$8 sps:$4 sm:$0xff]  }
  0x17   :  { %958 = vmatpush1.bf16.msra.mxu1 %v1404_v22  ;;  %v1462_v63 = vld [vmem:[%s2088_s1 + $0x2f4] ss:$8 sps:$4 sm:$0xff]   ;;  %v1465_v1 = vld [vmem:[%s2088_s1 + $0x2f0] ss:$8 sps:$4 sm:$0xff]   ;;  %v1477_v3 = vld [vmem:[%s2088_s1 + $0x304] ss:$8 sps:$4 sm:$0xff]  }
  0x18   :  { %1044 = vmatpush1.bf16.msra.mxu0 %v1405_v23  ;;  %959 = vmatprep.subr.bf16.mxu1 %v1406_v24  ;;  %v1466_v4 = vld [vmem:[%s2089_s0] ss:$36 sps:$4 sm:$0xff]   ;;  %v1472_v6 = vld [vmem:[%s2089_s0 + $0x10] ss:$36 sps:$4 sm:$0xff]  }
  0x19   :  { %1045 = vmatprep.subr.bf16.mxu0 %v1408_v25  ;;  %v1469_v5 = vld [vmem:[%s2088_s1 + $0x100] ss:$8 sps:$4 sm:$0xff]   ;;  %v1480_v8 = vld [vmem:[%s2088_s1 + $0x114] ss:$8 sps:$4 sm:$0xff]   ;;  %v1478_v10 = vld [vmem:[%s2088_s1 + $0x110] ss:$8 sps:$4 sm:$0xff]  }
  0x1a   :  { %v1475_v7 = vld [vmem:[%s2088_s1 + $0x300] ss:$8 sps:$4 sm:$0xff]   ;;  %v1483_v9 = vld [vmem:[%s2088_s1 + $0x314] ss:$8 sps:$4 sm:$0xff]   ;;  %v1481_v11 = vld [vmem:[%s2088_s1 + $0x310] ss:$8 sps:$4 sm:$0xff]  }
  0x1b   :  { %960 = vmatpush1.bf16.msra.mxu1 %v1410_v26  ;;  %v1486_v12 = vld [vmem:[%s2088_s1 + $0x124] ss:$8 sps:$4 sm:$0xff]   ;;  %v1484_v14 = vld [vmem:[%s2088_s1 + $0x120] ss:$8 sps:$4 sm:$0xff]   ;;  %v1492_v16 = vld [vmem:[%s2088_s1 + $0x134] ss:$8 sps:$4 sm:$0xff]  }
  0x1c   :  { %1046 = vmatpush1.bf16.msra.mxu0 %v1411_v27  ;;  %961 = vmatprep.subr.bf16.mxu1 %v1412_v28  ;;  %v1489_v13 = vld [vmem:[%s2088_s1 + $0x324] ss:$8 sps:$4 sm:$0xff]   ;;  %v1487_v15 = vld [vmem:[%s2088_s1 + $0x320] ss:$8 sps:$4 sm:$0xff]   ;;  %v1495_v17 = vld [vmem:[%s2088_s1 + $0x334] ss:$8 sps:$4 sm:$0xff]  }
  0x1d   :  { %1047 = vmatprep.subr.bf16.mxu0 %v1414_v29  ;;  %v1490_v18 = vld [vmem:[%s2088_s1 + $0x130] ss:$8 sps:$4 sm:$0xff]   ;;  %v1498_v20 = vld [vmem:[%s2088_s1 + $0x144] ss:$8 sps:$4 sm:$0xff]   ;;  %v1496_v22 = vld [vmem:[%s2088_s1 + $0x140] ss:$8 sps:$4 sm:$0xff]  }
  0x1e   :  { %v1493_v19 = vld [vmem:[%s2088_s1 + $0x330] ss:$8 sps:$4 sm:$0xff]   ;;  %v1501_v21 = vld [vmem:[%s2088_s1 + $0x344] ss:$8 sps:$4 sm:$0xff]   ;;  %v1499_v23 = vld [vmem:[%s2088_s1 + $0x340] ss:$8 sps:$4 sm:$0xff]  }
  0x1f   :  { %962 = vmatpush1.bf16.msra.mxu1 %v1416_v30  ;;  %v1504_v24 = vld [vmem:[%s2088_s1 + $0x154] ss:$8 sps:$4 sm:$0xff]   ;;  %v1502_v26 = vld [vmem:[%s2088_s1 + $0x150] ss:$8 sps:$4 sm:$0xff]   ;;  %v1510_v28 = vld [vmem:[%s2088_s1 + $0x164] ss:$8 sps:$4 sm:$0xff]  }
  0x20   :  { %1048 = vmatpush1.bf16.msra.mxu0 %v1417_v31  ;;  %963 = vmatprep.subr.bf16.mxu1 %v1418_v32  ;;  %v1507_v25 = vld [vmem:[%s2088_s1 + $0x354] ss:$8 sps:$4 sm:$0xff]   ;;  %v1505_v27 = vld [vmem:[%s2088_s1 + $0x350] ss:$8 sps:$4 sm:$0xff]   ;;  %v1513_v29 = vld [vmem:[%s2088_s1 + $0x364] ss:$8 sps:$4 sm:$0xff]  }
  0x21   :  { %1049 = vmatprep.subr.bf16.mxu0 %v1420_v33  ;;  %v1508_v30 = vld [vmem:[%s2088_s1 + $0x160] ss:$8 sps:$4 sm:$0xff]   ;;  %v1516_v32 = vld [vmem:[%s2088_s1 + $0x174] ss:$8 sps:$4 sm:$0xff]  }
  0x22   :  { %v1511_v31 = vld [vmem:[%s2088_s1 + $0x360] ss:$8 sps:$4 sm:$0xff]   ;;  %v1519_v33 = vld [vmem:[%s2088_s1 + $0x374] ss:$8 sps:$4 sm:$0xff]  }
  0x23   :  { %964 = vmatpush1.bf16.msra.mxu1 %v1422_v34  ;;  %v1570_v34 = vld [vmem:[%s2089_s0 + $0xc] ss:$36 sps:$4 sm:$0xff]   ;;  %v1532_v48 = vld [vmem:[%s2088_s1 + $0x1a0] ss:$8 sps:$4 sm:$0xff]   ;;  %v1543_v51 = vld [vmem:[%s2088_s1 + $0x3b4] ss:$8 sps:$4 sm:$0xff]  }
  0x24   :  { %1050 = vmatpush1.bf16.msra.mxu0 %v1423_v35  ;;  %965 = vmatprep.subr.bf16.mxu1 %v1424_v36  ;;  %v1573_v35 = vld [vmem:[%s2089_s0 + $0x1c] ss:$36 sps:$4 sm:$0xff]   ;;  %v1514_v36 = vld [vmem:[%s2088_s1 + $0x170] ss:$8 sps:$4 sm:$0xff]  }
  0x25   :  { %1051 = vmatprep.subr.bf16.mxu0 %v1426_v37  ;;  %v1517_v37 = vld [vmem:[%s2088_s1 + $0x370] ss:$8 sps:$4 sm:$0xff]  }
  0x27   :  { %966 = vmatpush1.bf16.msra.mxu1 %v1428_v38  ;;  %v1522_v38 = vld [vmem:[%s2088_s1 + $0x184] ss:$8 sps:$4 sm:$0xff]  }
  0x28   :  { %1052 = vmatpush1.bf16.msra.mxu0 %v1429_v39  ;;  %967 = vmatprep.subr.bf16.mxu1 %v1430_v40  ;;  %v1525_v39 = vld [vmem:[%s2088_s1 + $0x384] ss:$8 sps:$4 sm:$0xff]   ;;  %v1520_v40 = vld [vmem:[%s2088_s1 + $0x180] ss:$8 sps:$4 sm:$0xff]  }
  0x29   :  { %1053 = vmatprep.subr.bf16.mxu0 %v1432_v41  ;;  %v1523_v41 = vld [vmem:[%s2088_s1 + $0x380] ss:$8 sps:$4 sm:$0xff]  }
  0x2b   :  { %968 = vmatpush1.bf16.msra.mxu1 %v1434_v42  ;;  %v1528_v42 = vld [vmem:[%s2088_s1 + $0x194] ss:$8 sps:$4 sm:$0xff]  }
  0x2c   :  { %1054 = vmatpush1.bf16.msra.mxu0 %v1435_v43  ;;  %969 = vmatprep.subr.bf16.mxu1 %v1436_v44  ;;  %v1531_v43 = vld [vmem:[%s2088_s1 + $0x394] ss:$8 sps:$4 sm:$0xff]   ;;  %v1526_v44 = vld [vmem:[%s2088_s1 + $0x190] ss:$8 sps:$4 sm:$0xff]  }
  0x2d   :  { %1055 = vmatprep.subr.bf16.mxu0 %v1438_v45  ;;  %v1529_v45 = vld [vmem:[%s2088_s1 + $0x390] ss:$8 sps:$4 sm:$0xff]  }
  0x2f   :  { %970 = vmatpush1.bf16.msra.mxu1 %v1440_v46  ;;  %v1534_v46 = vld [vmem:[%s2088_s1 + $0x1a4] ss:$8 sps:$4 sm:$0xff]  }
  0x30   :  { %1056 = vmatpush1.bf16.msra.mxu0 %v1441_v47  ;;  %971 = vmatprep.subr.bf16.mxu1 %v1442_v49  ;;  %v1537_v47 = vld [vmem:[%s2088_s1 + $0x3a4] ss:$8 sps:$4 sm:$0xff]   ;;  %v1535_v49 = vld [vmem:[%s2088_s1 + $0x3a0] ss:$8 sps:$4 sm:$0xff]  }
  0x31   :  { %1057 = vmatprep.subr.bf16.mxu0 %v1444_v50  ;;  %v1540_v50 = vld [vmem:[%s2088_s1 + $0x1b4] ss:$8 sps:$4 sm:$0xff]  }
  0x33   :  { %972 = vmatpush1.bf16.msra.mxu1 %v1446_v52  ;;  %v1538_v52 = vld [vmem:[%s2088_s1 + $0x1b0] ss:$8 sps:$4 sm:$0xff]  }
  0x34   :  { %1058 = vmatpush1.bf16.msra.mxu0 %v1447_v53  ;;  %973 = vmatprep.subr.bf16.mxu1 %v1448_v54  ;;  %v1541_v53 = vld [vmem:[%s2088_s1 + $0x3b0] ss:$8 sps:$4 sm:$0xff]   ;;  %v1546_v54 = vld [vmem:[%s2088_s1 + $0x1c4] ss:$8 sps:$4 sm:$0xff]  }
  0x35   :  { %1059 = vmatprep.subr.bf16.mxu0 %v1450_v55  ;;  %v1549_v55 = vld [vmem:[%s2088_s1 + $0x3c4] ss:$8 sps:$4 sm:$0xff]  }
  0x37   :  { %974 = vmatpush1.bf16.msra.mxu1 %v1452_v56  ;;  %v1544_v56 = vld [vmem:[%s2088_s1 + $0x1c0] ss:$8 sps:$4 sm:$0xff]  }
  0x38   :  { %1060 = vmatpush1.bf16.msra.mxu0 %v1453_v57  ;;  %975 = vmatprep.subr.bf16.mxu1 %v1454_v58  ;;  %v1547_v57 = vld [vmem:[%s2088_s1 + $0x3c0] ss:$8 sps:$4 sm:$0xff]   ;;  %v1552_v58 = vld [vmem:[%s2088_s1 + $0x1d4] ss:$8 sps:$4 sm:$0xff]  }
  0x39   :  { %1061 = vmatprep.subr.bf16.mxu0 %v1456_v59  ;;  %v1555_v59 = vld [vmem:[%s2088_s1 + $0x3d4] ss:$8 sps:$4 sm:$0xff]  }
  0x3b   :  { %976 = vmatpush1.bf16.msra.mxu1 %v1458_v60  ;;  %v1550_v60 = vld [vmem:[%s2088_s1 + $0x1d0] ss:$8 sps:$4 sm:$0xff]  }
  0x3c   :  { %1062 = vmatpush1.bf16.msra.mxu0 %v1459_v61  ;;  %977 = vmatprep.subr.bf16.mxu1 %v1460_v62  ;;  %v1553_v61 = vld [vmem:[%s2088_s1 + $0x3d0] ss:$8 sps:$4 sm:$0xff]   ;;  %v1558_v62 = vld [vmem:[%s2088_s1 + $0x1e4] ss:$8 sps:$4 sm:$0xff]  }
  0x3d   :  { %1063 = vmatprep.subr.bf16.mxu0 %v1462_v63  ;;  %v1561_v63 = vld [vmem:[%s2088_s1 + $0x3e4] ss:$8 sps:$4 sm:$0xff]  }
  0x3f   :  { %978 = vmatpush1.bf16.msra.mxu1 %v1464_v0  ;;  %v1556_v0 = vld [vmem:[%s2088_s1 + $0x1e0] ss:$8 sps:$4 sm:$0xff]  }
  0x40   :  { %1064 = vmatpush1.bf16.msra.mxu0 %v1465_v1  ;;  %990 = vmatprep.subr.bf16.mxu1 %v1471_v2  ;;  %v1559_v1 = vld [vmem:[%s2088_s1 + $0x3e0] ss:$8 sps:$4 sm:$0xff]   ;;  %v1564_v2 = vld [vmem:[%s2088_s1 + $0x1f4] ss:$8 sps:$4 sm:$0xff]  }
  0x41   :  { %1076 = vmatprep.subr.bf16.mxu0 %v1477_v3  ;;  %v1567_v3 = vld [vmem:[%s2088_s1 + $0x3f4] ss:$8 sps:$4 sm:$0xff]  }
  0x42   :  { %980 = vmatmul.mubr.bf16.vlgmr.msra.gmra.mrb[0].mxu1 %v1466_v4  ;;  %v1562_v4 = vld [vmem:[%s2088_s1 + $0x1f0] ss:$8 sps:$4 sm:$0xff]  }
  0x43   :  { %1066 = vmatmul.mubr.bf16.vlgmr.msra.gmra.mrb[0].mxu0 %v1472_v6  ;;  %991 = vmatpush1.bf16.msra.mxu1 %v1469_v5  ;;  %v1565_v5 = vld [vmem:[%s2088_s1 + $0x3f0] ss:$8 sps:$4 sm:$0xff]   ;;  %v1576_v6 = vld [vmem:[%s2088_s1 + $0x404] ss:$8 sps:$4 sm:$0xff]  }
  0x44   :  { %1077 = vmatpush1.bf16.msra.mxu0 %v1475_v7  ;;  %992 = vmatprep.subr.bf16.mxu1 %v1480_v8  ;;  %v1568_v7 = vld [vmem:[%s2089_s0 + $0x8] ss:$36 sps:$4 sm:$0xff]   ;;  %v1571_v8 = vld [vmem:[%s2089_s0 + $0x18] ss:$36 sps:$4 sm:$0xff]  }
  0x45   :  { %1078 = vmatprep.subr.bf16.mxu0 %v1483_v9  ;;  %1022 = vmatprep.mubr.bf16.mxu1 %v1570_v34  ;;  %v1574_v9 = vld [vmem:[%s2088_s1 + $0x400] ss:$8 sps:$4 sm:$0xff]  }
  0x46   :  { %1108 = vmatprep.mubr.bf16.mxu0 %v1573_v35 }
  0x47   :  { %993 = vmatpush1.bf16.msra.mxu1 %v1478_v10  ;;  %v1579_v10 = vld [vmem:[%s2088_s1 + $0x414] ss:$8 sps:$4 sm:$0xff]  }
  0x48   :  { %1079 = vmatpush1.bf16.msra.mxu0 %v1481_v11  ;;  %994 = vmatprep.subr.bf16.mxu1 %v1486_v12  ;;  %v1577_v11 = vld [vmem:[%s2088_s1 + $0x410] ss:$8 sps:$4 sm:$0xff]   ;;  %v1599_v12 = vmov 0  }
  0x49   :  { %1080 = vmatprep.subr.bf16.mxu0 %v1489_v13  ;;  %v1582_v13 = vld [vmem:[%s2088_s1 + $0x424] ss:$8 sps:$4 sm:$0xff]  }
  0x4b   :  { %995 = vmatpush1.bf16.msra.mxu1 %v1484_v14  ;;  %v1580_v14 = vld [vmem:[%s2088_s1 + $0x420] ss:$8 sps:$4 sm:$0xff]  }
  0x4c   :  { %1081 = vmatpush1.bf16.msra.mxu0 %v1487_v15  ;;  %996 = vmatprep.subr.bf16.mxu1 %v1492_v16  ;;  %v1585_v15 = vld [vmem:[%s2088_s1 + $0x434] ss:$8 sps:$4 sm:$0xff]   ;;  %v1583_v16 = vld [vmem:[%s2088_s1 + $0x430] ss:$8 sps:$4 sm:$0xff]  }
  0x4d   :  { %1082 = vmatprep.subr.bf16.mxu0 %v1495_v17  ;;  %v1588_v17 = vld [vmem:[%s2088_s1 + $0x444] ss:$8 sps:$4 sm:$0xff]  }
  0x4f   :  { %997 = vmatpush1.bf16.msra.mxu1 %v1490_v18  ;;  %v1586_v18 = vld [vmem:[%s2088_s1 + $0x440] ss:$8 sps:$4 sm:$0xff]  }
  0x50   :  { %1083 = vmatpush1.bf16.msra.mxu0 %v1493_v19  ;;  %998 = vmatprep.subr.bf16.mxu1 %v1498_v20  ;;  %v1591_v19 = vld [vmem:[%s2088_s1 + $0x454] ss:$8 sps:$4 sm:$0xff]   ;;  %v1589_v20 = vld [vmem:[%s2088_s1 + $0x450] ss:$8 sps:$4 sm:$0xff]  }
  0x51   :  { %1084 = vmatprep.subr.bf16.mxu0 %v1501_v21  ;;  %v1594_v21 = vld [vmem:[%s2088_s1 + $0x464] ss:$8 sps:$4 sm:$0xff]  }
  0x53   :  { %999 = vmatpush1.bf16.msra.mxu1 %v1496_v22  ;;  %v1592_v22 = vld [vmem:[%s2088_s1 + $0x460] ss:$8 sps:$4 sm:$0xff]  }
  0x54   :  { %1085 = vmatpush1.bf16.msra.mxu0 %v1499_v23  ;;  %1000 = vmatprep.subr.bf16.mxu1 %v1504_v24  ;;  %v1597_v23 = vld [vmem:[%s2088_s1 + $0x474] ss:$8 sps:$4 sm:$0xff]   ;;  %v1595_v24 = vld [vmem:[%s2088_s1 + $0x470] ss:$8 sps:$4 sm:$0xff]  }
  0x55   :  { %1086 = vmatprep.subr.bf16.mxu0 %v1507_v25  ;;  %v1598_v25 = vld [vmem:[%s2089_s0 + $0x20] ss:$36 sps:$4 sm:$0xff]  }
  0x57   :  { %1001 = vmatpush1.bf16.msra.mxu1 %v1502_v26 }
  0x58   :  { %1087 = vmatpush1.bf16.msra.mxu0 %v1505_v27  ;;  %1002 = vmatprep.subr.bf16.mxu1 %v1510_v28 }
  0x59   :  { %1088 = vmatprep.subr.bf16.mxu0 %v1513_v29 }
  0x5b   :  { %1003 = vmatpush1.bf16.msra.mxu1 %v1508_v30  ;;  %v171_v30 = vlaneseq }
  0x5c   :  { %1089 = vmatpush1.bf16.msra.mxu0 %v1511_v31  ;;  %1004 = vmatprep.subr.bf16.mxu1 %v1516_v32 }
  0x5d   :  { %1090 = vmatprep.subr.bf16.mxu0 %v1519_v33  ;;  %v172_v31 = vshrl.u32 %v171_v30, 7  ;;  %v169_v33 = vld [vmem:[%s2090_s2] sm:$0x3] }
  0x5f   :  { %1005 = vmatpush1.bf16.msra.mxu1 %v1514_v36  ;;  %v173_v32 = vsub.s32 0, %v172_v31  ;;  %v177_v34 = vsub.s32 1, %v172_v31 }
  0x60   :  { %1091 = vmatpush1.bf16.msra.mxu0 %v1517_v37  ;;  %1006 = vmatprep.subr.bf16.mxu1 %v1522_v38 }
  0x61   :  { %1092 = vmatprep.subr.bf16.mxu0 %v1525_v39  ;;  %v174_v35 = vrot.slane %v169_v33, %v173_v32  ;;  %v178_v36 = vrot.slane %v169_v33, %v177_v34 }
  0x63   :  { %1007 = vmatpush1.bf16.msra.mxu1 %v1520_v40 }
  0x64   :  { %1093 = vmatpush1.bf16.msra.mxu0 %v1523_v41  ;;  %1008 = vmatprep.subr.bf16.mxu1 %v1528_v42 }
  0x65   :  { %1094 = vmatprep.subr.bf16.mxu0 %v1531_v43 }
  0x67   :  { %1009 = vmatpush1.bf16.msra.mxu1 %v1526_v44 }
  0x68   :  { %1095 = vmatpush1.bf16.msra.mxu0 %v1529_v45  ;;  %1010 = vmatprep.subr.bf16.mxu1 %v1534_v46 }
  0x69   :  { %1096 = vmatprep.subr.bf16.mxu0 %v1537_v47 }
  0x6b   :  { %1011 = vmatpush1.bf16.msra.mxu1 %v1532_v48 }
  0x6c   :  { %1097 = vmatpush1.bf16.msra.mxu0 %v1535_v49  ;;  %1012 = vmatprep.subr.bf16.mxu1 %v1540_v50 }
  0x6d   :  { %1098 = vmatprep.subr.bf16.mxu0 %v1543_v51 }
  0x6f   :  { %1013 = vmatpush1.bf16.msra.mxu1 %v1538_v52 }
  0x70   :  { %1099 = vmatpush1.bf16.msra.mxu0 %v1541_v53  ;;  %1014 = vmatprep.subr.bf16.mxu1 %v1546_v54 }
  0x71   :  { %1100 = vmatprep.subr.bf16.mxu0 %v1549_v55 }
  0x73   :  { %1015 = vmatpush1.bf16.msra.mxu1 %v1544_v56 }
  0x74   :  { %1101 = vmatpush1.bf16.msra.mxu0 %v1547_v57  ;;  %1016 = vmatprep.subr.bf16.mxu1 %v1552_v58 }
  0x75   :  { %1102 = vmatprep.subr.bf16.mxu0 %v1555_v59 }
  0x77   :  { %1017 = vmatpush1.bf16.msra.mxu1 %v1550_v60 }
  0x78   :  { %1103 = vmatpush1.bf16.msra.mxu0 %v1553_v61  ;;  %1018 = vmatprep.subr.bf16.mxu1 %v1558_v62 }
  0x79   :  { %1104 = vmatprep.subr.bf16.mxu0 %v1561_v63 }
  0x7b   :  { %1019 = vmatpush1.bf16.msra.mxu1 %v1556_v0 }
  0x7c   :  { %1105 = vmatpush1.bf16.msra.mxu0 %v1559_v1  ;;  %1020 = vmatprep.subr.bf16.mxu1 %v1564_v2 }
  0x7d   :  { %1106 = vmatprep.subr.bf16.mxu0 %v1567_v3 }
  0x7f   :  { %1021 = vmatpush1.bf16.msra.mxu1 %v1562_v4 }
  0x80   :  { %1107 = vmatpush1.bf16.msra.mxu0 %v1565_v5 }
  0x81   :  { %1119 = vmatprep.subr.bf16.mxu0 %v1576_v6 }
  0x82   :  { %1023 = vmatmul.mubr.bf16.vlgmr.msra.gmra.mrb[0].mxu1 %v1568_v7 }
  0x83   :  { %1109 = vmatmul.mubr.bf16.vlgmr.msra.gmra.mrb[0].mxu0 %v1571_v8 }
  0x84   :  { %1120 = vmatpush1.bf16.msra.mxu0 %v1574_v9  ;;  %1151 = vmatprep.mubr.bf16.mxu0 %v1599_v12 }
  0x85   :  { %1121 = vmatprep.subr.bf16.mxu0 %v1579_v10 }
  0x88   :  { %1122 = vmatpush1.bf16.msra.mxu0 %v1577_v11 }
  0x89   :  { %1123 = vmatprep.subr.bf16.mxu0 %v1582_v13 }
  0x8c   :  { %1124 = vmatpush1.bf16.msra.mxu0 %v1580_v14 }
  0x8d   :  { %1125 = vmatprep.subr.bf16.mxu0 %v1585_v15 }
  0x90   :  { %1126 = vmatpush1.bf16.msra.mxu0 %v1583_v16 }
  0x91   :  { %1127 = vmatprep.subr.bf16.mxu0 %v1588_v17 }
  0x94   :  { %1128 = vmatpush1.bf16.msra.mxu0 %v1586_v18 }
  0x95   :  { %1129 = vmatprep.subr.bf16.mxu0 %v1591_v19 }
  0x98   :  { %1130 = vmatpush1.bf16.msra.mxu0 %v1589_v20 }
  0x99   :  { %1131 = vmatprep.subr.bf16.mxu0 %v1594_v21 }
  0x9c   :  { %1132 = vmatpush1.bf16.msra.mxu0 %v1592_v22 }
  0x9d   :  { %1133 = vmatprep.subr.bf16.mxu0 %v1597_v23 }
  0xa0   :  { %1134 = vmatpush1.bf16.msra.mxu0 %v1595_v24 }
  0xa3   :  { %1152 = vmatmul.mubr.bf16.vlgmr.msra.gmra.mrb[0].mxu0 %v1598_v25 }
 0x155   :  { %v1024_v26 = vpop.f32.mrb[0].mxu1 }
 0x156   :  { %v1026_v27 = vpop.f32.mrb[1].mxu1  ;;  %v1349_v37 = vadd.f32 %v1024_v26, %v174_v35 }
 0x157   :  { %v1028_v28 = vpop.f32.mrb[2].mxu1  ;;  %v1351_v38 = vadd.f32 %v1026_v27, %v178_v36 }
 0x158   :  { %v1030_v29 = vpop.f32.mrb[3].mxu1  ;;  %v1353_v40 = vadd.f32 %v1028_v28, %v174_v35 }
 0x159   :  { %v1355_v43 = vadd.f32 %v1030_v29, %v178_v36 }
 0x176   :  { %v1153_v39 = vpop.f32.mrb[0].mxu0 }
 0x177   :  { %v1350_v41 = vadd.f32 %v1349_v37, %v1153_v39  ;;  %v1155_v42 = vpop.f32.mrb[1].mxu0 }
 0x178   :  { %v1352_v44 = vadd.f32 %v1351_v38, %v1155_v42  ;;  %v1157_v45 = vpop.f32.mrb[2].mxu0 }
 0x179   :  { %vm1162_vm0 = vcmp.ge.f32.partialorder %v1350_v41, 0.0  ;;  %v1166_v46 = vmul.f32 0.1, %v1350_v41  ;;  %v1354_v47 = vadd.f32 %v1353_v40, %v1157_v45  ;;  %v1159_v48 = vpop.f32.mrb[3].mxu0 }
 0x17a   :  { %vm1163_vm1 = vcmp.ge.f32.partialorder %v1352_v44, 0.0  ;;  %v1167_v49 = vmul.f32 0.1, %v1352_v44  ;;  %v1356_v50 = vadd.f32 %v1355_v43, %v1159_v48 }
 0x17b   :  { %v1170_v51 = vsel %vm1162_vm0, %v1350_v41, %v1166_v46  ;;  %vm1164_vm2 = vcmp.ge.f32.partialorder %v1354_v47, 0.0  ;;  %v1168_v52 = vmul.f32 0.1, %v1354_v47 }
 0x17c   :  { %v1171_v53 = vsel %vm1163_vm1, %v1352_v44, %v1167_v49  ;;  %vm1165_vm3 = vcmp.ge.f32.partialorder %v1356_v50, 0.0  ;;  %v1169_v54 = vmul.f32 0.1, %v1356_v50 }
 0x17d   :  { %v1347_v55 = vpack.c.bf16 %v1171_v53, %v1170_v51  ;;  %v1172_v56 = vsel %vm1164_vm2, %v1354_v47, %v1168_v52 }
 0x17e   :  { %v1173_v57 = vsel %vm1165_vm3, %v1356_v50, %v1169_v54 }
 0x17f   :  { %1186 = vst [vmem:[%s2091_s3] sm:$0xff] %v1347_v55  ;;  %v1348_v58 = vpack.c.bf16 %v1173_v57, %v1172_v56 }
 0x181   :  { %1187 = vst [vmem:[%s2091_s3 + $0x8] sm:$0xff] %v1348_v58 }

// kernel: forward.11
= control target key start
LH: loop header
LB: loop body
LE: loop exit
PB: predicated region body
PF: predicated region fallthrough
CT: control target
= control target key end

     0   :  { %s5370_s1 = inlined_call_operand.vmem [shape: bf16[4608,128], index: 1, kind: input, shape index: {}]   ;;  %s5371_s0 = inlined_call_operand.vmem [shape: bf16[16,4608], index: 0, kind: input, shape index: {}]   ;;  %s5372_s2 = inlined_call_operand.vmem [shape: f32[1,128], index: 2, kind: input, shape index: {}]   ;;  %s5373_s3 = inlined_call_operand.vmem [shape: bf16[16,128], index: 3, kind: output, shape index: {}]  }
   0x1   :  { %v4024_v0 = vld [vmem:[%s5370_s1 + $0x40] sm:$0xff]   ;;  %v4028_v4 = vld [vmem:[%s5370_s1 + $0x48] sm:$0xff]   ;;  %v4032_v8 = vld [vmem:[%s5370_s1 + $0x50] sm:$0xff]  }
   0x2   :  { %v4025_v1 = vld [vmem:[%s5370_s1 + $0xc0] sm:$0xff]   ;;  %3628 = vmatprep.subr.bf16.mxu0 %v4024_v0  ;;  %v4029_v5 = vld [vmem:[%s5370_s1 + $0xc8] sm:$0xff]   ;;  %v4033_v9 = vld [vmem:[%s5370_s1 + $0xd0] sm:$0xff]  }
   0x3   :  { %v4026_v2 = vld [vmem:[%s5370_s1] sm:$0xff]   ;;  %3650 = vmatprep.subr.bf16.mxu1 %v4025_v1  ;;  %v4030_v6 = vld [vmem:[%s5370_s1 + $0x8] sm:$0xff]   ;;  %v4034_v10 = vld [vmem:[%s5370_s1 + $0x10] sm:$0xff]  }
   0x4   :  { %v4027_v3 = vld [vmem:[%s5370_s1 + $0x80] sm:$0xff]   ;;  %3629 = vmatpush3.bf16.msra.mxu0 %v4026_v2  ;;  %v4031_v7 = vld [vmem:[%s5370_s1 + $0x88] sm:$0xff]   ;;  %v4035_v11 = vld [vmem:[%s5370_s1 + $0x90] sm:$0xff]  }
   0x5   :  { %3651 = vmatpush3.bf16.msra.mxu1 %v4027_v3  ;;  %3630 = vmatprep.subr.bf16.mxu0 %v4028_v4  ;;  %v4036_v12 = vld [vmem:[%s5370_s1 + $0x58] sm:$0xff]   ;;  %v4040_v16 = vld [vmem:[%s5370_s1 + $0x60] sm:$0xff]   ;;  %v4044_v20 = vld [vmem:[%s5370_s1 + $0x68] sm:$0xff]  }
   0x6   :  { %3652 = vmatprep.subr.bf16.mxu1 %v4029_v5  ;;  %v4037_v13 = vld [vmem:[%s5370_s1 + $0xd8] sm:$0xff]   ;;  %v4041_v17 = vld [vmem:[%s5370_s1 + $0xe0] sm:$0xff]   ;;  %v4045_v21 = vld [vmem:[%s5370_s1 + $0xe8] sm:$0xff]  }
   0x7   :  { %v4038_v14 = vld [vmem:[%s5370_s1 + $0x18] sm:$0xff]   ;;  %v4042_v18 = vld [vmem:[%s5370_s1 + $0x20] sm:$0xff]   ;;  %v4046_v22 = vld [vmem:[%s5370_s1 + $0x28] sm:$0xff]  }
   0x8   :  { %3631 = vmatpush3.bf16.msra.mxu0 %v4030_v6  ;;  %v4039_v15 = vld [vmem:[%s5370_s1 + $0x98] sm:$0xff]   ;;  %v4043_v19 = vld [vmem:[%s5370_s1 + $0xa0] sm:$0xff]   ;;  %v4047_v23 = vld [vmem:[%s5370_s1 + $0xa8] sm:$0xff]  }
   0x9   :  { %3653 = vmatpush3.bf16.msra.mxu1 %v4031_v7  ;;  %3632 = vmatprep.subr.bf16.mxu0 %v4032_v8  ;;  %v4048_v24 = vld [vmem:[%s5370_s1 + $0x70] sm:$0xff]   ;;  %v4052_v28 = vld [vmem:[%s5370_s1 + $0x78] sm:$0xff]   ;;  %v4062_v36 = vld [vmem:[%s5370_s1 + $0x140] sm:$0xff]  }
   0xa   :  { %3654 = vmatprep.subr.bf16.mxu1 %v4033_v9  ;;  %v4049_v25 = vld [vmem:[%s5370_s1 + $0xf0] sm:$0xff]   ;;  %v4053_v29 = vld [vmem:[%s5370_s1 + $0xf8] sm:$0xff]   ;;  %v4063_v37 = vld [vmem:[%s5370_s1 + $0x1c0] sm:$0xff]  }
   0xb   :  { %v4050_v26 = vld [vmem:[%s5370_s1 + $0x30] sm:$0xff]   ;;  %v4054_v30 = vld [vmem:[%s5370_s1 + $0x38] sm:$0xff]   ;;  %v4064_v38 = vld [vmem:[%s5370_s1 + $0x100] sm:$0xff]  }
   0xc   :  { %3633 = vmatpush3.bf16.msra.mxu0 %v4034_v10  ;;  %v4051_v27 = vld [vmem:[%s5370_s1 + $0xb0] sm:$0xff]   ;;  %v4055_v31 = vld [vmem:[%s5370_s1 + $0xb8] sm:$0xff]   ;;  %v4065_v39 = vld [vmem:[%s5370_s1 + $0x180] sm:$0xff]  }
   0xd   :  { %3655 = vmatpush3.bf16.msra.mxu1 %v4035_v11  ;;  %3634 = vmatprep.subr.bf16.mxu0 %v4036_v12  ;;  %v4056_v32 = vld [vmem:[%s5371_s0] ss:$144 sps:$4 sm:$0xff]   ;;  %v4058_v33 = vld [vmem:[%s5371_s0 + $0x4] ss:$144 sps:$4 sm:$0xff]   ;;  %v4059_v34 = vld [vmem:[%s5371_s0 + $0x8] ss:$144 sps:$4 sm:$0xff]  }
   0xe   :  { %3656 = vmatprep.subr.bf16.mxu1 %v4037_v13  ;;  %v4061_v35 = vld [vmem:[%s5371_s0 + $0xc] ss:$144 sps:$4 sm:$0xff]   ;;  %2574 = vmatprep.mubr.bf16.mxu0 %v4058_v33  ;;  %v4070_v44 = vld [vmem:[%s5370_s1 + $0x150] sm:$0xff]   ;;  %v4078_v52 = vld [vmem:[%s5370_s1 + $0x160] sm:$0xff]  }
   0xf   :  { %2615 = vmatprep.mubr.bf16.mxu1 %v4061_v35  ;;  %v4066_v40 = vld [vmem:[%s5370_s1 + $0x148] sm:$0xff]   ;;  %v4071_v45 = vld [vmem:[%s5370_s1 + $0x1d0] sm:$0xff]   ;;  %v4074_v48 = vld [vmem:[%s5370_s1 + $0x158] sm:$0xff]  }
  0x10   :  { %3635 = vmatpush3.bf16.msra.mxu0 %v4038_v14  ;;  %v4067_v41 = vld [vmem:[%s5370_s1 + $0x1c8] sm:$0xff]   ;;  %v4072_v46 = vld [vmem:[%s5370_s1 + $0x110] sm:$0xff]   ;;  %v4075_v49 = vld [vmem:[%s5370_s1 + $0x1d8] sm:$0xff]  }
  0x11   :  { %3657 = vmatpush3.bf16.msra.mxu1 %v4039_v15  ;;  %3636 = vmatprep.subr.bf16.mxu0 %v4040_v16  ;;  %v4068_v42 = vld [vmem:[%s5370_s1 + $0x108] sm:$0xff]   ;;  %v4073_v47 = vld [vmem:[%s5370_s1 + $0x190] sm:$0xff]   ;;  %v4076_v50 = vld [vmem:[%s5370_s1 + $0x118] sm:$0xff]  }
  0x12   :  { %3658 = vmatprep.subr.bf16.mxu1 %v4041_v17  ;;  %v4069_v43 = vld [vmem:[%s5370_s1 + $0x188] sm:$0xff]   ;;  %v4077_v51 = vld [vmem:[%s5370_s1 + $0x198] sm:$0xff]   ;;  %v4079_v53 = vld [vmem:[%s5370_s1 + $0x1e0] sm:$0xff]  }
  0x13   :  { %v4080_v54 = vld [vmem:[%s5370_s1 + $0x120] sm:$0xff]   ;;  %v4082_v56 = vld [vmem:[%s5370_s1 + $0x168] sm:$0xff]   ;;  %v4086_v60 = vld [vmem:[%s5370_s1 + $0x170] sm:$0xff]  }
  0x14   :  { %3637 = vmatpush3.bf16.msra.mxu0 %v4042_v18  ;;  %v4081_v55 = vld [vmem:[%s5370_s1 + $0x1a0] sm:$0xff]   ;;  %v4083_v57 = vld [vmem:[%s5370_s1 + $0x1e8] sm:$0xff]   ;;  %v4087_v61 = vld [vmem:[%s5370_s1 + $0x1f0] sm:$0xff]  }
  0x15   :  { %3659 = vmatpush3.bf16.msra.mxu1 %v4043_v19  ;;  %3638 = vmatprep.subr.bf16.mxu0 %v4044_v20  ;;  %v4084_v58 = vld [vmem:[%s5370_s1 + $0x128] sm:$0xff]   ;;  %v4088_v62 = vld [vmem:[%s5370_s1 + $0x130] sm:$0xff]   ;;  %v4090_v0 = vld [vmem:[%s5370_s1 + $0x178] sm:$0xff]  }
  0x16   :  { %3660 = vmatprep.subr.bf16.mxu1 %v4045_v21  ;;  %v4085_v59 = vld [vmem:[%s5370_s1 + $0x1a8] sm:$0xff]   ;;  %v4089_v63 = vld [vmem:[%s5370_s1 + $0x1b0] sm:$0xff]   ;;  %v4091_v1 = vld [vmem:[%s5370_s1 + $0x1f8] sm:$0xff]  }
  0x17   :  { %v4092_v2 = vld [vmem:[%s5370_s1 + $0x138] sm:$0xff]   ;;  %v4094_v4 = vld [vmem:[%s5371_s0 + $0x10] ss:$144 sps:$4 sm:$0xff]   ;;  %v4096_v5 = vld [vmem:[%s5371_s0 + $0x14] ss:$144 sps:$4 sm:$0xff]  }
  0x18   :  { %3639 = vmatpush3.bf16.msra.mxu0 %v4046_v22  ;;  %v4093_v3 = vld [vmem:[%s5370_s1 + $0x1b8] sm:$0xff]   ;;  %v4100_v8 = vld [vmem:[%s5370_s1 + $0x240] sm:$0xff]   ;;  %v4104_v12 = vld [vmem:[%s5370_s1 + $0x248] sm:$0xff]  }
  0x19   :  { %3661 = vmatpush3.bf16.msra.mxu1 %v4047_v23  ;;  %3640 = vmatprep.subr.bf16.mxu0 %v4048_v24  ;;  %v4097_v6 = vld [vmem:[%s5371_s0 + $0x18] ss:$144 sps:$4 sm:$0xff]   ;;  %v4099_v7 = vld [vmem:[%s5371_s0 + $0x1c] ss:$144 sps:$4 sm:$0xff]   ;;  %v4101_v9 = vld [vmem:[%s5370_s1 + $0x2c0] sm:$0xff]  }
  0x1a   :  { %3662 = vmatprep.subr.bf16.mxu1 %v4049_v25  ;;  %v4102_v10 = vld [vmem:[%s5370_s1 + $0x200] sm:$0xff]   ;;  %v4105_v13 = vld [vmem:[%s5370_s1 + $0x2c8] sm:$0xff]   ;;  %v4108_v16 = vld [vmem:[%s5370_s1 + $0x250] sm:$0xff]  }
  0x1b   :  { %v4103_v11 = vld [vmem:[%s5370_s1 + $0x280] sm:$0xff]   ;;  %v4106_v14 = vld [vmem:[%s5370_s1 + $0x208] sm:$0xff]   ;;  %v4109_v17 = vld [vmem:[%s5370_s1 + $0x2d0] sm:$0xff]  }
  0x1c   :  { %3641 = vmatpush3.bf16.msra.mxu0 %v4050_v26  ;;  %v4107_v15 = vld [vmem:[%s5370_s1 + $0x288] sm:$0xff]   ;;  %v4110_v18 = vld [vmem:[%s5370_s1 + $0x210] sm:$0xff]   ;;  %v4112_v20 = vld [vmem:[%s5370_s1 + $0x258] sm:$0xff]  }
  0x1d   :  { %3663 = vmatpush3.bf16.msra.mxu1 %v4051_v27  ;;  %3642 = vmatprep.subr.bf16.mxu0 %v4052_v28  ;;  %v4111_v19 = vld [vmem:[%s5370_s1 + $0x290] sm:$0xff]   ;;  %v4113_v21 = vld [vmem:[%s5370_s1 + $0x2d8] sm:$0xff]   ;;  %v4116_v24 = vld [vmem:[%s5370_s1 + $0x260] sm:$0xff]  }
  0x1e   :  { %3664 = vmatprep.subr.bf16.mxu1 %v4053_v29  ;;  %v4114_v22 = vld [vmem:[%s5370_s1 + $0x218] sm:$0xff]   ;;  %v4117_v25 = vld [vmem:[%s5370_s1 + $0x2e0] sm:$0xff]   ;;  %v4120_v28 = vld [vmem:[%s5370_s1 + $0x268] sm:$0xff]  }
  0x1f   :  { %v4115_v23 = vld [vmem:[%s5370_s1 + $0x298] sm:$0xff]   ;;  %v4118_v26 = vld [vmem:[%s5370_s1 + $0x220] sm:$0xff]   ;;  %v4121_v29 = vld [vmem:[%s5370_s1 + $0x2e8] sm:$0xff]  }
  0x20   :  { %3643 = vmatpush3.bf16.msra.mxu0 %v4054_v30  ;;  %v4119_v27 = vld [vmem:[%s5370_s1 + $0x2a0] sm:$0xff]   ;;  %v4122_v30 = vld [vmem:[%s5370_s1 + $0x228] sm:$0xff]   ;;  %v4125_v33 = vld [vmem:[%s5370_s1 + $0x2f0] sm:$0xff]  }
  0x21   :  { %3665 = vmatpush3.bf16.msra.mxu1 %v4055_v31  ;;  %3672 = vmatprep.subr.bf16.mxu0 %v4062_v36  ;;  %v4123_v31 = vld [vmem:[%s5370_s1 + $0x2a8] sm:$0xff]   ;;  %v4127_v35 = vld [vmem:[%s5370_s1 + $0x2b0] sm:$0xff]   ;;  %v4128_v36 = vld [vmem:[%s5370_s1 + $0x278] sm:$0xff]  }
  0x22   :  { %3694 = vmatprep.subr.bf16.mxu1 %v4063_v37  ;;  %v4129_v37 = vld [vmem:[%s5370_s1 + $0x2f8] sm:$0xff]  }
  0x23   :  { %2575 = vmatmul.mubr.bf16.vlgmr.msra.gmra.mrb[0].mxu0 %v4056_v32  ;;  %v4124_v32 = vld [vmem:[%s5370_s1 + $0x270] sm:$0xff]  }
  0x24   :  { %2616 = vmatmul.mubr.bf16.vlgmr.msra.gmra.mrb[0].mxu1 %v4059_v34  ;;  %3673 = vmatpush3.bf16.msra.mxu0 %v4064_v38  ;;  %v4126_v34 = vld [vmem:[%s5370_s1 + $0x230] sm:$0xff]   ;;  %v4130_v38 = vld [vmem:[%s5370_s1 + $0x238] sm:$0xff]  }
  0x25   :  { %3695 = vmatpush3.bf16.msra.mxu1 %v4065_v39  ;;  %3674 = vmatprep.subr.bf16.mxu0 %v4066_v40  ;;  %v4131_v39 = vld [vmem:[%s5370_s1 + $0x2b8] sm:$0xff]   ;;  %v4132_v40 = vld [vmem:[%s5371_s0 + $0x20] ss:$144 sps:$4 sm:$0xff]  }
  0x26   :  { %3696 = vmatprep.subr.bf16.mxu1 %v4067_v41  ;;  %2656 = vmatprep.mubr.bf16.mxu0 %v4096_v5  ;;  %v4134_v41 = vld [vmem:[%s5371_s0 + $0x24] ss:$144 sps:$4 sm:$0xff]  }
  0x27   :  { %2697 = vmatprep.mubr.bf16.mxu1 %v4099_v7  ;;  %v4163_v5 = vld [vmem:[%s5370_s1 + $0x3f0] sm:$0xff]  }
  0x28   :  { %3675 = vmatpush3.bf16.msra.mxu0 %v4068_v42  ;;  %v4135_v42 = vld [vmem:[%s5371_s0 + $0x28] ss:$144 sps:$4 sm:$0xff]   ;;  %v4165_v7 = vld [vmem:[%s5370_s1 + $0x3b0] sm:$0xff]  }
  0x29   :  { %3697 = vmatpush3.bf16.msra.mxu1 %v4069_v43  ;;  %3676 = vmatprep.subr.bf16.mxu0 %v4070_v44  ;;  %v4137_v43 = vld [vmem:[%s5371_s0 + $0x2c] ss:$144 sps:$4 sm:$0xff]   ;;  %v4138_v44 = vld [vmem:[%s5370_s1 + $0x340] sm:$0xff]  }
  0x2a   :  { %3698 = vmatprep.subr.bf16.mxu1 %v4071_v45  ;;  %v4139_v45 = vld [vmem:[%s5370_s1 + $0x3c0] sm:$0xff]  }
  0x2c   :  { %3677 = vmatpush3.bf16.msra.mxu0 %v4072_v46  ;;  %v4140_v46 = vld [vmem:[%s5370_s1 + $0x300] sm:$0xff]  }
  0x2d   :  { %3699 = vmatpush3.bf16.msra.mxu1 %v4073_v47  ;;  %3678 = vmatprep.subr.bf16.mxu0 %v4074_v48  ;;  %v4141_v47 = vld [vmem:[%s5370_s1 + $0x380] sm:$0xff]   ;;  %v4142_v48 = vld [vmem:[%s5370_s1 + $0x348] sm:$0xff]  }
  0x2e   :  { %3700 = vmatprep.subr.bf16.mxu1 %v4075_v49  ;;  %v4143_v49 = vld [vmem:[%s5370_s1 + $0x3c8] sm:$0xff]  }
  0x30   :  { %3679 = vmatpush3.bf16.msra.mxu0 %v4076_v50  ;;  %v4144_v50 = vld [vmem:[%s5370_s1 + $0x308] sm:$0xff]  }
  0x31   :  { %3701 = vmatpush3.bf16.msra.mxu1 %v4077_v51  ;;  %3680 = vmatprep.subr.bf16.mxu0 %v4078_v52  ;;  %v4145_v51 = vld [vmem:[%s5370_s1 + $0x388] sm:$0xff]   ;;  %v4146_v52 = vld [vmem:[%s5370_s1 + $0x350] sm:$0xff]  }
  0x32   :  { %3702 = vmatprep.subr.bf16.mxu1 %v4079_v53  ;;  %v4147_v53 = vld [vmem:[%s5370_s1 + $0x3d0] sm:$0xff]  }
  0x34   :  { %3681 = vmatpush3.bf16.msra.mxu0 %v4080_v54  ;;  %v4148_v54 = vld [vmem:[%s5370_s1 + $0x310] sm:$0xff]  }
  0x35   :  { %3703 = vmatpush3.bf16.msra.mxu1 %v4081_v55  ;;  %3682 = vmatprep.subr.bf16.mxu0 %v4082_v56  ;;  %v4149_v55 = vld [vmem:[%s5370_s1 + $0x390] sm:$0xff]   ;;  %v4150_v56 = vld [vmem:[%s5370_s1 + $0x358] sm:$0xff]  }
  0x36   :  { %3704 = vmatprep.subr.bf16.mxu1 %v4083_v57  ;;  %v4151_v57 = vld [vmem:[%s5370_s1 + $0x3d8] sm:$0xff]  }
  0x38   :  { %3683 = vmatpush3.bf16.msra.mxu0 %v4084_v58  ;;  %v4152_v58 = vld [vmem:[%s5370_s1 + $0x318] sm:$0xff]  }
  0x39   :  { %3705 = vmatpush3.bf16.msra.mxu1 %v4085_v59  ;;  %3684 = vmatprep.subr.bf16.mxu0 %v4086_v60  ;;  %v4153_v59 = vld [vmem:[%s5370_s1 + $0x398] sm:$0xff]   ;;  %v4154_v60 = vld [vmem:[%s5370_s1 + $0x360] sm:$0xff]  }
  0x3a   :  { %3706 = vmatprep.subr.bf16.mxu1 %v4087_v61  ;;  %v4155_v61 = vld [vmem:[%s5370_s1 + $0x3e0] sm:$0xff]  }
  0x3c   :  { %3685 = vmatpush3.bf16.msra.mxu0 %v4088_v62  ;;  %v4156_v62 = vld [vmem:[%s5370_s1 + $0x320] sm:$0xff]  }
  0x3d   :  { %3707 = vmatpush3.bf16.msra.mxu1 %v4089_v63  ;;  %3686 = vmatprep.subr.bf16.mxu0 %v4090_v0  ;;  %v4157_v63 = vld [vmem:[%s5370_s1 + $0x3a0] sm:$0xff]   ;;  %v4158_v0 = vld [vmem:[%s5370_s1 + $0x368] sm:$0xff]  }
  0x3e   :  { %3708 = vmatprep.subr.bf16.mxu1 %v4091_v1  ;;  %v4159_v1 = vld [vmem:[%s5370_s1 + $0x3e8] sm:$0xff]  }
  0x40   :  { %3687 = vmatpush3.bf16.msra.mxu0 %v4092_v2  ;;  %v4160_v2 = vld [vmem:[%s5370_s1 + $0x328] sm:$0xff]  }
  0x41   :  { %3709 = vmatpush3.bf16.msra.mxu1 %v4093_v3  ;;  %3716 = vmatprep.subr.bf16.mxu0 %v4100_v8  ;;  %v4161_v3 = vld [vmem:[%s5370_s1 + $0x3a8] sm:$0xff]   ;;  %v4166_v8 = vld [vmem:[%s5370_s1 + $0x378] sm:$0xff]  }
  0x42   :  { %3738 = vmatprep.subr.bf16.mxu1 %v4101_v9  ;;  %v4167_v9 = vld [vmem:[%s5370_s1 + $0x3f8] sm:$0xff]  }
  0x43   :  { %2657 = vmatmul.mubr.bf16.vlgmr.msra.gmra.mrb[4].mxu0 %v4094_v4  ;;  %v4162_v4 = vld [vmem:[%s5370_s1 + $0x370] sm:$0xff]  }
  0x44   :  { %2698 = vmatmul.mubr.bf16.vlgmr.msra.gmra.mrb[4].mxu1 %v4097_v6  ;;  %3717 = vmatpush3.bf16.msra.mxu0 %v4102_v10  ;;  %v4164_v6 = vld [vmem:[%s5370_s1 + $0x330] sm:$0xff]   ;;  %v4168_v10 = vld [vmem:[%s5370_s1 + $0x338] sm:$0xff]  }
  0x45   :  { %3739 = vmatpush3.bf16.msra.mxu1 %v4103_v11  ;;  %3718 = vmatprep.subr.bf16.mxu0 %v4104_v12  ;;  %v4169_v11 = vld [vmem:[%s5370_s1 + $0x3b8] sm:$0xff]   ;;  %v4170_v12 = vld [vmem:[%s5371_s0 + $0x30] ss:$144 sps:$4 sm:$0xff]  }
  0x46   :  { %3740 = vmatprep.subr.bf16.mxu1 %v4105_v13  ;;  %2738 = vmatprep.mubr.bf16.mxu0 %v4134_v41  ;;  %v4172_v13 = vld [vmem:[%s5371_s0 + $0x34] ss:$144 sps:$4 sm:$0xff]  }
  0x47   :  { %2779 = vmatprep.mubr.bf16.mxu1 %v4137_v43  ;;  %v4201_v41 = vld [vmem:[%s5370_s1 + $0x4f0] sm:$0xff]  }
  0x48   :  { %3719 = vmatpush3.bf16.msra.mxu0 %v4106_v14  ;;  %v4173_v14 = vld [vmem:[%s5371_s0 + $0x38] ss:$144 sps:$4 sm:$0xff]   ;;  %v4203_v43 = vld [vmem:[%s5370_s1 + $0x4b0] sm:$0xff]  }
  0x49   :  { %3741 = vmatpush3.bf16.msra.mxu1 %v4107_v15  ;;  %3720 = vmatprep.subr.bf16.mxu0 %v4108_v16  ;;  %v4175_v15 = vld [vmem:[%s5371_s0 + $0x3c] ss:$144 sps:$4 sm:$0xff]   ;;  %v4176_v16 = vld [vmem:[%s5370_s1 + $0x440] sm:$0xff]  }
  0x4a   :  { %3742 = vmatprep.subr.bf16.mxu1 %v4109_v17  ;;  %v4177_v17 = vld [vmem:[%s5370_s1 + $0x4c0] sm:$0xff]  }
  0x4c   :  { %3721 = vmatpush3.bf16.msra.mxu0 %v4110_v18  ;;  %v4178_v18 = vld [vmem:[%s5370_s1 + $0x400] sm:$0xff]  }
  0x4d   :  { %3743 = vmatpush3.bf16.msra.mxu1 %v4111_v19  ;;  %3722 = vmatprep.subr.bf16.mxu0 %v4112_v20  ;;  %v4179_v19 = vld [vmem:[%s5370_s1 + $0x480] sm:$0xff]   ;;  %v4180_v20 = vld [vmem:[%s5370_s1 + $0x448] sm:$0xff]  }
  0x4e   :  { %3744 = vmatprep.subr.bf16.mxu1 %v4113_v21  ;;  %v4181_v21 = vld [vmem:[%s5370_s1 + $0x4c8] sm:$0xff]  }
  0x50   :  { %3723 = vmatpush3.bf16.msra.mxu0 %v4114_v22  ;;  %v4182_v22 = vld [vmem:[%s5370_s1 + $0x408] sm:$0xff]  }
  0x51   :  { %3745 = vmatpush3.bf16.msra.mxu1 %v4115_v23  ;;  %3724 = vmatprep.subr.bf16.mxu0 %v4116_v24  ;;  %v4183_v23 = vld [vmem:[%s5370_s1 + $0x488] sm:$0xff]   ;;  %v4184_v24 = vld [vmem:[%s5370_s1 + $0x450] sm:$0xff]  }
  0x52   :  { %3746 = vmatprep.subr.bf16.mxu1 %v4117_v25  ;;  %v4185_v25 = vld [vmem:[%s5370_s1 + $0x4d0] sm:$0xff]  }
  0x54   :  { %3725 = vmatpush3.bf16.msra.mxu0 %v4118_v26  ;;  %v4186_v26 = vld [vmem:[%s5370_s1 + $0x410] sm:$0xff]  }
  0x55   :  { %3747 = vmatpush3.bf16.msra.mxu1 %v4119_v27  ;;  %3726 = vmatprep.subr.bf16.mxu0 %v4120_v28  ;;  %v4187_v27 = vld [vmem:[%s5370_s1 + $0x490] sm:$0xff]   ;;  %v4188_v28 = vld [vmem:[%s5370_s1 + $0x458] sm:$0xff]  }
  0x56   :  { %3748 = vmatprep.subr.bf16.mxu1 %v4121_v29  ;;  %v4189_v29 = vld [vmem:[%s5370_s1 + $0x4d8] sm:$0xff]  }
  0x58   :  { %3727 = vmatpush3.bf16.msra.mxu0 %v4122_v30  ;;  %v4190_v30 = vld [vmem:[%s5370_s1 + $0x418] sm:$0xff]  }
  0x59   :  { %3749 = vmatpush3.bf16.msra.mxu1 %v4123_v31  ;;  %3728 = vmatprep.subr.bf16.mxu0 %v4124_v32  ;;  %v4191_v31 = vld [vmem:[%s5370_s1 + $0x498] sm:$0xff]   ;;  %v4192_v32 = vld [vmem:[%s5370_s1 + $0x460] sm:$0xff]  }
  0x5a   :  { %3750 = vmatprep.subr.bf16.mxu1 %v4125_v33  ;;  %v4193_v33 = vld [vmem:[%s5370_s1 + $0x4e0] sm:$0xff]  }
  0x5c   :  { %3729 = vmatpush3.bf16.msra.mxu0 %v4126_v34  ;;  %v4194_v34 = vld [vmem:[%s5370_s1 + $0x420] sm:$0xff]  }
  0x5d   :  { %3751 = vmatpush3.bf16.msra.mxu1 %v4127_v35  ;;  %3730 = vmatprep.subr.bf16.mxu0 %v4128_v36  ;;  %v4195_v35 = vld [vmem:[%s5370_s1 + $0x4a0] sm:$0xff]   ;;  %v4196_v36 = vld [vmem:[%s5370_s1 + $0x468] sm:$0xff]  }
  0x5e   :  { %3752 = vmatprep.subr.bf16.mxu1 %v4129_v37  ;;  %v4197_v37 = vld [vmem:[%s5370_s1 + $0x4e8] sm:$0xff]  }
  0x60   :  { %3731 = vmatpush3.bf16.msra.mxu0 %v4130_v38  ;;  %v4198_v38 = vld [vmem:[%s5370_s1 + $0x428] sm:$0xff]  }
  0x61   :  { %3753 = vmatpush3.bf16.msra.mxu1 %v4131_v39  ;;  %3760 = vmatprep.subr.bf16.mxu0 %v4138_v44  ;;  %v4199_v39 = vld [vmem:[%s5370_s1 + $0x4a8] sm:$0xff]   ;;  %v4204_v44 = vld [vmem:[%s5370_s1 + $0x478] sm:$0xff]  }
  0x62   :  { %3782 = vmatprep.subr.bf16.mxu1 %v4139_v45  ;;  %v4205_v45 = vld [vmem:[%s5370_s1 + $0x4f8] sm:$0xff]  }
  0x63   :  { %2739 = vmatmul.mubr.bf16.vlgmr.msra.gmra.mrb[8].mxu0 %v4132_v40  ;;  %v4200_v40 = vld [vmem:[%s5370_s1 + $0x470] sm:$0xff]  }
  0x64   :  { %2780 = vmatmul.mubr.bf16.vlgmr.msra.gmra.mrb[8].mxu1 %v4135_v42  ;;  %3761 = vmatpush3.bf16.msra.mxu0 %v4140_v46  ;;  %v4202_v42 = vld [vmem:[%s5370_s1 + $0x430] sm:$0xff]   ;;  %v4206_v46 = vld [vmem:[%s5370_s1 + $0x438] sm:$0xff]  }
  0x65   :  { %3783 = vmatpush3.bf16.msra.mxu1 %v4141_v47  ;;  %3762 = vmatprep.subr.bf16.mxu0 %v4142_v48  ;;  %v4207_v47 = vld [vmem:[%s5370_s1 + $0x4b8] sm:$0xff]   ;;  %v4208_v48 = vld [vmem:[%s5371_s0 + $0x40] ss:$144 sps:$4 sm:$0xff]  }
  0x66   :  { %3784 = vmatprep.subr.bf16.mxu1 %v4143_v49  ;;  %2820 = vmatprep.mubr.bf16.mxu0 %v4172_v13  ;;  %v4210_v49 = vld [vmem:[%s5371_s0 + $0x44] ss:$144 sps:$4 sm:$0xff]  }
  0x67   :  { %2861 = vmatprep.mubr.bf16.mxu1 %v4175_v15  ;;  %v4239_v13 = vld [vmem:[%s5370_s1 + $0x5f0] sm:$0xff]  }
  0x68   :  { %3763 = vmatpush3.bf16.msra.mxu0 %v4144_v50  ;;  %v4211_v50 = vld [vmem:[%s5371_s0 + $0x48] ss:$144 sps:$4 sm:$0xff]   ;;  %v4241_v15 = vld [vmem:[%s5370_s1 + $0x5b0] sm:$0xff]  }
  0x69   :  { %3785 = vmatpush3.bf16.msra.mxu1 %v4145_v51  ;;  %3764 = vmatprep.subr.bf16.mxu0 %v4146_v52  ;;  %v4213_v51 = vld [vmem:[%s5371_s0 + $0x4c] ss:$144 sps:$4 sm:$0xff]   ;;  %v4214_v52 = vld [vmem:[%s5370_s1 + $0x540] sm:$0xff]  }
  0x6a   :  { %3786 = vmatprep.subr.bf16.mxu1 %v4147_v53  ;;  %v4215_v53 = vld [vmem:[%s5370_s1 + $0x5c0] sm:$0xff]  }
  0x6c   :  { %3765 = vmatpush3.bf16.msra.mxu0 %v4148_v54  ;;  %v4216_v54 = vld [vmem:[%s5370_s1 + $0x500] sm:$0xff]  }
  0x6d   :  { %3787 = vmatpush3.bf16.msra.mxu1 %v4149_v55  ;;  %3766 = vmatprep.subr.bf16.mxu0 %v4150_v56  ;;  %v4217_v55 = vld [vmem:[%s5370_s1 + $0x580] sm:$0xff]   ;;  %v4218_v56 = vld [vmem:[%s5370_s1 + $0x548] sm:$0xff]  }
  0x6e   :  { %3788 = vmatprep.subr.bf16.mxu1 %v4151_v57  ;;  %v4219_v57 = vld [vmem:[%s5370_s1 + $0x5c8] sm:$0xff]  }
  0x70   :  { %3767 = vmatpush3.bf16.msra.mxu0 %v4152_v58  ;;  %v4220_v58 = vld [vmem:[%s5370_s1 + $0x508] sm:$0xff]  }
  0x71   :  { %3789 = vmatpush3.bf16.msra.mxu1 %v4153_v59  ;;  %3768 = vmatprep.subr.bf16.mxu0 %v4154_v60  ;;  %v4221_v59 = vld [vmem:[%s5370_s1 + $0x588] sm:$0xff]   ;;  %v4222_v60 = vld [vmem:[%s5370_s1 + $0x550] sm:$0xff]  }
  0x72   :  { %3790 = vmatprep.subr.bf16.mxu1 %v4155_v61  ;;  %v4223_v61 = vld [vmem:[%s5370_s1 + $0x5d0] sm:$0xff]  }
  0x74   :  { %3769 = vmatpush3.bf16.msra.mxu0 %v4156_v62  ;;  %v4224_v62 = vld [vmem:[%s5370_s1 + $0x510] sm:$0xff]  }
  0x75   :  { %3791 = vmatpush3.bf16.msra.mxu1 %v4157_v63  ;;  %3770 = vmatprep.subr.bf16.mxu0 %v4158_v0  ;;  %v4225_v63 = vld [vmem:[%s5370_s1 + $0x590] sm:$0xff]   ;;  %v4226_v0 = vld [vmem:[%s5370_s1 + $0x558] sm:$0xff]  }
  0x76   :  { %3792 = vmatprep.subr.bf16.mxu1 %v4159_v1  ;;  %v4227_v1 = vld [vmem:[%s5370_s1 + $0x5d8] sm:$0xff]  }
  0x78   :  { %3771 = vmatpush3.bf16.msra.mxu0 %v4160_v2  ;;  %v4228_v2 = vld [vmem:[%s5370_s1 + $0x518] sm:$0xff]  }
  0x79   :  { %3793 = vmatpush3.bf16.msra.mxu1 %v4161_v3  ;;  %3772 = vmatprep.subr.bf16.mxu0 %v4162_v4  ;;  %v4229_v3 = vld [vmem:[%s5370_s1 + $0x598] sm:$0xff]   ;;  %v4230_v4 = vld [vmem:[%s5370_s1 + $0x560] sm:$0xff]  }
  0x7a   :  { %3794 = vmatprep.subr.bf16.mxu1 %v4163_v5  ;;  %v4231_v5 = vld [vmem:[%s5370_s1 + $0x5e0] sm:$0xff]  }
  0x7c   :  { %3773 = vmatpush3.bf16.msra.mxu0 %v4164_v6  ;;  %v4232_v6 = vld [vmem:[%s5370_s1 + $0x520] sm:$0xff]  }
  0x7d   :  { %3795 = vmatpush3.bf16.msra.mxu1 %v4165_v7  ;;  %3774 = vmatprep.subr.bf16.mxu0 %v4166_v8  ;;  %v4233_v7 = vld [vmem:[%s5370_s1 + $0x5a0] sm:$0xff]   ;;  %v4234_v8 = vld [vmem:[%s5370_s1 + $0x568] sm:$0xff]  }
  0x7e   :  { %3796 = vmatprep.subr.bf16.mxu1 %v4167_v9  ;;  %v4235_v9 = vld [vmem:[%s5370_s1 + $0x5e8] sm:$0xff]  }
  0x80   :  { %3775 = vmatpush3.bf16.msra.mxu0 %v4168_v10  ;;  %v4236_v10 = vld [vmem:[%s5370_s1 + $0x528] sm:$0xff]  }
  0x81   :  { %3797 = vmatpush3.bf16.msra.mxu1 %v4169_v11  ;;  %3804 = vmatprep.subr.bf16.mxu0 %v4176_v16  ;;  %v4237_v11 = vld [vmem:[%s5370_s1 + $0x5a8] sm:$0xff]   ;;  %v4242_v16 = vld [vmem:[%s5370_s1 + $0x578] sm:$0xff]  }
  0x82   :  { %3826 = vmatprep.subr.bf16.mxu1 %v4177_v17  ;;  %v4243_v17 = vld [vmem:[%s5370_s1 + $0x5f8] sm:$0xff]  }
  0x83   :  { %2821 = vmatmul.mubr.bf16.vlgmr.msra.gmra.mrb[12].mxu0 %v4170_v12  ;;  %v4238_v12 = vld [vmem:[%s5370_s1 + $0x570] sm:$0xff]  }
  0x84   :  { %2862 = vmatmul.mubr.bf16.vlgmr.msra.gmra.mrb[12].mxu1 %v4173_v14  ;;  %3805 = vmatpush3.bf16.msra.mxu0 %v4178_v18  ;;  %v4240_v14 = vld [vmem:[%s5370_s1 + $0x530] sm:$0xff]   ;;  %v4244_v18 = vld [vmem:[%s5370_s1 + $0x538] sm:$0xff]  }
  0x85   :  { %3827 = vmatpush3.bf16.msra.mxu1 %v4179_v19  ;;  %3806 = vmatprep.subr.bf16.mxu0 %v4180_v20  ;;  %v4245_v19 = vld [vmem:[%s5370_s1 + $0x5b8] sm:$0xff]   ;;  %v4246_v20 = vld [vmem:[%s5371_s0 + $0x50] ss:$144 sps:$4 sm:$0xff]  }
  0x86   :  { %3828 = vmatprep.subr.bf16.mxu1 %v4181_v21  ;;  %2902 = vmatprep.mubr.bf16.mxu0 %v4210_v49  ;;  %v4248_v21 = vld [vmem:[%s5371_s0 + $0x54] ss:$144 sps:$4 sm:$0xff]  }
  0x87   :  { %2943 = vmatprep.mubr.bf16.mxu1 %v4213_v51  ;;  %v4277_v49 = vld [vmem:[%s5370_s1 + $0x6f0] sm:$0xff]  }
  0x88   :  { %3807 = vmatpush3.bf16.msra.mxu0 %v4182_v22  ;;  %v4249_v22 = vld [vmem:[%s5371_s0 + $0x58] ss:$144 sps:$4 sm:$0xff]   ;;  %v4279_v51 = vld [vmem:[%s5370_s1 + $0x6b0] sm:$0xff]  }
  0x89   :  { %3829 = vmatpush3.bf16.msra.mxu1 %v4183_v23  ;;  %3808 = vmatprep.subr.bf16.mxu0 %v4184_v24  ;;  %v4251_v23 = vld [vmem:[%s5371_s0 + $0x5c] ss:$144 sps:$4 sm:$0xff]   ;;  %v4252_v24 = vld [vmem:[%s5370_s1 + $0x640] sm:$0xff]  }
  0x8a   :  { %3830 = vmatprep.subr.bf16.mxu1 %v4185_v25  ;;  %v4253_v25 = vld [vmem:[%s5370_s1 + $0x6c0] sm:$0xff]  }
  0x8c   :  { %3809 = vmatpush3.bf16.msra.mxu0 %v4186_v26  ;;  %v4254_v26 = vld [vmem:[%s5370_s1 + $0x600] sm:$0xff]  }
  0x8d   :  { %3831 = vmatpush3.bf16.msra.mxu1 %v4187_v27  ;;  %3810 = vmatprep.subr.bf16.mxu0 %v4188_v28  ;;  %v4255_v27 = vld [vmem:[%s5370_s1 + $0x680] sm:$0xff]   ;;  %v4256_v28 = vld [vmem:[%s5370_s1 + $0x648] sm:$0xff]  }
  0x8e   :  { %3832 = vmatprep.subr.bf16.mxu1 %v4189_v29  ;;  %v4257_v29 = vld [vmem:[%s5370_s1 + $0x6c8] sm:$0xff]  }
  0x90   :  { %3811 = vmatpush3.bf16.msra.mxu0 %v4190_v30  ;;  %v4258_v30 = vld [vmem:[%s5370_s1 + $0x608] sm:$0xff]  }
  0x91   :  { %3833 = vmatpush3.bf16.msra.mxu1 %v4191_v31  ;;  %3812 = vmatprep.subr.bf16.mxu0 %v4192_v32  ;;  %v4259_v31 = vld [vmem:[%s5370_s1 + $0x688] sm:$0xff]   ;;  %v4260_v32 = vld [vmem:[%s5370_s1 + $0x650] sm:$0xff]  }
  0x92   :  { %3834 = vmatprep.subr.bf16.mxu1 %v4193_v33  ;;  %v4261_v33 = vld [vmem:[%s5370_s1 + $0x6d0] sm:$0xff]  }
  0x94   :  { %3813 = vmatpush3.bf16.msra.mxu0 %v4194_v34  ;;  %v4262_v34 = vld [vmem:[%s5370_s1 + $0x610] sm:$0xff]  }
  0x95   :  { %3835 = vmatpush3.bf16.msra.mxu1 %v4195_v35  ;;  %3814 = vmatprep.subr.bf16.mxu0 %v4196_v36  ;;  %v4263_v35 = vld [vmem:[%s5370_s1 + $0x690] sm:$0xff]   ;;  %v4264_v36 = vld [vmem:[%s5370_s1 + $0x658] sm:$0xff]  }
  0x96   :  { %3836 = vmatprep.subr.bf16.mxu1 %v4197_v37  ;;  %v4265_v37 = vld [vmem:[%s5370_s1 + $0x6d8] sm:$0xff]  }
  0x98   :  { %3815 = vmatpush3.bf16.msra.mxu0 %v4198_v38  ;;  %v4266_v38 = vld [vmem:[%s5370_s1 + $0x618] sm:$0xff]  }
  0x99   :  { %3837 = vmatpush3.bf16.msra.mxu1 %v4199_v39  ;;  %3816 = vmatprep.subr.bf16.mxu0 %v4200_v40  ;;  %v4267_v39 = vld [vmem:[%s5370_s1 + $0x698] sm:$0xff]   ;;  %v4268_v40 = vld [vmem:[%s5370_s1 + $0x660] sm:$0xff]  }
  0x9a   :  { %3838 = vmatprep.subr.bf16.mxu1 %v4201_v41  ;;  %v4269_v41 = vld [vmem:[%s5370_s1 + $0x6e0] sm:$0xff]  }
  0x9c   :  { %3817 = vmatpush3.bf16.msra.mxu0 %v4202_v42  ;;  %v4270_v42 = vld [vmem:[%s5370_s1 + $0x620] sm:$0xff]  }
  0x9d   :  { %3839 = vmatpush3.bf16.msra.mxu1 %v4203_v43  ;;  %3818 = vmatprep.subr.bf16.mxu0 %v4204_v44  ;;  %v4271_v43 = vld [vmem:[%s5370_s1 + $0x6a0] sm:$0xff]   ;;  %v4272_v44 = vld [vmem:[%s5370_s1 + $0x668] sm:$0xff]  }
  0x9e   :  { %3840 = vmatprep.subr.bf16.mxu1 %v4205_v45  ;;  %v4273_v45 = vld [vmem:[%s5370_s1 + $0x6e8] sm:$0xff]  }
  0xa0   :  { %3819 = vmatpush3.bf16.msra.mxu0 %v4206_v46  ;;  %v4274_v46 = vld [vmem:[%s5370_s1 + $0x628] sm:$0xff]  }
  0xa1   :  { %3841 = vmatpush3.bf16.msra.mxu1 %v4207_v47  ;;  %3848 = vmatprep.subr.bf16.mxu0 %v4214_v52  ;;  %v4275_v47 = vld [vmem:[%s5370_s1 + $0x6a8] sm:$0xff]   ;;  %v4280_v52 = vld [vmem:[%s5370_s1 + $0x678] sm:$0xff]  }
  0xa2   :  { %3870 = vmatprep.subr.bf16.mxu1 %v4215_v53  ;;  %v4281_v53 = vld [vmem:[%s5370_s1 + $0x6f8] sm:$0xff]  }
  0xa3   :  { %2903 = vmatmul.mubr.bf16.vlgmr.msra.gmra.mrb[16].mxu0 %v4208_v48  ;;  %v4276_v48 = vld [vmem:[%s5370_s1 + $0x670] sm:$0xff]  }
  0xa4   :  { %2944 = vmatmul.mubr.bf16.vlgmr.msra.gmra.mrb[16].mxu1 %v4211_v50  ;;  %3849 = vmatpush3.bf16.msra.mxu0 %v4216_v54  ;;  %v4278_v50 = vld [vmem:[%s5370_s1 + $0x630] sm:$0xff]   ;;  %v4282_v54 = vld [vmem:[%s5370_s1 + $0x638] sm:$0xff]  }
  0xa5   :  { %3871 = vmatpush3.bf16.msra.mxu1 %v4217_v55  ;;  %3850 = vmatprep.subr.bf16.mxu0 %v4218_v56  ;;  %v4283_v55 = vld [vmem:[%s5370_s1 + $0x6b8] sm:$0xff]   ;;  %v4284_v56 = vld [vmem:[%s5371_s0 + $0x60] ss:$144 sps:$4 sm:$0xff]  }
  0xa6   :  { %3872 = vmatprep.subr.bf16.mxu1 %v4219_v57  ;;  %2984 = vmatprep.mubr.bf16.mxu0 %v4248_v21  ;;  %v4286_v57 = vld [vmem:[%s5371_s0 + $0x64] ss:$144 sps:$4 sm:$0xff]   ;;  %v4303_v21 = vld [vmem:[%s5370_s1 + $0x7d8] sm:$0xff]  }
  0xa7   :  { %3025 = vmatprep.mubr.bf16.mxu1 %v4251_v23  ;;  %v4305_v23 = vld [vmem:[%s5370_s1 + $0x798] sm:$0xff]  }
  0xa8   :  { %3851 = vmatpush3.bf16.msra.mxu0 %v4220_v58  ;;  %v4287_v58 = vld [vmem:[%s5371_s0 + $0x68] ss:$144 sps:$4 sm:$0xff]  }
  0xa9   :  { %3873 = vmatpush3.bf16.msra.mxu1 %v4221_v59  ;;  %3852 = vmatprep.subr.bf16.mxu0 %v4222_v60  ;;  %v4289_v59 = vld [vmem:[%s5371_s0 + $0x6c] ss:$144 sps:$4 sm:$0xff]   ;;  %v4290_v60 = vld [vmem:[%s5370_s1 + $0x740] sm:$0xff]  }
  0xaa   :  { %3874 = vmatprep.subr.bf16.mxu1 %v4223_v61  ;;  %v4291_v61 = vld [vmem:[%s5370_s1 + $0x7c0] sm:$0xff]  }
  0xac   :  { %3853 = vmatpush3.bf16.msra.mxu0 %v4224_v62  ;;  %v4292_v62 = vld [vmem:[%s5370_s1 + $0x700] sm:$0xff]  }
  0xad   :  { %3875 = vmatpush3.bf16.msra.mxu1 %v4225_v63  ;;  %3854 = vmatprep.subr.bf16.mxu0 %v4226_v0  ;;  %v4293_v63 = vld [vmem:[%s5370_s1 + $0x780] sm:$0xff]   ;;  %v4294_v0 = vld [vmem:[%s5370_s1 + $0x748] sm:$0xff]  }
  0xae   :  { %3876 = vmatprep.subr.bf16.mxu1 %v4227_v1 }
  0xb0   :  { %3855 = vmatpush3.bf16.msra.mxu0 %v4228_v2  ;;  %v4295_v2 = vld [vmem:[%s5370_s1 + $0x7c8] sm:$0xff]  }
  0xb1   :  { %3877 = vmatpush3.bf16.msra.mxu1 %v4229_v3  ;;  %3856 = vmatprep.subr.bf16.mxu0 %v4230_v4  ;;  %v4296_v4 = vld [vmem:[%s5370_s1 + $0x708] sm:$0xff]  }
  0xb2   :  { %3878 = vmatprep.subr.bf16.mxu1 %v4231_v5 }
  0xb4   :  { %3857 = vmatpush3.bf16.msra.mxu0 %v4232_v6  ;;  %v4297_v6 = vld [vmem:[%s5370_s1 + $0x788] sm:$0xff]  }
  0xb5   :  { %3879 = vmatpush3.bf16.msra.mxu1 %v4233_v7  ;;  %3858 = vmatprep.subr.bf16.mxu0 %v4234_v8 }
  0xb6   :  { %3880 = vmatprep.subr.bf16.mxu1 %v4235_v9  ;;  %v4298_v9 = vld [vmem:[%s5370_s1 + $0x750] sm:$0xff]  }
  0xb8   :  { %3859 = vmatpush3.bf16.msra.mxu0 %v4236_v10 }
  0xb9   :  { %3881 = vmatpush3.bf16.msra.mxu1 %v4237_v11  ;;  %3860 = vmatprep.subr.bf16.mxu0 %v4238_v12  ;;  %v4299_v12 = vld [vmem:[%s5370_s1 + $0x7d0] sm:$0xff]  }
  0xba   :  { %3882 = vmatprep.subr.bf16.mxu1 %v4239_v13 }
  0xbc   :  { %3861 = vmatpush3.bf16.msra.mxu0 %v4240_v14  ;;  %v4300_v14 = vld [vmem:[%s5370_s1 + $0x710] sm:$0xff]  }
  0xbd   :  { %3883 = vmatpush3.bf16.msra.mxu1 %v4241_v15  ;;  %3862 = vmatprep.subr.bf16.mxu0 %v4242_v16  ;;  %v4301_v16 = vld [vmem:[%s5370_s1 + $0x790] sm:$0xff]  }
  0xbe   :  { %3884 = vmatprep.subr.bf16.mxu1 %v4243_v17 }
  0xc0   :  { %3863 = vmatpush3.bf16.msra.mxu0 %v4244_v18 }
  0xc1   :  { %3885 = vmatpush3.bf16.msra.mxu1 %v4245_v19  ;;  %3892 = vmatprep.subr.bf16.mxu0 %v4252_v24  ;;  %v4302_v19 = vld [vmem:[%s5370_s1 + $0x758] sm:$0xff]   ;;  %v4306_v24 = vld [vmem:[%s5370_s1 + $0x760] sm:$0xff]  }
  0xc2   :  { %3914 = vmatprep.subr.bf16.mxu1 %v4253_v25  ;;  %v4307_v25 = vld [vmem:[%s5370_s1 + $0x7e0] sm:$0xff]  }
  0xc3   :  { %2985 = vmatmul.mubr.bf16.vlgmr.msra.gmra.mrb[20].mxu0 %v4246_v20 }
  0xc4   :  { %3026 = vmatmul.mubr.bf16.vlgmr.msra.gmra.mrb[20].mxu1 %v4249_v22  ;;  %3893 = vmatpush3.bf16.msra.mxu0 %v4254_v26  ;;  %v4304_v22 = vld [vmem:[%s5370_s1 + $0x718] sm:$0xff]   ;;  %v4308_v26 = vld [vmem:[%s5370_s1 + $0x720] sm:$0xff]  }
  0xc5   :  { %3915 = vmatpush3.bf16.msra.mxu1 %v4255_v27  ;;  %3894 = vmatprep.subr.bf16.mxu0 %v4256_v28  ;;  %v4309_v27 = vld [vmem:[%s5370_s1 + $0x7a0] sm:$0xff]  }
  0xc6   :  { %3916 = vmatprep.subr.bf16.mxu1 %v4257_v29  ;;  %3066 = vmatprep.mubr.bf16.mxu0 %v4286_v57  ;;  %v3294_v28 = vld [vmem:[%s5372_s2] ss:$0 sm:$0xff] }
  0xc7   :  { %3107 = vmatprep.mubr.bf16.mxu1 %v4289_v59  ;;  %v4334_v59 = vld [vmem:[%s5370_s1 + $0x808] sm:$0xff]  }
  0xc8   :  { %3895 = vmatpush3.bf16.msra.mxu0 %v4258_v30  ;;  %v4310_v30 = vld [vmem:[%s5370_s1 + $0x768] sm:$0xff]  }
  0xc9   :  { %3917 = vmatpush3.bf16.msra.mxu1 %v4259_v31  ;;  %3896 = vmatprep.subr.bf16.mxu0 %v4260_v32  ;;  %v4311_v32 = vld [vmem:[%s5370_s1 + $0x7e8] sm:$0xff]  }
  0xca   :  { %3918 = vmatprep.subr.bf16.mxu1 %v4261_v33 }
  0xcc   :  { %3897 = vmatpush3.bf16.msra.mxu0 %v4262_v34  ;;  %v4312_v34 = vld [vmem:[%s5370_s1 + $0x728] sm:$0xff]  }
  0xcd   :  { %3919 = vmatpush3.bf16.msra.mxu1 %v4263_v35  ;;  %3898 = vmatprep.subr.bf16.mxu0 %v4264_v36  ;;  %v4313_v36 = vld [vmem:[%s5370_s1 + $0x7a8] sm:$0xff]  }
  0xce   :  { %3920 = vmatprep.subr.bf16.mxu1 %v4265_v37  ;;  %v4314_v37 = vld [vmem:[%s5370_s1 + $0x770] sm:$0xff]  }
  0xd0   :  { %3899 = vmatpush3.bf16.msra.mxu0 %v4266_v38  ;;  %v4315_v38 = vld [vmem:[%s5370_s1 + $0x7f0] sm:$0xff]  }
  0xd1   :  { %3921 = vmatpush3.bf16.msra.mxu1 %v4267_v39  ;;  %3900 = vmatprep.subr.bf16.mxu0 %v4268_v40  ;;  %v4316_v39 = vld [vmem:[%s5370_s1 + $0x730] sm:$0xff]  }
  0xd2   :  { %3922 = vmatprep.subr.bf16.mxu1 %v4269_v41  ;;  %v4317_v40 = vld [vmem:[%s5370_s1 + $0x7b0] sm:$0xff]   ;;  %v4318_v41 = vld [vmem:[%s5370_s1 + $0x778] sm:$0xff]  }
  0xd4   :  { %3901 = vmatpush3.bf16.msra.mxu0 %v4270_v42  ;;  %v4319_v42 = vld [vmem:[%s5370_s1 + $0x7f8] sm:$0xff]  }
  0xd5   :  { %3923 = vmatpush3.bf16.msra.mxu1 %v4271_v43  ;;  %3902 = vmatprep.subr.bf16.mxu0 %v4272_v44  ;;  %v4320_v43 = vld [vmem:[%s5370_s1 + $0x738] sm:$0xff]  }
  0xd6   :  { %3924 = vmatprep.subr.bf16.mxu1 %v4273_v45  ;;  %v4321_v44 = vld [vmem:[%s5370_s1 + $0x7b8] sm:$0xff]   ;;  %v4322_v45 = vld [vmem:[%s5371_s0 + $0x70] ss:$144 sps:$4 sm:$0xff]  }
  0xd8   :  { %3903 = vmatpush3.bf16.msra.mxu0 %v4274_v46  ;;  %v4324_v46 = vld [vmem:[%s5371_s0 + $0x74] ss:$144 sps:$4 sm:$0xff]  }
  0xd9   :  { %3925 = vmatpush3.bf16.msra.mxu1 %v4275_v47  ;;  %3904 = vmatprep.subr.bf16.mxu0 %v4276_v48  ;;  %v4325_v47 = vld [vmem:[%s5371_s0 + $0x78] ss:$144 sps:$4 sm:$0xff]   ;;  %v4327_v48 = vld [vmem:[%s5371_s0 + $0x7c] ss:$144 sps:$4 sm:$0xff]  }
  0xda   :  { %3926 = vmatprep.subr.bf16.mxu1 %v4277_v49  ;;  %v4328_v49 = vld [vmem:[%s5370_s1 + $0x840] sm:$0xff]  }
  0xdc   :  { %3905 = vmatpush3.bf16.msra.mxu0 %v4278_v50  ;;  %v4329_v50 = vld [vmem:[%s5370_s1 + $0x8c0] sm:$0xff]  }
  0xdd   :  { %3927 = vmatpush3.bf16.msra.mxu1 %v4279_v51  ;;  %3906 = vmatprep.subr.bf16.mxu0 %v4280_v52  ;;  %v4330_v51 = vld [vmem:[%s5370_s1 + $0x800] sm:$0xff]  }
  0xde   :  { %3928 = vmatprep.subr.bf16.mxu1 %v4281_v53  ;;  %v4331_v52 = vld [vmem:[%s5370_s1 + $0x880] sm:$0xff]  }
  0xe0   :  { %3907 = vmatpush3.bf16.msra.mxu0 %v4282_v54  ;;  %v4332_v54 = vld [vmem:[%s5370_s1 + $0x848] sm:$0xff]  }
  0xe1   :  { %3929 = vmatpush3.bf16.msra.mxu1 %v4283_v55  ;;  %3936 = vmatprep.subr.bf16.mxu0 %v4290_v60 }
  0xe2   :  { %3958 = vmatprep.subr.bf16.mxu1 %v4291_v61  ;;  %v4335_v61 = vld [vmem:[%s5370_s1 + $0x888] sm:$0xff]  }
  0xe3   :  { %3067 = vmatmul.mubr.bf16.vlgmr.msra.gmra.mrb[24].mxu0 %v4284_v56  ;;  %v4333_v56 = vld [vmem:[%s5370_s1 + $0x8c8] sm:$0xff]  }
  0xe4   :  { %3108 = vmatmul.mubr.bf16.vlgmr.msra.gmra.mrb[24].mxu1 %v4287_v58  ;;  %3937 = vmatpush3.bf16.msra.mxu0 %v4292_v62 }
  0xe5   :  { %3959 = vmatpush3.bf16.msra.mxu1 %v4293_v63  ;;  %3938 = vmatprep.subr.bf16.mxu0 %v4294_v0 }
  0xe6   :  { %3960 = vmatprep.subr.bf16.mxu1 %v4295_v2  ;;  %3148 = vmatprep.mubr.bf16.mxu0 %v4324_v46 }
  0xe7   :  { %3189 = vmatprep.mubr.bf16.mxu1 %v4327_v48 }
  0xe8   :  { %3939 = vmatpush3.bf16.msra.mxu0 %v4296_v4 }
  0xe9   :  { %3961 = vmatpush3.bf16.msra.mxu1 %v4297_v6  ;;  %3940 = vmatprep.subr.bf16.mxu0 %v4298_v9  ;;  %v4338_v6 = vld [vmem:[%s5370_s1 + $0x810] sm:$0xff]  }
  0xea   :  { %3962 = vmatprep.subr.bf16.mxu1 %v4299_v12  ;;  %v4339_v9 = vld [vmem:[%s5370_s1 + $0x890] sm:$0xff]  }
  0xec   :  { %3941 = vmatpush3.bf16.msra.mxu0 %v4300_v14  ;;  %v4342_v14 = vld [vmem:[%s5370_s1 + $0x818] sm:$0xff]  }
  0xed   :  { %3963 = vmatpush3.bf16.msra.mxu1 %v4301_v16  ;;  %3942 = vmatprep.subr.bf16.mxu0 %v4302_v19  ;;  %v4343_v16 = vld [vmem:[%s5370_s1 + $0x898] sm:$0xff]   ;;  %v4346_v19 = vld [vmem:[%s5370_s1 + $0x820] sm:$0xff]  }
  0xee   :  { %3964 = vmatprep.subr.bf16.mxu1 %v4303_v21  ;;  %v4348_v21 = vld [vmem:[%s5370_s1 + $0x868] sm:$0xff]  }
  0xf0   :  { %3943 = vmatpush3.bf16.msra.mxu0 %v4304_v22  ;;  %v4349_v22 = vld [vmem:[%s5370_s1 + $0x8e8] sm:$0xff]  }
  0xf1   :  { %3965 = vmatpush3.bf16.msra.mxu1 %v4305_v23  ;;  %3944 = vmatprep.subr.bf16.mxu0 %v4306_v24  ;;  %v4350_v23 = vld [vmem:[%s5370_s1 + $0x828] sm:$0xff]  }
  0xf2   :  { %3966 = vmatprep.subr.bf16.mxu1 %v4307_v25  ;;  %v4351_v24 = vld [vmem:[%s5370_s1 + $0x8a8] sm:$0xff]   ;;  %v4352_v25 = vld [vmem:[%s5370_s1 + $0x870] sm:$0xff]  }
  0xf4   :  { %3945 = vmatpush3.bf16.msra.mxu0 %v4308_v26  ;;  %v4353_v26 = vld [vmem:[%s5370_s1 + $0x8f0] sm:$0xff]  }
  0xf5   :  { %3967 = vmatpush3.bf16.msra.mxu1 %v4309_v27  ;;  %3946 = vmatprep.subr.bf16.mxu0 %v4310_v30  ;;  %v4354_v27 = vld [vmem:[%s5370_s1 + $0x830] sm:$0xff]   ;;  %v4357_v30 = vld [vmem:[%s5370_s1 + $0x8f8] sm:$0xff]  }
  0xf6   :  { %v3644_v1 = vpop.f32.mrb[0].mxu0  ;;  %3968 = vmatprep.subr.bf16.mxu1 %v4311_v32  ;;  %v4359_v32 = vld [vmem:[%s5370_s1 + $0x8b8] sm:$0xff]  }
  0xf7   :  { %v3666_v3 = vpop.f32.mrb[0].mxu1  ;;  %v3645_v5 = vpop.f32.mrb[1].mxu0 }
  0xf8   :  { %v3646_v7 = vadd.f32 %v3645_v5, %v3644_v1  ;;  %v3667_v8 = vpop.f32.mrb[1].mxu1  ;;  %v3647_v11 = vpop.f32.mrb[2].mxu0  ;;  %3947 = vmatpush3.bf16.msra.mxu0 %v4312_v34  ;;  %v4336_v1 = vld [vmem:[%s5370_s1 + $0x850] sm:$0xff]  }
  0xf9   :  { %v3668_v10 = vadd.f32 %v3667_v8, %v3666_v3  ;;  %v3669_v13 = vpop.f32.mrb[2].mxu1  ;;  %v3648_v15 = vpop.f32.mrb[3].mxu0  ;;  %3969 = vmatpush3.bf16.msra.mxu1 %v4313_v36  ;;  %3948 = vmatprep.subr.bf16.mxu0 %v4314_v37  ;;  %v4337_v3 = vld [vmem:[%s5370_s1 + $0x8d0] sm:$0xff]   ;;  %v4365_v36 = vld [vmem:[%s5371_s0 + $0x8c] ss:$144 sps:$4 sm:$0xff]  }
  0xfa   :  { %v3649_v17 = vadd.f32 %v3648_v15, %v3647_v11  ;;  %v3670_v18 = vpop.f32.mrb[3].mxu1  ;;  %v2577_v29 = vadd.f32 %v3646_v7, %v3294_v28  ;;  %3970 = vmatprep.subr.bf16.mxu1 %v4315_v38  ;;  %v4340_v11 = vld [vmem:[%s5370_s1 + $0x858] sm:$0xff]   ;;  %v4362_v34 = vld [vmem:[%s5371_s0 + $0x84] ss:$144 sps:$4 sm:$0xff]  }
  0xfb   :  { %v3671_v20 = vadd.f32 %v3670_v18, %v3669_v13  ;;  %v4341_v13 = vld [vmem:[%s5370_s1 + $0x8d8] sm:$0xff]   ;;  %v4345_v18 = vld [vmem:[%s5370_s1 + $0x8e0] sm:$0xff]  }
  0xfc   :  { %v2580_v31 = vadd.f32 %v3649_v17, %v3294_v28  ;;  %v2618_v33 = vadd.f32 %v3668_v10, %v2577_v29  ;;  %3949 = vmatpush3.bf16.msra.mxu0 %v4316_v39  ;;  %v4344_v17 = vld [vmem:[%s5370_s1 + $0x860] sm:$0xff]   ;;  %v4355_v28 = vld [vmem:[%s5370_s1 + $0x8b0] sm:$0xff]   ;;  %v4356_v29 = vld [vmem:[%s5370_s1 + $0x878] sm:$0xff]  }
  0xfd   :  { %3971 = vmatpush3.bf16.msra.mxu1 %v4317_v40  ;;  %3950 = vmatprep.subr.bf16.mxu0 %v4318_v41 }
  0xfe   :  { %v5214_v35 = vadd.f32 %v3671_v20, %v2580_v31  ;;  %3972 = vmatprep.subr.bf16.mxu1 %v4319_v42  ;;  %v4347_v20 = vld [vmem:[%s5370_s1 + $0x8a0] sm:$0xff]   ;;  %v4358_v31 = vld [vmem:[%s5370_s1 + $0x838] sm:$0xff]  }
 0x100   :  { %3951 = vmatpush3.bf16.msra.mxu0 %v4320_v43 }
 0x101   :  { %3973 = vmatpush3.bf16.msra.mxu1 %v4321_v44  ;;  %3980 = vmatprep.subr.bf16.mxu0 %v4328_v49 }
 0x102   :  { %4002 = vmatprep.subr.bf16.mxu1 %v4329_v50 }
 0x103   :  { %3149 = vmatmul.mubr.bf16.vlgmr.msra.gmra.mrb[28].mxu0 %v4322_v45 }
 0x104   :  { %3190 = vmatmul.mubr.bf16.vlgmr.msra.gmra.mrb[28].mxu1 %v4325_v47  ;;  %3981 = vmatpush3.bf16.msra.mxu0 %v4330_v51 }
 0x105   :  { %4003 = vmatpush3.bf16.msra.mxu1 %v4331_v52  ;;  %3982 = vmatprep.subr.bf16.mxu0 %v4332_v54 }
 0x106   :  { %4004 = vmatprep.subr.bf16.mxu1 %v4333_v56  ;;  %3230 = vmatprep.mubr.bf16.mxu0 %v4362_v34 }
 0x107   :  { %3271 = vmatprep.mubr.bf16.mxu1 %v4365_v36 }
 0x108   :  { %3983 = vmatpush3.bf16.msra.mxu0 %v4334_v59 }
 0x109   :  { %4005 = vmatpush3.bf16.msra.mxu1 %v4335_v61  ;;  %3984 = vmatprep.subr.bf16.mxu0 %v4336_v1 }
 0x10a   :  { %4006 = vmatprep.subr.bf16.mxu1 %v4337_v3 }
 0x10c   :  { %3985 = vmatpush3.bf16.msra.mxu0 %v4338_v6 }
 0x10d   :  { %4007 = vmatpush3.bf16.msra.mxu1 %v4339_v9  ;;  %3986 = vmatprep.subr.bf16.mxu0 %v4340_v11 }
 0x10e   :  { %4008 = vmatprep.subr.bf16.mxu1 %v4341_v13 }
 0x110   :  { %3987 = vmatpush3.bf16.msra.mxu0 %v4342_v14 }
 0x111   :  { %4009 = vmatpush3.bf16.msra.mxu1 %v4343_v16  ;;  %3988 = vmatprep.subr.bf16.mxu0 %v4344_v17 }
 0x112   :  { %4010 = vmatprep.subr.bf16.mxu1 %v4345_v18 }
 0x114   :  { %3989 = vmatpush3.bf16.msra.mxu0 %v4346_v19 }
 0x115   :  { %4011 = vmatpush3.bf16.msra.mxu1 %v4347_v20  ;;  %3990 = vmatprep.subr.bf16.mxu0 %v4348_v21 }
 0x116   :  { %v3688_v53 = vpop.f32.mrb[4].mxu0  ;;  %4012 = vmatprep.subr.bf16.mxu1 %v4349_v22 }
 0x117   :  { %v3689_v55 = vpop.f32.mrb[5].mxu0  ;;  %v3710_v57 = vpop.f32.mrb[4].mxu1 }
 0x118   :  { %v3690_v58 = vadd.f32 %v3689_v55, %v3688_v53  ;;  %v3711_v60 = vpop.f32.mrb[5].mxu1  ;;  %v3691_v0 = vpop.f32.mrb[6].mxu0  ;;  %3991 = vmatpush3.bf16.msra.mxu0 %v4350_v23 }
 0x119   :  { %v3712_v63 = vadd.f32 %v3711_v60, %v3710_v57  ;;  %v3713_v2 = vpop.f32.mrb[6].mxu1  ;;  %v3692_v5 = vpop.f32.mrb[7].mxu0  ;;  %4013 = vmatpush3.bf16.msra.mxu1 %v4351_v24  ;;  %3992 = vmatprep.subr.bf16.mxu0 %v4352_v25 }
 0x11a   :  { %v2659_v62 = vadd.f32 %v3690_v58, %v2618_v33  ;;  %v3693_v7 = vadd.f32 %v3692_v5, %v3691_v0  ;;  %v3714_v8 = vpop.f32.mrb[7].mxu1  ;;  %4014 = vmatprep.subr.bf16.mxu1 %v4353_v26  ;;  %v4360_v33 = vld [vmem:[%s5371_s0 + $0x80] ss:$144 sps:$4 sm:$0xff]  }
 0x11b   :  { %v3715_v10 = vadd.f32 %v3714_v8, %v3713_v2 }
 0x11c   :  { %v5285_v4 = vadd.f32 %v3712_v63, %v2659_v62  ;;  %v2662_v12 = vadd.f32 %v3693_v7, %v5214_v35  ;;  %3993 = vmatpush3.bf16.msra.mxu0 %v4354_v27  ;;  %v4363_v35 = vld [vmem:[%s5371_s0 + $0x88] ss:$144 sps:$4 sm:$0xff]  }
 0x11d   :  { %4015 = vmatpush3.bf16.msra.mxu1 %v4355_v28  ;;  %3994 = vmatprep.subr.bf16.mxu0 %v4356_v29 }
 0x11e   :  { %v2703_v15 = vadd.f32 %v3715_v10, %v2662_v12  ;;  %4016 = vmatprep.subr.bf16.mxu1 %v4357_v30 }
 0x120   :  { %3995 = vmatpush3.bf16.msra.mxu0 %v4358_v31 }
 0x121   :  { %4017 = vmatpush3.bf16.msra.mxu1 %v4359_v32 }
 0x123   :  { %3231 = vmatmul.mubr.bf16.vlgmr.msra.gmra.mrb[32].mxu0 %v4360_v33 }
 0x124   :  { %3272 = vmatmul.mubr.bf16.vlgmr.msra.gmra.mrb[32].mxu1 %v4363_v35 }
 0x136   :  { %v3732_v37 = vpop.f32.mrb[8].mxu0 }
 0x137   :  { %v3754_v38 = vpop.f32.mrb[8].mxu1  ;;  %v3733_v39 = vpop.f32.mrb[9].mxu0 }
 0x138   :  { %v3734_v40 = vadd.f32 %v3733_v39, %v3732_v37  ;;  %v3755_v41 = vpop.f32.mrb[9].mxu1  ;;  %v3735_v42 = vpop.f32.mrb[10].mxu0 }
 0x139   :  { %v3756_v43 = vadd.f32 %v3755_v41, %v3754_v38  ;;  %v3757_v44 = vpop.f32.mrb[10].mxu1  ;;  %v3736_v45 = vpop.f32.mrb[11].mxu0 }
 0x13a   :  { %v2741_v46 = vadd.f32 %v3734_v40, %v5285_v4  ;;  %v3737_v47 = vadd.f32 %v3736_v45, %v3735_v42  ;;  %v3758_v48 = vpop.f32.mrb[11].mxu1 }
 0x13b   :  { %v3759_v49 = vadd.f32 %v3758_v48, %v3757_v44 }
 0x13c   :  { %v2782_v50 = vadd.f32 %v3756_v43, %v2741_v46  ;;  %v2744_v51 = vadd.f32 %v3737_v47, %v2703_v15 }
 0x13e   :  { %v2785_v52 = vadd.f32 %v3759_v49, %v2744_v51 }
 0x156   :  { %v3776_v53 = vpop.f32.mrb[12].mxu0 }
 0x157   :  { %v3798_v54 = vpop.f32.mrb[12].mxu1  ;;  %v3777_v55 = vpop.f32.mrb[13].mxu0 }
 0x158   :  { %v3778_v56 = vadd.f32 %v3777_v55, %v3776_v53  ;;  %v3799_v57 = vpop.f32.mrb[13].mxu1  ;;  %v3779_v58 = vpop.f32.mrb[14].mxu0 }
 0x159   :  { %v3800_v59 = vadd.f32 %v3799_v57, %v3798_v54  ;;  %v3801_v60 = vpop.f32.mrb[14].mxu1  ;;  %v3780_v61 = vpop.f32.mrb[15].mxu0 }
 0x15a   :  { %v2823_v62 = vadd.f32 %v3778_v56, %v2782_v50  ;;  %v3781_v63 = vadd.f32 %v3780_v61, %v3779_v58  ;;  %v3802_v0 = vpop.f32.mrb[15].mxu1 }
 0x15b   :  { %v3803_v1 = vadd.f32 %v3802_v0, %v3801_v60 }
 0x15c   :  { %v2864_v2 = vadd.f32 %v3800_v59, %v2823_v62  ;;  %v2826_v3 = vadd.f32 %v3781_v63, %v2785_v52 }
 0x15e   :  { %v2867_v4 = vadd.f32 %v3803_v1, %v2826_v3 }
 0x176   :  { %v3820_v5 = vpop.f32.mrb[16].mxu0 }
 0x177   :  { %v3821_v6 = vpop.f32.mrb[17].mxu0  ;;  %v3842_v7 = vpop.f32.mrb[16].mxu1 }
 0x178   :  { %v3822_v8 = vadd.f32 %v3821_v6, %v3820_v5  ;;  %v3823_v9 = vpop.f32.mrb[18].mxu0  ;;  %v3843_v10 = vpop.f32.mrb[17].mxu1 }
 0x179   :  { %v3824_v11 = vpop.f32.mrb[19].mxu0  ;;  %v3844_v13 = vadd.f32 %v3843_v10, %v3842_v7  ;;  %v3845_v14 = vpop.f32.mrb[18].mxu1 }
 0x17a   :  { %v2905_v12 = vadd.f32 %v3822_v8, %v2864_v2  ;;  %v3825_v15 = vadd.f32 %v3824_v11, %v3823_v9  ;;  %v3846_v16 = vpop.f32.mrb[19].mxu1 }
 0x17b   :  { %v3847_v19 = vadd.f32 %v3846_v16, %v3845_v14 }
 0x17c   :  { %v2946_v17 = vadd.f32 %v3844_v13, %v2905_v12  ;;  %v2908_v18 = vadd.f32 %v3825_v15, %v2867_v4 }
 0x17e   :  { %v2949_v20 = vadd.f32 %v3847_v19, %v2908_v18 }
 0x196   :  { %v3864_v21 = vpop.f32.mrb[20].mxu0 }
 0x197   :  { %v3886_v22 = vpop.f32.mrb[20].mxu1  ;;  %v3865_v23 = vpop.f32.mrb[21].mxu0 }
 0x198   :  { %v3866_v24 = vadd.f32 %v3865_v23, %v3864_v21  ;;  %v3887_v25 = vpop.f32.mrb[21].mxu1  ;;  %v3867_v26 = vpop.f32.mrb[22].mxu0 }
 0x199   :  { %v3888_v27 = vadd.f32 %v3887_v25, %v3886_v22  ;;  %v3889_v28 = vpop.f32.mrb[22].mxu1  ;;  %v3868_v29 = vpop.f32.mrb[23].mxu0 }
 0x19a   :  { %v2987_v30 = vadd.f32 %v3866_v24, %v2946_v17  ;;  %v3869_v31 = vadd.f32 %v3868_v29, %v3867_v26  ;;  %v3890_v32 = vpop.f32.mrb[23].mxu1 }
 0x19b   :  { %v3891_v33 = vadd.f32 %v3890_v32, %v3889_v28 }
 0x19c   :  { %v3028_v34 = vadd.f32 %v3888_v27, %v2987_v30  ;;  %v2990_v35 = vadd.f32 %v3869_v31, %v2949_v20 }
 0x19e   :  { %v3031_v36 = vadd.f32 %v3891_v33, %v2990_v35 }
 0x1b6   :  { %v3908_v37 = vpop.f32.mrb[24].mxu0 }
 0x1b7   :  { %v3930_v38 = vpop.f32.mrb[24].mxu1  ;;  %v3909_v39 = vpop.f32.mrb[25].mxu0 }
 0x1b8   :  { %v3910_v40 = vadd.f32 %v3909_v39, %v3908_v37  ;;  %v3931_v41 = vpop.f32.mrb[25].mxu1  ;;  %v3911_v42 = vpop.f32.mrb[26].mxu0 }
 0x1b9   :  { %v3932_v43 = vadd.f32 %v3931_v41, %v3930_v38  ;;  %v3933_v44 = vpop.f32.mrb[26].mxu1  ;;  %v3912_v45 = vpop.f32.mrb[27].mxu0 }
 0x1ba   :  { %v3069_v46 = vadd.f32 %v3910_v40, %v3028_v34  ;;  %v3913_v47 = vadd.f32 %v3912_v45, %v3911_v42  ;;  %v3934_v48 = vpop.f32.mrb[27].mxu1 }
 0x1bb   :  { %v3935_v49 = vadd.f32 %v3934_v48, %v3933_v44 }
 0x1bc   :  { %v3110_v50 = vadd.f32 %v3932_v43, %v3069_v46  ;;  %v3072_v51 = vadd.f32 %v3913_v47, %v3031_v36 }
 0x1be   :  { %v3113_v52 = vadd.f32 %v3935_v49, %v3072_v51 }
 0x1d6   :  { %v3952_v53 = vpop.f32.mrb[28].mxu0 }
 0x1d7   :  { %v3974_v54 = vpop.f32.mrb[28].mxu1  ;;  %v3953_v55 = vpop.f32.mrb[29].mxu0 }
 0x1d8   :  { %v3954_v56 = vadd.f32 %v3953_v55, %v3952_v53  ;;  %v3975_v57 = vpop.f32.mrb[29].mxu1  ;;  %v3955_v58 = vpop.f32.mrb[30].mxu0 }
 0x1d9   :  { %v3976_v59 = vadd.f32 %v3975_v57, %v3974_v54  ;;  %v3977_v60 = vpop.f32.mrb[30].mxu1  ;;  %v3956_v61 = vpop.f32.mrb[31].mxu0 }
 0x1da   :  { %v3151_v62 = vadd.f32 %v3954_v56, %v3110_v50  ;;  %v3957_v63 = vadd.f32 %v3956_v61, %v3955_v58  ;;  %v3978_v0 = vpop.f32.mrb[31].mxu1 }
 0x1db   :  { %v3979_v1 = vadd.f32 %v3978_v0, %v3977_v60 }
 0x1dc   :  { %v3192_v2 = vadd.f32 %v3976_v59, %v3151_v62  ;;  %v3154_v3 = vadd.f32 %v3957_v63, %v3113_v52 }
 0x1de   :  { %v3195_v4 = vadd.f32 %v3979_v1, %v3154_v3 }
 0x1f6   :  { %v3996_v5 = vpop.f32.mrb[32].mxu0 }
 0x1f7   :  { %v3997_v6 = vpop.f32.mrb[33].mxu0  ;;  %v4018_v7 = vpop.f32.mrb[32].mxu1 }
 0x1f8   :  { %v3998_v8 = vadd.f32 %v3997_v6, %v3996_v5  ;;  %v3999_v9 = vpop.f32.mrb[34].mxu0  ;;  %v4019_v10 = vpop.f32.mrb[33].mxu1 }
 0x1f9   :  { %v4000_v11 = vpop.f32.mrb[35].mxu0  ;;  %v4020_v13 = vadd.f32 %v4019_v10, %v4018_v7  ;;  %v4021_v14 = vpop.f32.mrb[34].mxu1 }
 0x1fa   :  { %v3233_v12 = vadd.f32 %v3998_v8, %v3192_v2  ;;  %v4001_v15 = vadd.f32 %v4000_v11, %v3999_v9  ;;  %v4022_v16 = vpop.f32.mrb[35].mxu1 }
 0x1fb   :  { %v4023_v19 = vadd.f32 %v4022_v16, %v4021_v14 }
 0x1fc   :  { %v3274_v17 = vadd.f32 %v4020_v13, %v3233_v12  ;;  %v3236_v18 = vadd.f32 %v4001_v15, %v3195_v4 }
 0x1fe   :  { %v3277_v20 = vadd.f32 %v4023_v19, %v3236_v18 }
 0x200   :  { %v3626_v21 = vpack.c.bf16 %v3277_v20, %v3274_v17 }
 0x202   :  { %3627 = vst [vmem:[%s5373_s3] sm:$0xff] %v3626_v21  }

// kernel: forward.10
= control target key start
LH: loop header
LB: loop body
LE: loop exit
PB: predicated region body
PF: predicated region fallthrough
CT: control target
= control target key end

     0   :  { %s7812_s1 = inlined_call_operand.vmem [shape: bf16[2304,512], index: 1, kind: input, shape index: {}]   ;;  %s7813_s0 = inlined_call_operand.vmem [shape: bf16[16,2304], index: 0, kind: input, shape index: {}]   ;;  %s7814_s2 = inlined_call_operand.vmem [shape: f32[1,512], index: 2, kind: input, shape index: {}]   ;;  %s7815_s3 = inlined_call_operand.vmem [shape: bf16[16,512], index: 3, kind: output, shape index: {}]  }
   0x1   :  { %v5104_v0 = vld [vmem:[%s7812_s1 + $0x4] ss:$16 sps:$4 sm:$0xff]   ;;  %v5106_v1 = vld [vmem:[%s7812_s1 + $0xc] ss:$16 sps:$4 sm:$0xff]   ;;  %v5108_v2 = vld [vmem:[%s7812_s1] ss:$16 sps:$4 sm:$0xff]  }
   0x2   :  { %3600 = vmatprep.subr.bf16.mxu0 %v5104_v0  ;;  %v5109_v3 = vld [vmem:[%s7812_s1 + $0x8] ss:$16 sps:$4 sm:$0xff]   ;;  %3987 = vmatprep.subr.bf16.mxu1 %v5106_v1  ;;  %v5110_v4 = vld [vmem:[%s7812_s1 + $0x24] ss:$16 sps:$4 sm:$0xff]   ;;  %v5112_v5 = vld [vmem:[%s7812_s1 + $0x2c] ss:$16 sps:$4 sm:$0xff]  }
   0x3   :  { %3601 = vmatpush1.bf16.msra.mxu0 %v5108_v2  ;;  %3988 = vmatpush1.bf16.msra.mxu1 %v5109_v3  ;;  %v5114_v6 = vld [vmem:[%s7812_s1 + $0x20] ss:$16 sps:$4 sm:$0xff]   ;;  %v5115_v7 = vld [vmem:[%s7812_s1 + $0x28] ss:$16 sps:$4 sm:$0xff]   ;;  %v5116_v8 = vld [vmem:[%s7812_s1 + $0x44] ss:$16 sps:$4 sm:$0xff]  }
   0x4   :  { %3602 = vmatprep.subr.bf16.mxu0 %v5110_v4  ;;  %3989 = vmatprep.subr.bf16.mxu1 %v5112_v5  ;;  %v5118_v9 = vld [vmem:[%s7812_s1 + $0x4c] ss:$16 sps:$4 sm:$0xff]   ;;  %v5120_v10 = vld [vmem:[%s7812_s1 + $0x40] ss:$16 sps:$4 sm:$0xff]   ;;  %v5121_v11 = vld [vmem:[%s7812_s1 + $0x48] ss:$16 sps:$4 sm:$0xff]  }
   0x5   :  { %v5122_v12 = vld [vmem:[%s7812_s1 + $0x64] ss:$16 sps:$4 sm:$0xff]   ;;  %v5124_v13 = vld [vmem:[%s7812_s1 + $0x6c] ss:$16 sps:$4 sm:$0xff]   ;;  %v5126_v14 = vld [vmem:[%s7812_s1 + $0x60] ss:$16 sps:$4 sm:$0xff]  }
   0x6   :  { %v5127_v15 = vld [vmem:[%s7812_s1 + $0x68] ss:$16 sps:$4 sm:$0xff]   ;;  %v5128_v16 = vld [vmem:[%s7812_s1 + $0x84] ss:$16 sps:$4 sm:$0xff]   ;;  %v5130_v17 = vld [vmem:[%s7812_s1 + $0x8c] ss:$16 sps:$4 sm:$0xff]  }
   0x7   :  { %3603 = vmatpush1.bf16.msra.mxu0 %v5114_v6  ;;  %3990 = vmatpush1.bf16.msra.mxu1 %v5115_v7  ;;  %v5132_v18 = vld [vmem:[%s7812_s1 + $0x80] ss:$16 sps:$4 sm:$0xff]   ;;  %v5133_v19 = vld [vmem:[%s7812_s1 + $0x88] ss:$16 sps:$4 sm:$0xff]   ;;  %v5134_v20 = vld [vmem:[%s7812_s1 + $0xa4] ss:$16 sps:$4 sm:$0xff]  }
   0x8   :  { %3604 = vmatprep.subr.bf16.mxu0 %v5116_v8  ;;  %3991 = vmatprep.subr.bf16.mxu1 %v5118_v9  ;;  %v5136_v21 = vld [vmem:[%s7812_s1 + $0xac] ss:$16 sps:$4 sm:$0xff]   ;;  %v5138_v22 = vld [vmem:[%s7812_s1 + $0xa0] ss:$16 sps:$4 sm:$0xff]   ;;  %v5139_v23 = vld [vmem:[%s7812_s1 + $0xa8] ss:$16 sps:$4 sm:$0xff]  }
   0x9   :  { %v5140_v24 = vld [vmem:[%s7812_s1 + $0xc4] ss:$16 sps:$4 sm:$0xff]   ;;  %v5142_v25 = vld [vmem:[%s7812_s1 + $0xcc] ss:$16 sps:$4 sm:$0xff]   ;;  %v5144_v26 = vld [vmem:[%s7812_s1 + $0xc0] ss:$16 sps:$4 sm:$0xff]  }
   0xa   :  { %v5145_v27 = vld [vmem:[%s7812_s1 + $0xc8] ss:$16 sps:$4 sm:$0xff]   ;;  %v5146_v28 = vld [vmem:[%s7812_s1 + $0xe4] ss:$16 sps:$4 sm:$0xff]   ;;  %v5148_v29 = vld [vmem:[%s7812_s1 + $0xec] ss:$16 sps:$4 sm:$0xff]  }
   0xb   :  { %3605 = vmatpush1.bf16.msra.mxu0 %v5120_v10  ;;  %3992 = vmatpush1.bf16.msra.mxu1 %v5121_v11  ;;  %v5150_v30 = vld [vmem:[%s7812_s1 + $0xe0] ss:$16 sps:$4 sm:$0xff]   ;;  %v5151_v31 = vld [vmem:[%s7812_s1 + $0xe8] ss:$16 sps:$4 sm:$0xff]   ;;  %v5152_v32 = vld [vmem:[%s7812_s1 + $0x104] ss:$16 sps:$4 sm:$0xff]  }
   0xc   :  { %3606 = vmatprep.subr.bf16.mxu0 %v5122_v12  ;;  %3993 = vmatprep.subr.bf16.mxu1 %v5124_v13  ;;  %v5154_v33 = vld [vmem:[%s7812_s1 + $0x10c] ss:$16 sps:$4 sm:$0xff]   ;;  %v5156_v34 = vld [vmem:[%s7812_s1 + $0x100] ss:$16 sps:$4 sm:$0xff]   ;;  %v5157_v35 = vld [vmem:[%s7812_s1 + $0x108] ss:$16 sps:$4 sm:$0xff]  }
   0xd   :  { %v5158_v36 = vld [vmem:[%s7812_s1 + $0x124] ss:$16 sps:$4 sm:$0xff]   ;;  %v5160_v37 = vld [vmem:[%s7812_s1 + $0x12c] ss:$16 sps:$4 sm:$0xff]   ;;  %v5162_v38 = vld [vmem:[%s7812_s1 + $0x120] ss:$16 sps:$4 sm:$0xff]  }
   0xe   :  { %v5163_v39 = vld [vmem:[%s7812_s1 + $0x128] ss:$16 sps:$4 sm:$0xff]   ;;  %v5164_v40 = vld [vmem:[%s7812_s1 + $0x144] ss:$16 sps:$4 sm:$0xff]   ;;  %v5166_v41 = vld [vmem:[%s7812_s1 + $0x14c] ss:$16 sps:$4 sm:$0xff]  }
   0xf   :  { %3607 = vmatpush1.bf16.msra.mxu0 %v5126_v14  ;;  %3994 = vmatpush1.bf16.msra.mxu1 %v5127_v15  ;;  %v5168_v42 = vld [vmem:[%s7812_s1 + $0x140] ss:$16 sps:$4 sm:$0xff]   ;;  %v5169_v43 = vld [vmem:[%s7812_s1 + $0x148] ss:$16 sps:$4 sm:$0xff]   ;;  %v5170_v44 = vld [vmem:[%s7812_s1 + $0x164] ss:$16 sps:$4 sm:$0xff]  }
  0x10   :  { %3608 = vmatprep.subr.bf16.mxu0 %v5128_v16  ;;  %3995 = vmatprep.subr.bf16.mxu1 %v5130_v17  ;;  %v5172_v45 = vld [vmem:[%s7812_s1 + $0x16c] ss:$16 sps:$4 sm:$0xff]   ;;  %v5174_v46 = vld [vmem:[%s7812_s1 + $0x160] ss:$16 sps:$4 sm:$0xff]   ;;  %v5175_v47 = vld [vmem:[%s7812_s1 + $0x168] ss:$16 sps:$4 sm:$0xff]  }
  0x11   :  { %v5202_v48 = vld [vmem:[%s7813_s0 + $0x4] ss:$72 sps:$4 sm:$0xff]   ;;  %v5180_v51 = vld [vmem:[%s7812_s1 + $0x180] ss:$16 sps:$4 sm:$0xff]   ;;  %v5181_v52 = vld [vmem:[%s7812_s1 + $0x188] ss:$16 sps:$4 sm:$0xff]  }
  0x12   :  { %v5176_v49 = vld [vmem:[%s7812_s1 + $0x184] ss:$16 sps:$4 sm:$0xff]   ;;  %v5178_v50 = vld [vmem:[%s7812_s1 + $0x18c] ss:$16 sps:$4 sm:$0xff]   ;;  %3632 = vmatprep.mubr.bf16.mxu0 %v5202_v48  ;;  %4019 = vmatprep.mubr.bf16.mxu1 %v5202_v48  ;;  %v5186_v55 = vld [vmem:[%s7812_s1 + $0x1a0] ss:$16 sps:$4 sm:$0xff]  }
  0x13   :  { %3609 = vmatpush1.bf16.msra.mxu0 %v5132_v18  ;;  %3996 = vmatpush1.bf16.msra.mxu1 %v5133_v19  ;;  %v5182_v53 = vld [vmem:[%s7812_s1 + $0x1a4] ss:$16 sps:$4 sm:$0xff]   ;;  %v5184_v54 = vld [vmem:[%s7812_s1 + $0x1ac] ss:$16 sps:$4 sm:$0xff]   ;;  %v5187_v56 = vld [vmem:[%s7812_s1 + $0x1a8] ss:$16 sps:$4 sm:$0xff]  }
  0x14   :  { %3610 = vmatprep.subr.bf16.mxu0 %v5134_v20  ;;  %3997 = vmatprep.subr.bf16.mxu1 %v5136_v21  ;;  %v5188_v57 = vld [vmem:[%s7812_s1 + $0x1c4] ss:$16 sps:$4 sm:$0xff]   ;;  %v5190_v58 = vld [vmem:[%s7812_s1 + $0x1cc] ss:$16 sps:$4 sm:$0xff]   ;;  %v5192_v59 = vld [vmem:[%s7812_s1 + $0x1c0] ss:$16 sps:$4 sm:$0xff]  }
  0x15   :  { %v5193_v60 = vld [vmem:[%s7812_s1 + $0x1c8] ss:$16 sps:$4 sm:$0xff]   ;;  %v5194_v61 = vld [vmem:[%s7812_s1 + $0x1e4] ss:$16 sps:$4 sm:$0xff]   ;;  %v5196_v62 = vld [vmem:[%s7812_s1 + $0x1ec] ss:$16 sps:$4 sm:$0xff]  }
  0x16   :  { %v5198_v63 = vld [vmem:[%s7812_s1 + $0x1e0] ss:$16 sps:$4 sm:$0xff]   ;;  %v5199_v0 = vld [vmem:[%s7812_s1 + $0x1e8] ss:$16 sps:$4 sm:$0xff]   ;;  %v5205_v1 = vld [vmem:[%s7812_s1 + $0x204] ss:$16 sps:$4 sm:$0xff]  }
  0x17   :  { %3611 = vmatpush1.bf16.msra.mxu0 %v5138_v22  ;;  %3998 = vmatpush1.bf16.msra.mxu1 %v5139_v23  ;;  %v5208_v2 = vld [vmem:[%s7812_s1 + $0x20c] ss:$16 sps:$4 sm:$0xff]   ;;  %v5200_v3 = vld [vmem:[%s7813_s0] ss:$72 sps:$4 sm:$0xff]   ;;  %v5211_v6 = vld [vmem:[%s7812_s1 + $0x224] ss:$16 sps:$4 sm:$0xff]  }
  0x18   :  { %3612 = vmatprep.subr.bf16.mxu0 %v5140_v24  ;;  %3999 = vmatprep.subr.bf16.mxu1 %v5142_v25  ;;  %v5203_v4 = vld [vmem:[%s7812_s1 + $0x200] ss:$16 sps:$4 sm:$0xff]   ;;  %v5206_v5 = vld [vmem:[%s7812_s1 + $0x208] ss:$16 sps:$4 sm:$0xff]   ;;  %v5214_v7 = vld [vmem:[%s7812_s1 + $0x22c] ss:$16 sps:$4 sm:$0xff]  }
  0x19   :  { %v5209_v8 = vld [vmem:[%s7812_s1 + $0x220] ss:$16 sps:$4 sm:$0xff]   ;;  %v5212_v9 = vld [vmem:[%s7812_s1 + $0x228] ss:$16 sps:$4 sm:$0xff]   ;;  %v5217_v10 = vld [vmem:[%s7812_s1 + $0x244] ss:$16 sps:$4 sm:$0xff]  }
  0x1a   :  { %v5220_v11 = vld [vmem:[%s7812_s1 + $0x24c] ss:$16 sps:$4 sm:$0xff]   ;;  %v5215_v12 = vld [vmem:[%s7812_s1 + $0x240] ss:$16 sps:$4 sm:$0xff]   ;;  %v5218_v13 = vld [vmem:[%s7812_s1 + $0x248] ss:$16 sps:$4 sm:$0xff]  }
  0x1b   :  { %3613 = vmatpush1.bf16.msra.mxu0 %v5144_v26  ;;  %4000 = vmatpush1.bf16.msra.mxu1 %v5145_v27  ;;  %v5223_v14 = vld [vmem:[%s7812_s1 + $0x264] ss:$16 sps:$4 sm:$0xff]   ;;  %v5226_v15 = vld [vmem:[%s7812_s1 + $0x26c] ss:$16 sps:$4 sm:$0xff]   ;;  %v5221_v16 = vld [vmem:[%s7812_s1 + $0x260] ss:$16 sps:$4 sm:$0xff]  }
  0x1c   :  { %3614 = vmatprep.subr.bf16.mxu0 %v5146_v28  ;;  %4001 = vmatprep.subr.bf16.mxu1 %v5148_v29  ;;  %v5224_v17 = vld [vmem:[%s7812_s1 + $0x268] ss:$16 sps:$4 sm:$0xff]   ;;  %v5229_v18 = vld [vmem:[%s7812_s1 + $0x284] ss:$16 sps:$4 sm:$0xff]   ;;  %v5232_v19 = vld [vmem:[%s7812_s1 + $0x28c] ss:$16 sps:$4 sm:$0xff]  }
  0x1d   :  { %v5227_v20 = vld [vmem:[%s7812_s1 + $0x280] ss:$16 sps:$4 sm:$0xff]   ;;  %v5230_v21 = vld [vmem:[%s7812_s1 + $0x288] ss:$16 sps:$4 sm:$0xff]   ;;  %v5235_v22 = vld [vmem:[%s7812_s1 + $0x2a4] ss:$16 sps:$4 sm:$0xff]  }
  0x1e   :  { %v5238_v23 = vld [vmem:[%s7812_s1 + $0x2ac] ss:$16 sps:$4 sm:$0xff]   ;;  %v5233_v24 = vld [vmem:[%s7812_s1 + $0x2a0] ss:$16 sps:$4 sm:$0xff]   ;;  %v5236_v25 = vld [vmem:[%s7812_s1 + $0x2a8] ss:$16 sps:$4 sm:$0xff]  }
  0x1f   :  { %3615 = vmatpush1.bf16.msra.mxu0 %v5150_v30  ;;  %4002 = vmatpush1.bf16.msra.mxu1 %v5151_v31  ;;  %v5241_v26 = vld [vmem:[%s7812_s1 + $0x2c4] ss:$16 sps:$4 sm:$0xff]   ;;  %v5244_v27 = vld [vmem:[%s7812_s1 + $0x2cc] ss:$16 sps:$4 sm:$0xff]   ;;  %v5239_v28 = vld [vmem:[%s7812_s1 + $0x2c0] ss:$16 sps:$4 sm:$0xff]  }
  0x20   :  { %3616 = vmatprep.subr.bf16.mxu0 %v5152_v32  ;;  %4003 = vmatprep.subr.bf16.mxu1 %v5154_v33  ;;  %v5242_v29 = vld [vmem:[%s7812_s1 + $0x2c8] ss:$16 sps:$4 sm:$0xff]   ;;  %v5301_v30 = vld [vmem:[%s7813_s0 + $0xc] ss:$72 sps:$4 sm:$0xff]   ;;  %v5245_v33 = vld [vmem:[%s7812_s1 + $0x2e0] ss:$16 sps:$4 sm:$0xff]  }
  0x21   :  { %v5247_v31 = vld [vmem:[%s7812_s1 + $0x2e4] ss:$16 sps:$4 sm:$0xff]   ;;  %v5250_v32 = vld [vmem:[%s7812_s1 + $0x2ec] ss:$16 sps:$4 sm:$0xff]  }
  0x22   :  { %v5274_v48 = vld [vmem:[%s7812_s1 + $0x36c] ss:$16 sps:$4 sm:$0xff]  }
  0x23   :  { %3617 = vmatpush1.bf16.msra.mxu0 %v5156_v34  ;;  %4004 = vmatpush1.bf16.msra.mxu1 %v5157_v35  ;;  %v5248_v34 = vld [vmem:[%s7812_s1 + $0x2e8] ss:$16 sps:$4 sm:$0xff]   ;;  %v5253_v35 = vld [vmem:[%s7812_s1 + $0x304] ss:$16 sps:$4 sm:$0xff]  }
  0x24   :  { %3618 = vmatprep.subr.bf16.mxu0 %v5158_v36  ;;  %4005 = vmatprep.subr.bf16.mxu1 %v5160_v37  ;;  %v5256_v36 = vld [vmem:[%s7812_s1 + $0x30c] ss:$16 sps:$4 sm:$0xff]   ;;  %v5251_v37 = vld [vmem:[%s7812_s1 + $0x300] ss:$16 sps:$4 sm:$0xff]  }
  0x27   :  { %3619 = vmatpush1.bf16.msra.mxu0 %v5162_v38  ;;  %4006 = vmatpush1.bf16.msra.mxu1 %v5163_v39  ;;  %v5254_v38 = vld [vmem:[%s7812_s1 + $0x308] ss:$16 sps:$4 sm:$0xff]   ;;  %v5259_v39 = vld [vmem:[%s7812_s1 + $0x324] ss:$16 sps:$4 sm:$0xff]  }
  0x28   :  { %3620 = vmatprep.subr.bf16.mxu0 %v5164_v40  ;;  %4007 = vmatprep.subr.bf16.mxu1 %v5166_v41  ;;  %v5262_v40 = vld [vmem:[%s7812_s1 + $0x32c] ss:$16 sps:$4 sm:$0xff]   ;;  %v5257_v41 = vld [vmem:[%s7812_s1 + $0x320] ss:$16 sps:$4 sm:$0xff]  }
  0x2b   :  { %3621 = vmatpush1.bf16.msra.mxu0 %v5168_v42  ;;  %4008 = vmatpush1.bf16.msra.mxu1 %v5169_v43  ;;  %v5260_v42 = vld [vmem:[%s7812_s1 + $0x328] ss:$16 sps:$4 sm:$0xff]   ;;  %v5265_v43 = vld [vmem:[%s7812_s1 + $0x344] ss:$16 sps:$4 sm:$0xff]  }
  0x2c   :  { %3622 = vmatprep.subr.bf16.mxu0 %v5170_v44  ;;  %4009 = vmatprep.subr.bf16.mxu1 %v5172_v45  ;;  %v5268_v44 = vld [vmem:[%s7812_s1 + $0x34c] ss:$16 sps:$4 sm:$0xff]   ;;  %v5263_v45 = vld [vmem:[%s7812_s1 + $0x340] ss:$16 sps:$4 sm:$0xff]  }
  0x2f   :  { %3623 = vmatpush1.bf16.msra.mxu0 %v5174_v46  ;;  %4010 = vmatpush1.bf16.msra.mxu1 %v5175_v47  ;;  %v5266_v46 = vld [vmem:[%s7812_s1 + $0x348] ss:$16 sps:$4 sm:$0xff]   ;;  %v5271_v47 = vld [vmem:[%s7812_s1 + $0x364] ss:$16 sps:$4 sm:$0xff]  }
  0x30   :  { %3624 = vmatprep.subr.bf16.mxu0 %v5176_v49  ;;  %4011 = vmatprep.subr.bf16.mxu1 %v5178_v50  ;;  %v5269_v49 = vld [vmem:[%s7812_s1 + $0x360] ss:$16 sps:$4 sm:$0xff]   ;;  %v5272_v50 = vld [vmem:[%s7812_s1 + $0x368] ss:$16 sps:$4 sm:$0xff]  }
  0x33   :  { %3625 = vmatpush1.bf16.msra.mxu0 %v5180_v51  ;;  %4012 = vmatpush1.bf16.msra.mxu1 %v5181_v52  ;;  %v5277_v51 = vld [vmem:[%s7812_s1 + $0x384] ss:$16 sps:$4 sm:$0xff]   ;;  %v5280_v52 = vld [vmem:[%s7812_s1 + $0x38c] ss:$16 sps:$4 sm:$0xff]  }
  0x34   :  { %3626 = vmatprep.subr.bf16.mxu0 %v5182_v53  ;;  %4013 = vmatprep.subr.bf16.mxu1 %v5184_v54  ;;  %v5275_v53 = vld [vmem:[%s7812_s1 + $0x380] ss:$16 sps:$4 sm:$0xff]   ;;  %v5278_v54 = vld [vmem:[%s7812_s1 + $0x388] ss:$16 sps:$4 sm:$0xff]  }
  0x37   :  { %3627 = vmatpush1.bf16.msra.mxu0 %v5186_v55  ;;  %4014 = vmatpush1.bf16.msra.mxu1 %v5187_v56  ;;  %v5283_v55 = vld [vmem:[%s7812_s1 + $0x3a4] ss:$16 sps:$4 sm:$0xff]   ;;  %v5286_v56 = vld [vmem:[%s7812_s1 + $0x3ac] ss:$16 sps:$4 sm:$0xff]  }
  0x38   :  { %3628 = vmatprep.subr.bf16.mxu0 %v5188_v57  ;;  %4015 = vmatprep.subr.bf16.mxu1 %v5190_v58  ;;  %v5281_v57 = vld [vmem:[%s7812_s1 + $0x3a0] ss:$16 sps:$4 sm:$0xff]   ;;  %v5284_v58 = vld [vmem:[%s7812_s1 + $0x3a8] ss:$16 sps:$4 sm:$0xff]  }
  0x3b   :  { %3629 = vmatpush1.bf16.msra.mxu0 %v5192_v59  ;;  %4016 = vmatpush1.bf16.msra.mxu1 %v5193_v60  ;;  %v5289_v59 = vld [vmem:[%s7812_s1 + $0x3c4] ss:$16 sps:$4 sm:$0xff]   ;;  %v5292_v60 = vld [vmem:[%s7812_s1 + $0x3cc] ss:$16 sps:$4 sm:$0xff]  }
  0x3c   :  { %3630 = vmatprep.subr.bf16.mxu0 %v5194_v61  ;;  %4017 = vmatprep.subr.bf16.mxu1 %v5196_v62  ;;  %v5287_v61 = vld [vmem:[%s7812_s1 + $0x3c0] ss:$16 sps:$4 sm:$0xff]   ;;  %v5290_v62 = vld [vmem:[%s7812_s1 + $0x3c8] ss:$16 sps:$4 sm:$0xff]  }
  0x3f   :  { %3631 = vmatpush1.bf16.msra.mxu0 %v5198_v63  ;;  %4018 = vmatpush1.bf16.msra.mxu1 %v5199_v0  ;;  %v5295_v63 = vld [vmem:[%s7812_s1 + $0x3e4] ss:$16 sps:$4 sm:$0xff]   ;;  %v5298_v0 = vld [vmem:[%s7812_s1 + $0x3ec] ss:$16 sps:$4 sm:$0xff]  }
  0x40   :  { %3643 = vmatprep.subr.bf16.mxu0 %v5205_v1  ;;  %4030 = vmatprep.subr.bf16.mxu1 %v5208_v2  ;;  %v5293_v1 = vld [vmem:[%s7812_s1 + $0x3e0] ss:$16 sps:$4 sm:$0xff]   ;;  %v5296_v2 = vld [vmem:[%s7812_s1 + $0x3e8] ss:$16 sps:$4 sm:$0xff]  }
  0x42   :  { %3633 = vmatmul.mubr.bf16.vlgmr.msra.gmra.mrb[0].mxu0 %v5200_v3  ;;  %4020 = vmatmul.mubr.bf16.vlgmr.msra.gmra.mrb[0].mxu1 %v5200_v3  ;;  %v5304_v3 = vld [vmem:[%s7812_s1 + $0x404] ss:$16 sps:$4 sm:$0xff]  }
  0x43   :  { %3644 = vmatpush1.bf16.msra.mxu0 %v5203_v4  ;;  %4031 = vmatpush1.bf16.msra.mxu1 %v5206_v5  ;;  %v5307_v4 = vld [vmem:[%s7812_s1 + $0x40c] ss:$16 sps:$4 sm:$0xff]   ;;  %v5299_v5 = vld [vmem:[%s7813_s0 + $0x8] ss:$72 sps:$4 sm:$0xff]  }
  0x44   :  { %3645 = vmatprep.subr.bf16.mxu0 %v5211_v6  ;;  %4032 = vmatprep.subr.bf16.mxu1 %v5214_v7  ;;  %v5302_v6 = vld [vmem:[%s7812_s1 + $0x400] ss:$16 sps:$4 sm:$0xff]   ;;  %v5305_v7 = vld [vmem:[%s7812_s1 + $0x408] ss:$16 sps:$4 sm:$0xff]  }
  0x45   :  { %3675 = vmatprep.mubr.bf16.mxu0 %v5301_v30  ;;  %4062 = vmatprep.mubr.bf16.mxu1 %v5301_v30  ;;  %v5343_v30 = vld [vmem:[%s7812_s1 + $0x4cc] ss:$16 sps:$4 sm:$0xff]  }
  0x47   :  { %3646 = vmatpush1.bf16.msra.mxu0 %v5209_v8  ;;  %4033 = vmatpush1.bf16.msra.mxu1 %v5212_v9  ;;  %v5310_v8 = vld [vmem:[%s7812_s1 + $0x424] ss:$16 sps:$4 sm:$0xff]   ;;  %v5313_v9 = vld [vmem:[%s7812_s1 + $0x42c] ss:$16 sps:$4 sm:$0xff]  }
  0x48   :  { %3647 = vmatprep.subr.bf16.mxu0 %v5217_v10  ;;  %4034 = vmatprep.subr.bf16.mxu1 %v5220_v11  ;;  %v5308_v10 = vld [vmem:[%s7812_s1 + $0x420] ss:$16 sps:$4 sm:$0xff]   ;;  %v5311_v11 = vld [vmem:[%s7812_s1 + $0x428] ss:$16 sps:$4 sm:$0xff]  }
  0x4b   :  { %3648 = vmatpush1.bf16.msra.mxu0 %v5215_v12  ;;  %4035 = vmatpush1.bf16.msra.mxu1 %v5218_v13  ;;  %v5400_v12 = vld [vmem:[%s7813_s0 + $0x14] ss:$72 sps:$4 sm:$0xff]  }
  0x4c   :  { %3649 = vmatprep.subr.bf16.mxu0 %v5223_v14  ;;  %4036 = vmatprep.subr.bf16.mxu1 %v5226_v15  ;;  %v5316_v13 = vld [vmem:[%s7812_s1 + $0x444] ss:$16 sps:$4 sm:$0xff]   ;;  %v5319_v14 = vld [vmem:[%s7812_s1 + $0x44c] ss:$16 sps:$4 sm:$0xff]   ;;  %v5314_v15 = vld [vmem:[%s7812_s1 + $0x440] ss:$16 sps:$4 sm:$0xff]  }
  0x4f   :  { %3650 = vmatpush1.bf16.msra.mxu0 %v5221_v16  ;;  %4037 = vmatpush1.bf16.msra.mxu1 %v5224_v17  ;;  %v5317_v16 = vld [vmem:[%s7812_s1 + $0x448] ss:$16 sps:$4 sm:$0xff]   ;;  %v5322_v17 = vld [vmem:[%s7812_s1 + $0x464] ss:$16 sps:$4 sm:$0xff]  }
  0x50   :  { %3651 = vmatprep.subr.bf16.mxu0 %v5229_v18  ;;  %4038 = vmatprep.subr.bf16.mxu1 %v5232_v19  ;;  %v5325_v18 = vld [vmem:[%s7812_s1 + $0x46c] ss:$16 sps:$4 sm:$0xff]   ;;  %v5320_v19 = vld [vmem:[%s7812_s1 + $0x460] ss:$16 sps:$4 sm:$0xff]  }
  0x53   :  { %3652 = vmatpush1.bf16.msra.mxu0 %v5227_v20  ;;  %4039 = vmatpush1.bf16.msra.mxu1 %v5230_v21  ;;  %v5323_v20 = vld [vmem:[%s7812_s1 + $0x468] ss:$16 sps:$4 sm:$0xff]   ;;  %v5328_v21 = vld [vmem:[%s7812_s1 + $0x484] ss:$16 sps:$4 sm:$0xff]  }
  0x54   :  { %3653 = vmatprep.subr.bf16.mxu0 %v5235_v22  ;;  %4040 = vmatprep.subr.bf16.mxu1 %v5238_v23  ;;  %v5331_v22 = vld [vmem:[%s7812_s1 + $0x48c] ss:$16 sps:$4 sm:$0xff]   ;;  %v5326_v23 = vld [vmem:[%s7812_s1 + $0x480] ss:$16 sps:$4 sm:$0xff]  }
  0x57   :  { %3654 = vmatpush1.bf16.msra.mxu0 %v5233_v24  ;;  %4041 = vmatpush1.bf16.msra.mxu1 %v5236_v25  ;;  %v5329_v24 = vld [vmem:[%s7812_s1 + $0x488] ss:$16 sps:$4 sm:$0xff]   ;;  %v5334_v25 = vld [vmem:[%s7812_s1 + $0x4a4] ss:$16 sps:$4 sm:$0xff]  }
  0x58   :  { %3655 = vmatprep.subr.bf16.mxu0 %v5241_v26  ;;  %4042 = vmatprep.subr.bf16.mxu1 %v5244_v27  ;;  %v5337_v26 = vld [vmem:[%s7812_s1 + $0x4ac] ss:$16 sps:$4 sm:$0xff]   ;;  %v5332_v27 = vld [vmem:[%s7812_s1 + $0x4a0] ss:$16 sps:$4 sm:$0xff]  }
  0x5b   :  { %3656 = vmatpush1.bf16.msra.mxu0 %v5239_v28  ;;  %4043 = vmatpush1.bf16.msra.mxu1 %v5242_v29  ;;  %v5335_v28 = vld [vmem:[%s7812_s1 + $0x4a8] ss:$16 sps:$4 sm:$0xff]   ;;  %v5340_v29 = vld [vmem:[%s7812_s1 + $0x4c4] ss:$16 sps:$4 sm:$0xff]  }
  0x5c   :  { %3657 = vmatprep.subr.bf16.mxu0 %v5247_v31  ;;  %4044 = vmatprep.subr.bf16.mxu1 %v5250_v32  ;;  %v5338_v31 = vld [vmem:[%s7812_s1 + $0x4c0] ss:$16 sps:$4 sm:$0xff]   ;;  %v5341_v32 = vld [vmem:[%s7812_s1 + $0x4c8] ss:$16 sps:$4 sm:$0xff]  }
  0x5f   :  { %3658 = vmatpush1.bf16.msra.mxu0 %v5245_v33  ;;  %4045 = vmatpush1.bf16.msra.mxu1 %v5248_v34  ;;  %v5346_v33 = vld [vmem:[%s7812_s1 + $0x4e4] ss:$16 sps:$4 sm:$0xff]   ;;  %v5349_v34 = vld [vmem:[%s7812_s1 + $0x4ec] ss:$16 sps:$4 sm:$0xff]  }
  0x60   :  { %3659 = vmatprep.subr.bf16.mxu0 %v5253_v35  ;;  %4046 = vmatprep.subr.bf16.mxu1 %v5256_v36  ;;  %v5344_v35 = vld [vmem:[%s7812_s1 + $0x4e0] ss:$16 sps:$4 sm:$0xff]   ;;  %v5347_v36 = vld [vmem:[%s7812_s1 + $0x4e8] ss:$16 sps:$4 sm:$0xff]  }
  0x63   :  { %3660 = vmatpush1.bf16.msra.mxu0 %v5251_v37  ;;  %4047 = vmatpush1.bf16.msra.mxu1 %v5254_v38  ;;  %v5352_v37 = vld [vmem:[%s7812_s1 + $0x504] ss:$16 sps:$4 sm:$0xff]   ;;  %v5355_v38 = vld [vmem:[%s7812_s1 + $0x50c] ss:$16 sps:$4 sm:$0xff]  }
  0x64   :  { %3661 = vmatprep.subr.bf16.mxu0 %v5259_v39  ;;  %4048 = vmatprep.subr.bf16.mxu1 %v5262_v40  ;;  %v5350_v39 = vld [vmem:[%s7812_s1 + $0x500] ss:$16 sps:$4 sm:$0xff]   ;;  %v5353_v40 = vld [vmem:[%s7812_s1 + $0x508] ss:$16 sps:$4 sm:$0xff]  }
  0x67   :  { %3662 = vmatpush1.bf16.msra.mxu0 %v5257_v41  ;;  %4049 = vmatpush1.bf16.msra.mxu1 %v5260_v42  ;;  %v5358_v41 = vld [vmem:[%s7812_s1 + $0x524] ss:$16 sps:$4 sm:$0xff]   ;;  %v5361_v42 = vld [vmem:[%s7812_s1 + $0x52c] ss:$16 sps:$4 sm:$0xff]  }
  0x68   :  { %3663 = vmatprep.subr.bf16.mxu0 %v5265_v43  ;;  %4050 = vmatprep.subr.bf16.mxu1 %v5268_v44  ;;  %v5356_v43 = vld [vmem:[%s7812_s1 + $0x520] ss:$16 sps:$4 sm:$0xff]   ;;  %v5359_v44 = vld [vmem:[%s7812_s1 + $0x528] ss:$16 sps:$4 sm:$0xff]  }
  0x6b   :  { %3664 = vmatpush1.bf16.msra.mxu0 %v5263_v45  ;;  %4051 = vmatpush1.bf16.msra.mxu1 %v5266_v46  ;;  %v5364_v45 = vld [vmem:[%s7812_s1 + $0x544] ss:$16 sps:$4 sm:$0xff]   ;;  %v5367_v46 = vld [vmem:[%s7812_s1 + $0x54c] ss:$16 sps:$4 sm:$0xff]  }
  0x6c   :  { %3665 = vmatprep.subr.bf16.mxu0 %v5271_v47  ;;  %4052 = vmatprep.subr.bf16.mxu1 %v5274_v48  ;;  %v5362_v47 = vld [vmem:[%s7812_s1 + $0x540] ss:$16 sps:$4 sm:$0xff]   ;;  %v5365_v48 = vld [vmem:[%s7812_s1 + $0x548] ss:$16 sps:$4 sm:$0xff]  }
  0x6f   :  { %3666 = vmatpush1.bf16.msra.mxu0 %v5269_v49  ;;  %4053 = vmatpush1.bf16.msra.mxu1 %v5272_v50  ;;  %v5370_v49 = vld [vmem:[%s7812_s1 + $0x564] ss:$16 sps:$4 sm:$0xff]   ;;  %v5373_v50 = vld [vmem:[%s7812_s1 + $0x56c] ss:$16 sps:$4 sm:$0xff]  }
  0x70   :  { %3667 = vmatprep.subr.bf16.mxu0 %v5277_v51  ;;  %4054 = vmatprep.subr.bf16.mxu1 %v5280_v52  ;;  %v5368_v51 = vld [vmem:[%s7812_s1 + $0x560] ss:$16 sps:$4 sm:$0xff]   ;;  %v5371_v52 = vld [vmem:[%s7812_s1 + $0x568] ss:$16 sps:$4 sm:$0xff]  }
  0x73   :  { %3668 = vmatpush1.bf16.msra.mxu0 %v5275_v53  ;;  %4055 = vmatpush1.bf16.msra.mxu1 %v5278_v54  ;;  %v5376_v53 = vld [vmem:[%s7812_s1 + $0x584] ss:$16 sps:$4 sm:$0xff]   ;;  %v5379_v54 = vld [vmem:[%s7812_s1 + $0x58c] ss:$16 sps:$4 sm:$0xff]  }
  0x74   :  { %3669 = vmatprep.subr.bf16.mxu0 %v5283_v55  ;;  %4056 = vmatprep.subr.bf16.mxu1 %v5286_v56  ;;  %v5374_v55 = vld [vmem:[%s7812_s1 + $0x580] ss:$16 sps:$4 sm:$0xff]   ;;  %v5377_v56 = vld [vmem:[%s7812_s1 + $0x588] ss:$16 sps:$4 sm:$0xff]  }
  0x77   :  { %3670 = vmatpush1.bf16.msra.mxu0 %v5281_v57  ;;  %4057 = vmatpush1.bf16.msra.mxu1 %v5284_v58  ;;  %v5382_v57 = vld [vmem:[%s7812_s1 + $0x5a4] ss:$16 sps:$4 sm:$0xff]   ;;  %v5385_v58 = vld [vmem:[%s7812_s1 + $0x5ac] ss:$16 sps:$4 sm:$0xff]  }
  0x78   :  { %3671 = vmatprep.subr.bf16.mxu0 %v5289_v59  ;;  %4058 = vmatprep.subr.bf16.mxu1 %v5292_v60  ;;  %v5380_v59 = vld [vmem:[%s7812_s1 + $0x5a0] ss:$16 sps:$4 sm:$0xff]   ;;  %v5383_v60 = vld [vmem:[%s7812_s1 + $0x5a8] ss:$16 sps:$4 sm:$0xff]  }
  0x7b   :  { %3672 = vmatpush1.bf16.msra.mxu0 %v5287_v61  ;;  %4059 = vmatpush1.bf16.msra.mxu1 %v5290_v62  ;;  %v5388_v61 = vld [vmem:[%s7812_s1 + $0x5c4] ss:$16 sps:$4 sm:$0xff]   ;;  %v5391_v62 = vld [vmem:[%s7812_s1 + $0x5cc] ss:$16 sps:$4 sm:$0xff]  }
  0x7c   :  { %3673 = vmatprep.subr.bf16.mxu0 %v5295_v63  ;;  %4060 = vmatprep.subr.bf16.mxu1 %v5298_v0  ;;  %v5386_v63 = vld [vmem:[%s7812_s1 + $0x5c0] ss:$16 sps:$4 sm:$0xff]   ;;  %v5389_v0 = vld [vmem:[%s7812_s1 + $0x5c8] ss:$16 sps:$4 sm:$0xff]  }
  0x7f   :  { %3674 = vmatpush1.bf16.msra.mxu0 %v5293_v1  ;;  %4061 = vmatpush1.bf16.msra.mxu1 %v5296_v2  ;;  %v5394_v1 = vld [vmem:[%s7812_s1 + $0x5e4] ss:$16 sps:$4 sm:$0xff]   ;;  %v5397_v2 = vld [vmem:[%s7812_s1 + $0x5ec] ss:$16 sps:$4 sm:$0xff]  }
  0x80   :  { %3686 = vmatprep.subr.bf16.mxu0 %v5304_v3  ;;  %4073 = vmatprep.subr.bf16.mxu1 %v5307_v4  ;;  %v5392_v3 = vld [vmem:[%s7812_s1 + $0x5e0] ss:$16 sps:$4 sm:$0xff]   ;;  %v5395_v4 = vld [vmem:[%s7812_s1 + $0x5e8] ss:$16 sps:$4 sm:$0xff]  }
  0x82   :  { %3676 = vmatmul.mubr.bf16.vlgmr.msra.gmra.mrb[0].mxu0 %v5299_v5  ;;  %4063 = vmatmul.mubr.bf16.vlgmr.msra.gmra.mrb[0].mxu1 %v5299_v5  ;;  %v5403_v5 = vld [vmem:[%s7812_s1 + $0x604] ss:$16 sps:$4 sm:$0xff]  }
  0x83   :  { %3687 = vmatpush1.bf16.msra.mxu0 %v5302_v6  ;;  %4074 = vmatpush1.bf16.msra.mxu1 %v5305_v7  ;;  %v5406_v6 = vld [vmem:[%s7812_s1 + $0x60c] ss:$16 sps:$4 sm:$0xff]   ;;  %v5398_v7 = vld [vmem:[%s7813_s0 + $0x10] ss:$72 sps:$4 sm:$0xff]  }
  0x84   :  { %3688 = vmatprep.subr.bf16.mxu0 %v5310_v8  ;;  %4075 = vmatprep.subr.bf16.mxu1 %v5313_v9  ;;  %v5401_v8 = vld [vmem:[%s7812_s1 + $0x600] ss:$16 sps:$4 sm:$0xff]   ;;  %v5404_v9 = vld [vmem:[%s7812_s1 + $0x608] ss:$16 sps:$4 sm:$0xff]  }
  0x85   :  { %3718 = vmatprep.mubr.bf16.mxu0 %v5400_v12  ;;  %4105 = vmatprep.mubr.bf16.mxu1 %v5400_v12  ;;  %v5499_v12 = vld [vmem:[%s7813_s0 + $0x1c] ss:$72 sps:$4 sm:$0xff]  }
  0x87   :  { %3689 = vmatpush1.bf16.msra.mxu0 %v5308_v10  ;;  %4076 = vmatpush1.bf16.msra.mxu1 %v5311_v11  ;;  %v5409_v10 = vld [vmem:[%s7812_s1 + $0x624] ss:$16 sps:$4 sm:$0xff]   ;;  %v5412_v11 = vld [vmem:[%s7812_s1 + $0x62c] ss:$16 sps:$4 sm:$0xff]  }
  0x88   :  { %3690 = vmatprep.subr.bf16.mxu0 %v5316_v13  ;;  %4077 = vmatprep.subr.bf16.mxu1 %v5319_v14  ;;  %v5407_v13 = vld [vmem:[%s7812_s1 + $0x620] ss:$16 sps:$4 sm:$0xff]   ;;  %v5410_v14 = vld [vmem:[%s7812_s1 + $0x628] ss:$16 sps:$4 sm:$0xff]  }
  0x8b   :  { %3691 = vmatpush1.bf16.msra.mxu0 %v5314_v15  ;;  %4078 = vmatpush1.bf16.msra.mxu1 %v5317_v16  ;;  %v5415_v15 = vld [vmem:[%s7812_s1 + $0x644] ss:$16 sps:$4 sm:$0xff]   ;;  %v5418_v16 = vld [vmem:[%s7812_s1 + $0x64c] ss:$16 sps:$4 sm:$0xff]  }
  0x8c   :  { %3692 = vmatprep.subr.bf16.mxu0 %v5322_v17  ;;  %4079 = vmatprep.subr.bf16.mxu1 %v5325_v18  ;;  %v5413_v17 = vld [vmem:[%s7812_s1 + $0x640] ss:$16 sps:$4 sm:$0xff]   ;;  %v5416_v18 = vld [vmem:[%s7812_s1 + $0x648] ss:$16 sps:$4 sm:$0xff]  }
  0x8f   :  { %3693 = vmatpush1.bf16.msra.mxu0 %v5320_v19  ;;  %4080 = vmatpush1.bf16.msra.mxu1 %v5323_v20  ;;  %v5421_v19 = vld [vmem:[%s7812_s1 + $0x664] ss:$16 sps:$4 sm:$0xff]   ;;  %v5424_v20 = vld [vmem:[%s7812_s1 + $0x66c] ss:$16 sps:$4 sm:$0xff]  }
  0x90   :  { %3694 = vmatprep.subr.bf16.mxu0 %v5328_v21  ;;  %4081 = vmatprep.subr.bf16.mxu1 %v5331_v22  ;;  %v5419_v21 = vld [vmem:[%s7812_s1 + $0x660] ss:$16 sps:$4 sm:$0xff]   ;;  %v5422_v22 = vld [vmem:[%s7812_s1 + $0x668] ss:$16 sps:$4 sm:$0xff]  }
  0x93   :  { %3695 = vmatpush1.bf16.msra.mxu0 %v5326_v23  ;;  %4082 = vmatpush1.bf16.msra.mxu1 %v5329_v24  ;;  %v5427_v23 = vld [vmem:[%s7812_s1 + $0x684] ss:$16 sps:$4 sm:$0xff]   ;;  %v5430_v24 = vld [vmem:[%s7812_s1 + $0x68c] ss:$16 sps:$4 sm:$0xff]  }
  0x94   :  { %3696 = vmatprep.subr.bf16.mxu0 %v5334_v25  ;;  %4083 = vmatprep.subr.bf16.mxu1 %v5337_v26  ;;  %v5425_v25 = vld [vmem:[%s7812_s1 + $0x680] ss:$16 sps:$4 sm:$0xff]   ;;  %v5428_v26 = vld [vmem:[%s7812_s1 + $0x688] ss:$16 sps:$4 sm:$0xff]  }
  0x97   :  { %3697 = vmatpush1.bf16.msra.mxu0 %v5332_v27  ;;  %4084 = vmatpush1.bf16.msra.mxu1 %v5335_v28  ;;  %v5433_v27 = vld [vmem:[%s7812_s1 + $0x6a4] ss:$16 sps:$4 sm:$0xff]   ;;  %v5436_v28 = vld [vmem:[%s7812_s1 + $0x6ac] ss:$16 sps:$4 sm:$0xff]  }
  0x98   :  { %3698 = vmatprep.subr.bf16.mxu0 %v5340_v29  ;;  %4085 = vmatprep.subr.bf16.mxu1 %v5343_v30  ;;  %v5431_v29 = vld [vmem:[%s7812_s1 + $0x6a0] ss:$16 sps:$4 sm:$0xff]   ;;  %v5434_v30 = vld [vmem:[%s7812_s1 + $0x6a8] ss:$16 sps:$4 sm:$0xff]  }
  0x9b   :  { %3699 = vmatpush1.bf16.msra.mxu0 %v5338_v31  ;;  %4086 = vmatpush1.bf16.msra.mxu1 %v5341_v32  ;;  %v5439_v31 = vld [vmem:[%s7812_s1 + $0x6c4] ss:$16 sps:$4 sm:$0xff]   ;;  %v5442_v32 = vld [vmem:[%s7812_s1 + $0x6cc] ss:$16 sps:$4 sm:$0xff]  }
  0x9c   :  { %3700 = vmatprep.subr.bf16.mxu0 %v5346_v33  ;;  %4087 = vmatprep.subr.bf16.mxu1 %v5349_v34  ;;  %v5437_v33 = vld [vmem:[%s7812_s1 + $0x6c0] ss:$16 sps:$4 sm:$0xff]   ;;  %v5440_v34 = vld [vmem:[%s7812_s1 + $0x6c8] ss:$16 sps:$4 sm:$0xff]  }
  0x9f   :  { %3701 = vmatpush1.bf16.msra.mxu0 %v5344_v35  ;;  %4088 = vmatpush1.bf16.msra.mxu1 %v5347_v36  ;;  %v5445_v35 = vld [vmem:[%s7812_s1 + $0x6e4] ss:$16 sps:$4 sm:$0xff]   ;;  %v5448_v36 = vld [vmem:[%s7812_s1 + $0x6ec] ss:$16 sps:$4 sm:$0xff]  }
  0xa0   :  { %3702 = vmatprep.subr.bf16.mxu0 %v5352_v37  ;;  %4089 = vmatprep.subr.bf16.mxu1 %v5355_v38  ;;  %v5443_v37 = vld [vmem:[%s7812_s1 + $0x6e0] ss:$16 sps:$4 sm:$0xff]   ;;  %v5446_v38 = vld [vmem:[%s7812_s1 + $0x6e8] ss:$16 sps:$4 sm:$0xff]  }
  0xa3   :  { %3703 = vmatpush1.bf16.msra.mxu0 %v5350_v39  ;;  %4090 = vmatpush1.bf16.msra.mxu1 %v5353_v40  ;;  %v5451_v39 = vld [vmem:[%s7812_s1 + $0x704] ss:$16 sps:$4 sm:$0xff]   ;;  %v5454_v40 = vld [vmem:[%s7812_s1 + $0x70c] ss:$16 sps:$4 sm:$0xff]  }
  0xa4   :  { %3704 = vmatprep.subr.bf16.mxu0 %v5358_v41  ;;  %4091 = vmatprep.subr.bf16.mxu1 %v5361_v42  ;;  %v5449_v41 = vld [vmem:[%s7812_s1 + $0x700] ss:$16 sps:$4 sm:$0xff]   ;;  %v5452_v42 = vld [vmem:[%s7812_s1 + $0x708] ss:$16 sps:$4 sm:$0xff]  }
  0xa7   :  { %3705 = vmatpush1.bf16.msra.mxu0 %v5356_v43  ;;  %4092 = vmatpush1.bf16.msra.mxu1 %v5359_v44  ;;  %v5457_v43 = vld [vmem:[%s7812_s1 + $0x724] ss:$16 sps:$4 sm:$0xff]   ;;  %v5460_v44 = vld [vmem:[%s7812_s1 + $0x72c] ss:$16 sps:$4 sm:$0xff]  }
  0xa8   :  { %3706 = vmatprep.subr.bf16.mxu0 %v5364_v45  ;;  %4093 = vmatprep.subr.bf16.mxu1 %v5367_v46  ;;  %v5455_v45 = vld [vmem:[%s7812_s1 + $0x720] ss:$16 sps:$4 sm:$0xff]   ;;  %v5458_v46 = vld [vmem:[%s7812_s1 + $0x728] ss:$16 sps:$4 sm:$0xff]  }
  0xab   :  { %3707 = vmatpush1.bf16.msra.mxu0 %v5362_v47  ;;  %4094 = vmatpush1.bf16.msra.mxu1 %v5365_v48  ;;  %v5463_v47 = vld [vmem:[%s7812_s1 + $0x744] ss:$16 sps:$4 sm:$0xff]   ;;  %v5466_v48 = vld [vmem:[%s7812_s1 + $0x74c] ss:$16 sps:$4 sm:$0xff]  }
  0xac   :  { %3708 = vmatprep.subr.bf16.mxu0 %v5370_v49  ;;  %4095 = vmatprep.subr.bf16.mxu1 %v5373_v50  ;;  %v5461_v49 = vld [vmem:[%s7812_s1 + $0x740] ss:$16 sps:$4 sm:$0xff]   ;;  %v5464_v50 = vld [vmem:[%s7812_s1 + $0x748] ss:$16 sps:$4 sm:$0xff]  }
  0xaf   :  { %3709 = vmatpush1.bf16.msra.mxu0 %v5368_v51  ;;  %4096 = vmatpush1.bf16.msra.mxu1 %v5371_v52  ;;  %v5469_v51 = vld [vmem:[%s7812_s1 + $0x764] ss:$16 sps:$4 sm:$0xff]   ;;  %v5472_v52 = vld [vmem:[%s7812_s1 + $0x76c] ss:$16 sps:$4 sm:$0xff]  }
  0xb0   :  { %3710 = vmatprep.subr.bf16.mxu0 %v5376_v53  ;;  %4097 = vmatprep.subr.bf16.mxu1 %v5379_v54  ;;  %v5467_v53 = vld [vmem:[%s7812_s1 + $0x760] ss:$16 sps:$4 sm:$0xff]   ;;  %v5470_v54 = vld [vmem:[%s7812_s1 + $0x768] ss:$16 sps:$4 sm:$0xff]  }
  0xb3   :  { %3711 = vmatpush1.bf16.msra.mxu0 %v5374_v55  ;;  %4098 = vmatpush1.bf16.msra.mxu1 %v5377_v56  ;;  %v5475_v55 = vld [vmem:[%s7812_s1 + $0x784] ss:$16 sps:$4 sm:$0xff]   ;;  %v5478_v56 = vld [vmem:[%s7812_s1 + $0x78c] ss:$16 sps:$4 sm:$0xff]  }
  0xb4   :  { %3712 = vmatprep.subr.bf16.mxu0 %v5382_v57  ;;  %4099 = vmatprep.subr.bf16.mxu1 %v5385_v58  ;;  %v5473_v57 = vld [vmem:[%s7812_s1 + $0x780] ss:$16 sps:$4 sm:$0xff]   ;;  %v5476_v58 = vld [vmem:[%s7812_s1 + $0x788] ss:$16 sps:$4 sm:$0xff]  }
  0xb7   :  { %3713 = vmatpush1.bf16.msra.mxu0 %v5380_v59  ;;  %4100 = vmatpush1.bf16.msra.mxu1 %v5383_v60  ;;  %v5481_v59 = vld [vmem:[%s7812_s1 + $0x7a4] ss:$16 sps:$4 sm:$0xff]   ;;  %v5484_v60 = vld [vmem:[%s7812_s1 + $0x7ac] ss:$16 sps:$4 sm:$0xff]  }
  0xb8   :  { %3714 = vmatprep.subr.bf16.mxu0 %v5388_v61  ;;  %4101 = vmatprep.subr.bf16.mxu1 %v5391_v62  ;;  %v5479_v61 = vld [vmem:[%s7812_s1 + $0x7a0] ss:$16 sps:$4 sm:$0xff]   ;;  %v5482_v62 = vld [vmem:[%s7812_s1 + $0x7a8] ss:$16 sps:$4 sm:$0xff]  }
  0xbb   :  { %3715 = vmatpush1.bf16.msra.mxu0 %v5386_v63  ;;  %4102 = vmatpush1.bf16.msra.mxu1 %v5389_v0  ;;  %v5487_v63 = vld [vmem:[%s7812_s1 + $0x7c4] ss:$16 sps:$4 sm:$0xff]   ;;  %v5490_v0 = vld [vmem:[%s7812_s1 + $0x7cc] ss:$16 sps:$4 sm:$0xff]  }
  0xbc   :  { %3716 = vmatprep.subr.bf16.mxu0 %v5394_v1  ;;  %4103 = vmatprep.subr.bf16.mxu1 %v5397_v2  ;;  %v5485_v1 = vld [vmem:[%s7812_s1 + $0x7c0] ss:$16 sps:$4 sm:$0xff]   ;;  %v5488_v2 = vld [vmem:[%s7812_s1 + $0x7c8] ss:$16 sps:$4 sm:$0xff]  }
  0xbf   :  { %3717 = vmatpush1.bf16.msra.mxu0 %v5392_v3  ;;  %4104 = vmatpush1.bf16.msra.mxu1 %v5395_v4  ;;  %v5493_v3 = vld [vmem:[%s7812_s1 + $0x7e4] ss:$16 sps:$4 sm:$0xff]   ;;  %v5496_v4 = vld [vmem:[%s7812_s1 + $0x7ec] ss:$16 sps:$4 sm:$0xff]  }
  0xc0   :  { %3729 = vmatprep.subr.bf16.mxu0 %v5403_v5  ;;  %4116 = vmatprep.subr.bf16.mxu1 %v5406_v6  ;;  %v5491_v5 = vld [vmem:[%s7812_s1 + $0x7e0] ss:$16 sps:$4 sm:$0xff]   ;;  %v5494_v6 = vld [vmem:[%s7812_s1 + $0x7e8] ss:$16 sps:$4 sm:$0xff]  }
  0xc2   :  { %3719 = vmatmul.mubr.bf16.vlgmr.msra.gmra.mrb[0].mxu0 %v5398_v7  ;;  %4106 = vmatmul.mubr.bf16.vlgmr.msra.gmra.mrb[0].mxu1 %v5398_v7  ;;  %v5502_v7 = vld [vmem:[%s7812_s1 + $0x804] ss:$16 sps:$4 sm:$0xff]  }
  0xc3   :  { %3730 = vmatpush1.bf16.msra.mxu0 %v5401_v8  ;;  %4117 = vmatpush1.bf16.msra.mxu1 %v5404_v9  ;;  %v5505_v8 = vld [vmem:[%s7812_s1 + $0x80c] ss:$16 sps:$4 sm:$0xff]   ;;  %v5497_v9 = vld [vmem:[%s7813_s0 + $0x18] ss:$72 sps:$4 sm:$0xff]  }
  0xc4   :  { %3731 = vmatprep.subr.bf16.mxu0 %v5409_v10  ;;  %4118 = vmatprep.subr.bf16.mxu1 %v5412_v11  ;;  %v5500_v10 = vld [vmem:[%s7812_s1 + $0x800] ss:$16 sps:$4 sm:$0xff]   ;;  %v5503_v11 = vld [vmem:[%s7812_s1 + $0x808] ss:$16 sps:$4 sm:$0xff]  }
  0xc5   :  { %3761 = vmatprep.mubr.bf16.mxu0 %v5499_v12  ;;  %4148 = vmatprep.mubr.bf16.mxu1 %v5499_v12  ;;  %v5508_v12 = vld [vmem:[%s7812_s1 + $0x824] ss:$16 sps:$4 sm:$0xff]  }
  0xc7   :  { %3732 = vmatpush1.bf16.msra.mxu0 %v5407_v13  ;;  %4119 = vmatpush1.bf16.msra.mxu1 %v5410_v14  ;;  %v5511_v13 = vld [vmem:[%s7812_s1 + $0x82c] ss:$16 sps:$4 sm:$0xff]  }
  0xc8   :  { %3733 = vmatprep.subr.bf16.mxu0 %v5415_v15  ;;  %4120 = vmatprep.subr.bf16.mxu1 %v5418_v16  ;;  %v5598_v14 = vld [vmem:[%s7813_s0 + $0x24] ss:$72 sps:$4 sm:$0xff]   ;;  %v5506_v15 = vld [vmem:[%s7812_s1 + $0x820] ss:$16 sps:$4 sm:$0xff]   ;;  %v5509_v16 = vld [vmem:[%s7812_s1 + $0x828] ss:$16 sps:$4 sm:$0xff]  }
  0xcb   :  { %3734 = vmatpush1.bf16.msra.mxu0 %v5413_v17  ;;  %4121 = vmatpush1.bf16.msra.mxu1 %v5416_v18  ;;  %v5514_v17 = vld [vmem:[%s7812_s1 + $0x844] ss:$16 sps:$4 sm:$0xff]   ;;  %v5517_v18 = vld [vmem:[%s7812_s1 + $0x84c] ss:$16 sps:$4 sm:$0xff]  }
  0xcc   :  { %3735 = vmatprep.subr.bf16.mxu0 %v5421_v19  ;;  %4122 = vmatprep.subr.bf16.mxu1 %v5424_v20  ;;  %v5512_v19 = vld [vmem:[%s7812_s1 + $0x840] ss:$16 sps:$4 sm:$0xff]   ;;  %v5515_v20 = vld [vmem:[%s7812_s1 + $0x848] ss:$16 sps:$4 sm:$0xff]  }
  0xcf   :  { %3736 = vmatpush1.bf16.msra.mxu0 %v5419_v21  ;;  %4123 = vmatpush1.bf16.msra.mxu1 %v5422_v22  ;;  %v5520_v21 = vld [vmem:[%s7812_s1 + $0x864] ss:$16 sps:$4 sm:$0xff]   ;;  %v5523_v22 = vld [vmem:[%s7812_s1 + $0x86c] ss:$16 sps:$4 sm:$0xff]  }
  0xd0   :  { %3737 = vmatprep.subr.bf16.mxu0 %v5427_v23  ;;  %4124 = vmatprep.subr.bf16.mxu1 %v5430_v24  ;;  %v5518_v23 = vld [vmem:[%s7812_s1 + $0x860] ss:$16 sps:$4 sm:$0xff]   ;;  %v5521_v24 = vld [vmem:[%s7812_s1 + $0x868] ss:$16 sps:$4 sm:$0xff]  }
  0xd3   :  { %3738 = vmatpush1.bf16.msra.mxu0 %v5425_v25  ;;  %4125 = vmatpush1.bf16.msra.mxu1 %v5428_v26  ;;  %v5526_v25 = vld [vmem:[%s7812_s1 + $0x884] ss:$16 sps:$4 sm:$0xff]   ;;  %v5529_v26 = vld [vmem:[%s7812_s1 + $0x88c] ss:$16 sps:$4 sm:$0xff]  }
  0xd4   :  { %3739 = vmatprep.subr.bf16.mxu0 %v5433_v27  ;;  %4126 = vmatprep.subr.bf16.mxu1 %v5436_v28  ;;  %v5524_v27 = vld [vmem:[%s7812_s1 + $0x880] ss:$16 sps:$4 sm:$0xff]   ;;  %v5527_v28 = vld [vmem:[%s7812_s1 + $0x888] ss:$16 sps:$4 sm:$0xff]  }
  0xd7   :  { %3740 = vmatpush1.bf16.msra.mxu0 %v5431_v29  ;;  %4127 = vmatpush1.bf16.msra.mxu1 %v5434_v30  ;;  %v5532_v29 = vld [vmem:[%s7812_s1 + $0x8a4] ss:$16 sps:$4 sm:$0xff]   ;;  %v5535_v30 = vld [vmem:[%s7812_s1 + $0x8ac] ss:$16 sps:$4 sm:$0xff]  }
  0xd8   :  { %3741 = vmatprep.subr.bf16.mxu0 %v5439_v31  ;;  %4128 = vmatprep.subr.bf16.mxu1 %v5442_v32  ;;  %v5530_v31 = vld [vmem:[%s7812_s1 + $0x8a0] ss:$16 sps:$4 sm:$0xff]   ;;  %v5533_v32 = vld [vmem:[%s7812_s1 + $0x8a8] ss:$16 sps:$4 sm:$0xff]  }
  0xdb   :  { %3742 = vmatpush1.bf16.msra.mxu0 %v5437_v33  ;;  %4129 = vmatpush1.bf16.msra.mxu1 %v5440_v34  ;;  %v5538_v33 = vld [vmem:[%s7812_s1 + $0x8c4] ss:$16 sps:$4 sm:$0xff]   ;;  %v5541_v34 = vld [vmem:[%s7812_s1 + $0x8cc] ss:$16 sps:$4 sm:$0xff]  }
  0xdc   :  { %3743 = vmatprep.subr.bf16.mxu0 %v5445_v35  ;;  %4130 = vmatprep.subr.bf16.mxu1 %v5448_v36  ;;  %v5536_v35 = vld [vmem:[%s7812_s1 + $0x8c0] ss:$16 sps:$4 sm:$0xff]   ;;  %v5539_v36 = vld [vmem:[%s7812_s1 + $0x8c8] ss:$16 sps:$4 sm:$0xff]  }
  0xdf   :  { %3744 = vmatpush1.bf16.msra.mxu0 %v5443_v37  ;;  %4131 = vmatpush1.bf16.msra.mxu1 %v5446_v38  ;;  %v5544_v37 = vld [vmem:[%s7812_s1 + $0x8e4] ss:$16 sps:$4 sm:$0xff]   ;;  %v5547_v38 = vld [vmem:[%s7812_s1 + $0x8ec] ss:$16 sps:$4 sm:$0xff]  }
  0xe0   :  { %3745 = vmatprep.subr.bf16.mxu0 %v5451_v39  ;;  %4132 = vmatprep.subr.bf16.mxu1 %v5454_v40  ;;  %v5542_v39 = vld [vmem:[%s7812_s1 + $0x8e0] ss:$16 sps:$4 sm:$0xff]   ;;  %v5545_v40 = vld [vmem:[%s7812_s1 + $0x8e8] ss:$16 sps:$4 sm:$0xff]  }
  0xe3   :  { %3746 = vmatpush1.bf16.msra.mxu0 %v5449_v41  ;;  %4133 = vmatpush1.bf16.msra.mxu1 %v5452_v42  ;;  %v5550_v41 = vld [vmem:[%s7812_s1 + $0x904] ss:$16 sps:$4 sm:$0xff]   ;;  %v5553_v42 = vld [vmem:[%s7812_s1 + $0x90c] ss:$16 sps:$4 sm:$0xff]  }
  0xe4   :  { %3747 = vmatprep.subr.bf16.mxu0 %v5457_v43  ;;  %4134 = vmatprep.subr.bf16.mxu1 %v5460_v44  ;;  %v5548_v43 = vld [vmem:[%s7812_s1 + $0x900] ss:$16 sps:$4 sm:$0xff]   ;;  %v5551_v44 = vld [vmem:[%s7812_s1 + $0x908] ss:$16 sps:$4 sm:$0xff]  }
  0xe7   :  { %3748 = vmatpush1.bf16.msra.mxu0 %v5455_v45  ;;  %4135 = vmatpush1.bf16.msra.mxu1 %v5458_v46  ;;  %v5556_v45 = vld [vmem:[%s7812_s1 + $0x924] ss:$16 sps:$4 sm:$0xff]   ;;  %v5559_v46 = vld [vmem:[%s7812_s1 + $0x92c] ss:$16 sps:$4 sm:$0xff]  }
  0xe8   :  { %3749 = vmatprep.subr.bf16.mxu0 %v5463_v47  ;;  %4136 = vmatprep.subr.bf16.mxu1 %v5466_v48  ;;  %v5554_v47 = vld [vmem:[%s7812_s1 + $0x920] ss:$16 sps:$4 sm:$0xff]   ;;  %v5557_v48 = vld [vmem:[%s7812_s1 + $0x928] ss:$16 sps:$4 sm:$0xff]  }
  0xeb   :  { %3750 = vmatpush1.bf16.msra.mxu0 %v5461_v49  ;;  %4137 = vmatpush1.bf16.msra.mxu1 %v5464_v50  ;;  %v5562_v49 = vld [vmem:[%s7812_s1 + $0x944] ss:$16 sps:$4 sm:$0xff]   ;;  %v5565_v50 = vld [vmem:[%s7812_s1 + $0x94c] ss:$16 sps:$4 sm:$0xff]  }
  0xec   :  { %3751 = vmatprep.subr.bf16.mxu0 %v5469_v51  ;;  %4138 = vmatprep.subr.bf16.mxu1 %v5472_v52  ;;  %v5560_v51 = vld [vmem:[%s7812_s1 + $0x940] ss:$16 sps:$4 sm:$0xff]   ;;  %v5563_v52 = vld [vmem:[%s7812_s1 + $0x948] ss:$16 sps:$4 sm:$0xff]  }
  0xef   :  { %3752 = vmatpush1.bf16.msra.mxu0 %v5467_v53  ;;  %4139 = vmatpush1.bf16.msra.mxu1 %v5470_v54  ;;  %v5568_v53 = vld [vmem:[%s7812_s1 + $0x964] ss:$16 sps:$4 sm:$0xff]   ;;  %v5571_v54 = vld [vmem:[%s7812_s1 + $0x96c] ss:$16 sps:$4 sm:$0xff]  }
  0xf0   :  { %3753 = vmatprep.subr.bf16.mxu0 %v5475_v55  ;;  %4140 = vmatprep.subr.bf16.mxu1 %v5478_v56  ;;  %v5566_v55 = vld [vmem:[%s7812_s1 + $0x960] ss:$16 sps:$4 sm:$0xff]   ;;  %v5569_v56 = vld [vmem:[%s7812_s1 + $0x968] ss:$16 sps:$4 sm:$0xff]  }
  0xf3   :  { %3754 = vmatpush1.bf16.msra.mxu0 %v5473_v57  ;;  %4141 = vmatpush1.bf16.msra.mxu1 %v5476_v58  ;;  %v5574_v57 = vld [vmem:[%s7812_s1 + $0x984] ss:$16 sps:$4 sm:$0xff]   ;;  %v5577_v58 = vld [vmem:[%s7812_s1 + $0x98c] ss:$16 sps:$4 sm:$0xff]  }
  0xf4   :  { %3755 = vmatprep.subr.bf16.mxu0 %v5481_v59  ;;  %4142 = vmatprep.subr.bf16.mxu1 %v5484_v60  ;;  %v5572_v59 = vld [vmem:[%s7812_s1 + $0x980] ss:$16 sps:$4 sm:$0xff]   ;;  %v5575_v60 = vld [vmem:[%s7812_s1 + $0x988] ss:$16 sps:$4 sm:$0xff]  }
  0xf7   :  { %3756 = vmatpush1.bf16.msra.mxu0 %v5479_v61  ;;  %4143 = vmatpush1.bf16.msra.mxu1 %v5482_v62  ;;  %v5580_v61 = vld [vmem:[%s7812_s1 + $0x9a4] ss:$16 sps:$4 sm:$0xff]   ;;  %v5583_v62 = vld [vmem:[%s7812_s1 + $0x9ac] ss:$16 sps:$4 sm:$0xff]  }
  0xf8   :  { %3757 = vmatprep.subr.bf16.mxu0 %v5487_v63  ;;  %4144 = vmatprep.subr.bf16.mxu1 %v5490_v0  ;;  %v5578_v63 = vld [vmem:[%s7812_s1 + $0x9a0] ss:$16 sps:$4 sm:$0xff]   ;;  %v5581_v0 = vld [vmem:[%s7812_s1 + $0x9a8] ss:$16 sps:$4 sm:$0xff]  }
  0xfb   :  { %3758 = vmatpush1.bf16.msra.mxu0 %v5485_v1  ;;  %4145 = vmatpush1.bf16.msra.mxu1 %v5488_v2  ;;  %v5586_v1 = vld [vmem:[%s7812_s1 + $0x9c4] ss:$16 sps:$4 sm:$0xff]   ;;  %v5589_v2 = vld [vmem:[%s7812_s1 + $0x9cc] ss:$16 sps:$4 sm:$0xff]  }
  0xfc   :  { %3759 = vmatprep.subr.bf16.mxu0 %v5493_v3  ;;  %4146 = vmatprep.subr.bf16.mxu1 %v5496_v4  ;;  %v5584_v3 = vld [vmem:[%s7812_s1 + $0x9c0] ss:$16 sps:$4 sm:$0xff]   ;;  %v5587_v4 = vld [vmem:[%s7812_s1 + $0x9c8] ss:$16 sps:$4 sm:$0xff]  }
  0xff   :  { %3760 = vmatpush1.bf16.msra.mxu0 %v5491_v5  ;;  %4147 = vmatpush1.bf16.msra.mxu1 %v5494_v6  ;;  %v5592_v5 = vld [vmem:[%s7812_s1 + $0x9e4] ss:$16 sps:$4 sm:$0xff]   ;;  %v5595_v6 = vld [vmem:[%s7812_s1 + $0x9ec] ss:$16 sps:$4 sm:$0xff]  }
 0x100   :  { %3772 = vmatprep.subr.bf16.mxu0 %v5502_v7  ;;  %4159 = vmatprep.subr.bf16.mxu1 %v5505_v8  ;;  %v5590_v7 = vld [vmem:[%s7812_s1 + $0x9e0] ss:$16 sps:$4 sm:$0xff]   ;;  %v5593_v8 = vld [vmem:[%s7812_s1 + $0x9e8] ss:$16 sps:$4 sm:$0xff]  }
 0x102   :  { %3762 = vmatmul.mubr.bf16.vlgmr.msra.gmra.mrb[0].mxu0 %v5497_v9  ;;  %4149 = vmatmul.mubr.bf16.vlgmr.msra.gmra.mrb[0].mxu1 %v5497_v9  ;;  %v5596_v9 = vld [vmem:[%s7813_s0 + $0x20] ss:$72 sps:$4 sm:$0xff]  }
 0x103   :  { %3773 = vmatpush1.bf16.msra.mxu0 %v5500_v10  ;;  %4160 = vmatpush1.bf16.msra.mxu1 %v5503_v11  ;;  %v5601_v10 = vld [vmem:[%s7812_s1 + $0xa04] ss:$16 sps:$4 sm:$0xff]   ;;  %v5604_v11 = vld [vmem:[%s7812_s1 + $0xa0c] ss:$16 sps:$4 sm:$0xff]  }
 0x104   :  { %3774 = vmatprep.subr.bf16.mxu0 %v5508_v12  ;;  %4161 = vmatprep.subr.bf16.mxu1 %v5511_v13  ;;  %v5599_v12 = vld [vmem:[%s7812_s1 + $0xa00] ss:$16 sps:$4 sm:$0xff]   ;;  %v5602_v13 = vld [vmem:[%s7812_s1 + $0xa08] ss:$16 sps:$4 sm:$0xff]  }
 0x105   :  { %3804 = vmatprep.mubr.bf16.mxu0 %v5598_v14  ;;  %4191 = vmatprep.mubr.bf16.mxu1 %v5598_v14  ;;  %v5607_v14 = vld [vmem:[%s7812_s1 + $0xa24] ss:$16 sps:$4 sm:$0xff]  }
 0x107   :  { %3775 = vmatpush1.bf16.msra.mxu0 %v5506_v15  ;;  %4162 = vmatpush1.bf16.msra.mxu1 %v5509_v16  ;;  %v5610_v15 = vld [vmem:[%s7812_s1 + $0xa2c] ss:$16 sps:$4 sm:$0xff]  }
 0x108   :  { %3776 = vmatprep.subr.bf16.mxu0 %v5514_v17  ;;  %4163 = vmatprep.subr.bf16.mxu1 %v5517_v18  ;;  %v5697_v16 = vld [vmem:[%s7813_s0 + $0x2c] ss:$72 sps:$4 sm:$0xff]   ;;  %v5605_v17 = vld [vmem:[%s7812_s1 + $0xa20] ss:$16 sps:$4 sm:$0xff]   ;;  %v5608_v18 = vld [vmem:[%s7812_s1 + $0xa28] ss:$16 sps:$4 sm:$0xff]  }
 0x10b   :  { %3777 = vmatpush1.bf16.msra.mxu0 %v5512_v19  ;;  %4164 = vmatpush1.bf16.msra.mxu1 %v5515_v20  ;;  %v5613_v19 = vld [vmem:[%s7812_s1 + $0xa44] ss:$16 sps:$4 sm:$0xff]   ;;  %v5616_v20 = vld [vmem:[%s7812_s1 + $0xa4c] ss:$16 sps:$4 sm:$0xff]  }
 0x10c   :  { %3778 = vmatprep.subr.bf16.mxu0 %v5520_v21  ;;  %4165 = vmatprep.subr.bf16.mxu1 %v5523_v22  ;;  %v5611_v21 = vld [vmem:[%s7812_s1 + $0xa40] ss:$16 sps:$4 sm:$0xff]   ;;  %v5614_v22 = vld [vmem:[%s7812_s1 + $0xa48] ss:$16 sps:$4 sm:$0xff]  }
 0x10f   :  { %3779 = vmatpush1.bf16.msra.mxu0 %v5518_v23  ;;  %4166 = vmatpush1.bf16.msra.mxu1 %v5521_v24  ;;  %v5619_v23 = vld [vmem:[%s7812_s1 + $0xa64] ss:$16 sps:$4 sm:$0xff]   ;;  %v5622_v24 = vld [vmem:[%s7812_s1 + $0xa6c] ss:$16 sps:$4 sm:$0xff]  }
 0x110   :  { %3780 = vmatprep.subr.bf16.mxu0 %v5526_v25  ;;  %4167 = vmatprep.subr.bf16.mxu1 %v5529_v26  ;;  %v5617_v25 = vld [vmem:[%s7812_s1 + $0xa60] ss:$16 sps:$4 sm:$0xff]   ;;  %v5620_v26 = vld [vmem:[%s7812_s1 + $0xa68] ss:$16 sps:$4 sm:$0xff]  }
 0x113   :  { %3781 = vmatpush1.bf16.msra.mxu0 %v5524_v27  ;;  %4168 = vmatpush1.bf16.msra.mxu1 %v5527_v28  ;;  %v5625_v27 = vld [vmem:[%s7812_s1 + $0xa84] ss:$16 sps:$4 sm:$0xff]   ;;  %v5628_v28 = vld [vmem:[%s7812_s1 + $0xa8c] ss:$16 sps:$4 sm:$0xff]  }
 0x114   :  { %3782 = vmatprep.subr.bf16.mxu0 %v5532_v29  ;;  %4169 = vmatprep.subr.bf16.mxu1 %v5535_v30  ;;  %v5623_v29 = vld [vmem:[%s7812_s1 + $0xa80] ss:$16 sps:$4 sm:$0xff]   ;;  %v5626_v30 = vld [vmem:[%s7812_s1 + $0xa88] ss:$16 sps:$4 sm:$0xff]  }
 0x117   :  { %3783 = vmatpush1.bf16.msra.mxu0 %v5530_v31  ;;  %4170 = vmatpush1.bf16.msra.mxu1 %v5533_v32  ;;  %v5631_v31 = vld [vmem:[%s7812_s1 + $0xaa4] ss:$16 sps:$4 sm:$0xff]   ;;  %v5634_v32 = vld [vmem:[%s7812_s1 + $0xaac] ss:$16 sps:$4 sm:$0xff]  }
 0x118   :  { %3784 = vmatprep.subr.bf16.mxu0 %v5538_v33  ;;  %4171 = vmatprep.subr.bf16.mxu1 %v5541_v34  ;;  %v5629_v33 = vld [vmem:[%s7812_s1 + $0xaa0] ss:$16 sps:$4 sm:$0xff]   ;;  %v5632_v34 = vld [vmem:[%s7812_s1 + $0xaa8] ss:$16 sps:$4 sm:$0xff]  }
 0x11b   :  { %3785 = vmatpush1.bf16.msra.mxu0 %v5536_v35  ;;  %4172 = vmatpush1.bf16.msra.mxu1 %v5539_v36  ;;  %v5637_v35 = vld [vmem:[%s7812_s1 + $0xac4] ss:$16 sps:$4 sm:$0xff]   ;;  %v5640_v36 = vld [vmem:[%s7812_s1 + $0xacc] ss:$16 sps:$4 sm:$0xff]  }
 0x11c   :  { %3786 = vmatprep.subr.bf16.mxu0 %v5544_v37  ;;  %4173 = vmatprep.subr.bf16.mxu1 %v5547_v38  ;;  %v5635_v37 = vld [vmem:[%s7812_s1 + $0xac0] ss:$16 sps:$4 sm:$0xff]   ;;  %v5638_v38 = vld [vmem:[%s7812_s1 + $0xac8] ss:$16 sps:$4 sm:$0xff]  }
 0x11f   :  { %3787 = vmatpush1.bf16.msra.mxu0 %v5542_v39  ;;  %4174 = vmatpush1.bf16.msra.mxu1 %v5545_v40  ;;  %v5643_v39 = vld [vmem:[%s7812_s1 + $0xae4] ss:$16 sps:$4 sm:$0xff]   ;;  %v5646_v40 = vld [vmem:[%s7812_s1 + $0xaec] ss:$16 sps:$4 sm:$0xff]  }
 0x120   :  { %3788 = vmatprep.subr.bf16.mxu0 %v5550_v41  ;;  %4175 = vmatprep.subr.bf16.mxu1 %v5553_v42  ;;  %v5641_v41 = vld [vmem:[%s7812_s1 + $0xae0] ss:$16 sps:$4 sm:$0xff]   ;;  %v5644_v42 = vld [vmem:[%s7812_s1 + $0xae8] ss:$16 sps:$4 sm:$0xff]  }
 0x123   :  { %3789 = vmatpush1.bf16.msra.mxu0 %v5548_v43  ;;  %4176 = vmatpush1.bf16.msra.mxu1 %v5551_v44  ;;  %v5649_v43 = vld [vmem:[%s7812_s1 + $0xb04] ss:$16 sps:$4 sm:$0xff]   ;;  %v5652_v44 = vld [vmem:[%s7812_s1 + $0xb0c] ss:$16 sps:$4 sm:$0xff]  }
 0x124   :  { %3790 = vmatprep.subr.bf16.mxu0 %v5556_v45  ;;  %4177 = vmatprep.subr.bf16.mxu1 %v5559_v46  ;;  %v5647_v45 = vld [vmem:[%s7812_s1 + $0xb00] ss:$16 sps:$4 sm:$0xff]   ;;  %v5650_v46 = vld [vmem:[%s7812_s1 + $0xb08] ss:$16 sps:$4 sm:$0xff]  }
 0x127   :  { %3791 = vmatpush1.bf16.msra.mxu0 %v5554_v47  ;;  %4178 = vmatpush1.bf16.msra.mxu1 %v5557_v48  ;;  %v5655_v47 = vld [vmem:[%s7812_s1 + $0xb24] ss:$16 sps:$4 sm:$0xff]   ;;  %v5658_v48 = vld [vmem:[%s7812_s1 + $0xb2c] ss:$16 sps:$4 sm:$0xff]  }
 0x128   :  { %3792 = vmatprep.subr.bf16.mxu0 %v5562_v49  ;;  %4179 = vmatprep.subr.bf16.mxu1 %v5565_v50  ;;  %v5653_v49 = vld [vmem:[%s7812_s1 + $0xb20] ss:$16 sps:$4 sm:$0xff]   ;;  %v5656_v50 = vld [vmem:[%s7812_s1 + $0xb28] ss:$16 sps:$4 sm:$0xff]  }
 0x12b   :  { %3793 = vmatpush1.bf16.msra.mxu0 %v5560_v51  ;;  %4180 = vmatpush1.bf16.msra.mxu1 %v5563_v52  ;;  %v5661_v51 = vld [vmem:[%s7812_s1 + $0xb44] ss:$16 sps:$4 sm:$0xff]   ;;  %v5664_v52 = vld [vmem:[%s7812_s1 + $0xb4c] ss:$16 sps:$4 sm:$0xff]  }
 0x12c   :  { %3794 = vmatprep.subr.bf16.mxu0 %v5568_v53  ;;  %4181 = vmatprep.subr.bf16.mxu1 %v5571_v54  ;;  %v5659_v53 = vld [vmem:[%s7812_s1 + $0xb40] ss:$16 sps:$4 sm:$0xff]   ;;  %v5662_v54 = vld [vmem:[%s7812_s1 + $0xb48] ss:$16 sps:$4 sm:$0xff]  }
 0x12f   :  { %3795 = vmatpush1.bf16.msra.mxu0 %v5566_v55  ;;  %4182 = vmatpush1.bf16.msra.mxu1 %v5569_v56  ;;  %v5667_v55 = vld [vmem:[%s7812_s1 + $0xb64] ss:$16 sps:$4 sm:$0xff]   ;;  %v5670_v56 = vld [vmem:[%s7812_s1 + $0xb6c] ss:$16 sps:$4 sm:$0xff]  }
 0x130   :  { %3796 = vmatprep.subr.bf16.mxu0 %v5574_v57  ;;  %4183 = vmatprep.subr.bf16.mxu1 %v5577_v58  ;;  %v5665_v57 = vld [vmem:[%s7812_s1 + $0xb60] ss:$16 sps:$4 sm:$0xff]   ;;  %v5668_v58 = vld [vmem:[%s7812_s1 + $0xb68] ss:$16 sps:$4 sm:$0xff]  }
 0x133   :  { %3797 = vmatpush1.bf16.msra.mxu0 %v5572_v59  ;;  %4184 = vmatpush1.bf16.msra.mxu1 %v5575_v60  ;;  %v5673_v59 = vld [vmem:[%s7812_s1 + $0xb84] ss:$16 sps:$4 sm:$0xff]   ;;  %v5676_v60 = vld [vmem:[%s7812_s1 + $0xb8c] ss:$16 sps:$4 sm:$0xff]  }
 0x134   :  { %3798 = vmatprep.subr.bf16.mxu0 %v5580_v61  ;;  %4185 = vmatprep.subr.bf16.mxu1 %v5583_v62  ;;  %v5671_v61 = vld [vmem:[%s7812_s1 + $0xb80] ss:$16 sps:$4 sm:$0xff]   ;;  %v5674_v62 = vld [vmem:[%s7812_s1 + $0xb88] ss:$16 sps:$4 sm:$0xff]  }
 0x137   :  { %3799 = vmatpush1.bf16.msra.mxu0 %v5578_v63  ;;  %4186 = vmatpush1.bf16.msra.mxu1 %v5581_v0  ;;  %v5679_v63 = vld [vmem:[%s7812_s1 + $0xba4] ss:$16 sps:$4 sm:$0xff]   ;;  %v5682_v0 = vld [vmem:[%s7812_s1 + $0xbac] ss:$16 sps:$4 sm:$0xff]  }
 0x138   :  { %3800 = vmatprep.subr.bf16.mxu0 %v5586_v1  ;;  %4187 = vmatprep.subr.bf16.mxu1 %v5589_v2  ;;  %v5677_v1 = vld [vmem:[%s7812_s1 + $0xba0] ss:$16 sps:$4 sm:$0xff]   ;;  %v5680_v2 = vld [vmem:[%s7812_s1 + $0xba8] ss:$16 sps:$4 sm:$0xff]  }
 0x13b   :  { %3801 = vmatpush1.bf16.msra.mxu0 %v5584_v3  ;;  %4188 = vmatpush1.bf16.msra.mxu1 %v5587_v4  ;;  %v5685_v3 = vld [vmem:[%s7812_s1 + $0xbc4] ss:$16 sps:$4 sm:$0xff]   ;;  %v5688_v4 = vld [vmem:[%s7812_s1 + $0xbcc] ss:$16 sps:$4 sm:$0xff]  }
 0x13c   :  { %3802 = vmatprep.subr.bf16.mxu0 %v5592_v5  ;;  %4189 = vmatprep.subr.bf16.mxu1 %v5595_v6  ;;  %v5683_v5 = vld [vmem:[%s7812_s1 + $0xbc0] ss:$16 sps:$4 sm:$0xff]   ;;  %v5686_v6 = vld [vmem:[%s7812_s1 + $0xbc8] ss:$16 sps:$4 sm:$0xff]  }
 0x13f   :  { %3803 = vmatpush1.bf16.msra.mxu0 %v5590_v7  ;;  %4190 = vmatpush1.bf16.msra.mxu1 %v5593_v8  ;;  %v5691_v7 = vld [vmem:[%s7812_s1 + $0xbe4] ss:$16 sps:$4 sm:$0xff]   ;;  %v5694_v8 = vld [vmem:[%s7812_s1 + $0xbec] ss:$16 sps:$4 sm:$0xff]  }
 0x140   :  { %3815 = vmatprep.subr.bf16.mxu0 %v5601_v10  ;;  %4202 = vmatprep.subr.bf16.mxu1 %v5604_v11  ;;  %v5692_v10 = vld [vmem:[%s7812_s1 + $0xbe8] ss:$16 sps:$4 sm:$0xff]   ;;  %v5700_v11 = vld [vmem:[%s7812_s1 + $0xc04] ss:$16 sps:$4 sm:$0xff]  }
 0x142   :  { %3805 = vmatmul.mubr.bf16.vlgmr.msra.gmra.mrb[0].mxu0 %v5596_v9  ;;  %4192 = vmatmul.mubr.bf16.vlgmr.msra.gmra.mrb[0].mxu1 %v5596_v9  ;;  %v5689_v9 = vld [vmem:[%s7812_s1 + $0xbe0] ss:$16 sps:$4 sm:$0xff]  }
 0x143   :  { %3816 = vmatpush1.bf16.msra.mxu0 %v5599_v12  ;;  %4203 = vmatpush1.bf16.msra.mxu1 %v5602_v13  ;;  %v5703_v12 = vld [vmem:[%s7812_s1 + $0xc0c] ss:$16 sps:$4 sm:$0xff]   ;;  %v5695_v13 = vld [vmem:[%s7813_s0 + $0x28] ss:$72 sps:$4 sm:$0xff]  }
 0x144   :  { %3817 = vmatprep.subr.bf16.mxu0 %v5607_v14  ;;  %4204 = vmatprep.subr.bf16.mxu1 %v5610_v15  ;;  %v5698_v14 = vld [vmem:[%s7812_s1 + $0xc00] ss:$16 sps:$4 sm:$0xff]   ;;  %v5701_v15 = vld [vmem:[%s7812_s1 + $0xc08] ss:$16 sps:$4 sm:$0xff]  }
 0x145   :  { %3847 = vmatprep.mubr.bf16.mxu0 %v5697_v16  ;;  %4234 = vmatprep.mubr.bf16.mxu1 %v5697_v16  ;;  %v5706_v16 = vld [vmem:[%s7812_s1 + $0xc24] ss:$16 sps:$4 sm:$0xff]  }
 0x147   :  { %3818 = vmatpush1.bf16.msra.mxu0 %v5605_v17  ;;  %4205 = vmatpush1.bf16.msra.mxu1 %v5608_v18  ;;  %v5709_v17 = vld [vmem:[%s7812_s1 + $0xc2c] ss:$16 sps:$4 sm:$0xff]  }
 0x148   :  { %3819 = vmatprep.subr.bf16.mxu0 %v5613_v19  ;;  %4206 = vmatprep.subr.bf16.mxu1 %v5616_v20  ;;  %v5796_v18 = vld [vmem:[%s7813_s0 + $0x34] ss:$72 sps:$4 sm:$0xff]   ;;  %v5704_v19 = vld [vmem:[%s7812_s1 + $0xc20] ss:$16 sps:$4 sm:$0xff]   ;;  %v5707_v20 = vld [vmem:[%s7812_s1 + $0xc28] ss:$16 sps:$4 sm:$0xff]  }
 0x14b   :  { %3820 = vmatpush1.bf16.msra.mxu0 %v5611_v21  ;;  %4207 = vmatpush1.bf16.msra.mxu1 %v5614_v22  ;;  %v5712_v21 = vld [vmem:[%s7812_s1 + $0xc44] ss:$16 sps:$4 sm:$0xff]   ;;  %v5715_v22 = vld [vmem:[%s7812_s1 + $0xc4c] ss:$16 sps:$4 sm:$0xff]  }
 0x14c   :  { %3821 = vmatprep.subr.bf16.mxu0 %v5619_v23  ;;  %4208 = vmatprep.subr.bf16.mxu1 %v5622_v24  ;;  %v5710_v23 = vld [vmem:[%s7812_s1 + $0xc40] ss:$16 sps:$4 sm:$0xff]   ;;  %v5713_v24 = vld [vmem:[%s7812_s1 + $0xc48] ss:$16 sps:$4 sm:$0xff]  }
 0x14f   :  { %3822 = vmatpush1.bf16.msra.mxu0 %v5617_v25  ;;  %4209 = vmatpush1.bf16.msra.mxu1 %v5620_v26  ;;  %v5718_v25 = vld [vmem:[%s7812_s1 + $0xc64] ss:$16 sps:$4 sm:$0xff]   ;;  %v5721_v26 = vld [vmem:[%s7812_s1 + $0xc6c] ss:$16 sps:$4 sm:$0xff]  }
 0x150   :  { %3823 = vmatprep.subr.bf16.mxu0 %v5625_v27  ;;  %4210 = vmatprep.subr.bf16.mxu1 %v5628_v28  ;;  %v5716_v27 = vld [vmem:[%s7812_s1 + $0xc60] ss:$16 sps:$4 sm:$0xff]   ;;  %v5719_v28 = vld [vmem:[%s7812_s1 + $0xc68] ss:$16 sps:$4 sm:$0xff]  }
 0x153   :  { %3824 = vmatpush1.bf16.msra.mxu0 %v5623_v29  ;;  %4211 = vmatpush1.bf16.msra.mxu1 %v5626_v30  ;;  %v5724_v29 = vld [vmem:[%s7812_s1 + $0xc84] ss:$16 sps:$4 sm:$0xff]   ;;  %v5727_v30 = vld [vmem:[%s7812_s1 + $0xc8c] ss:$16 sps:$4 sm:$0xff]  }
 0x154   :  { %3825 = vmatprep.subr.bf16.mxu0 %v5631_v31  ;;  %4212 = vmatprep.subr.bf16.mxu1 %v5634_v32  ;;  %v5722_v31 = vld [vmem:[%s7812_s1 + $0xc80] ss:$16 sps:$4 sm:$0xff]   ;;  %v5725_v32 = vld [vmem:[%s7812_s1 + $0xc88] ss:$16 sps:$4 sm:$0xff]  }
 0x157   :  { %3826 = vmatpush1.bf16.msra.mxu0 %v5629_v33  ;;  %4213 = vmatpush1.bf16.msra.mxu1 %v5632_v34  ;;  %v5730_v33 = vld [vmem:[%s7812_s1 + $0xca4] ss:$16 sps:$4 sm:$0xff]   ;;  %v5733_v34 = vld [vmem:[%s7812_s1 + $0xcac] ss:$16 sps:$4 sm:$0xff]  }
 0x158   :  { %3827 = vmatprep.subr.bf16.mxu0 %v5637_v35  ;;  %4214 = vmatprep.subr.bf16.mxu1 %v5640_v36  ;;  %v5728_v35 = vld [vmem:[%s7812_s1 + $0xca0] ss:$16 sps:$4 sm:$0xff]   ;;  %v5731_v36 = vld [vmem:[%s7812_s1 + $0xca8] ss:$16 sps:$4 sm:$0xff]  }
 0x15b   :  { %3828 = vmatpush1.bf16.msra.mxu0 %v5635_v37  ;;  %4215 = vmatpush1.bf16.msra.mxu1 %v5638_v38  ;;  %v5736_v37 = vld [vmem:[%s7812_s1 + $0xcc4] ss:$16 sps:$4 sm:$0xff]   ;;  %v5739_v38 = vld [vmem:[%s7812_s1 + $0xccc] ss:$16 sps:$4 sm:$0xff]  }
 0x15c   :  { %3829 = vmatprep.subr.bf16.mxu0 %v5643_v39  ;;  %4216 = vmatprep.subr.bf16.mxu1 %v5646_v40  ;;  %v5734_v39 = vld [vmem:[%s7812_s1 + $0xcc0] ss:$16 sps:$4 sm:$0xff]   ;;  %v5737_v40 = vld [vmem:[%s7812_s1 + $0xcc8] ss:$16 sps:$4 sm:$0xff]  }
 0x15f   :  { %3830 = vmatpush1.bf16.msra.mxu0 %v5641_v41  ;;  %4217 = vmatpush1.bf16.msra.mxu1 %v5644_v42  ;;  %v5742_v41 = vld [vmem:[%s7812_s1 + $0xce4] ss:$16 sps:$4 sm:$0xff]   ;;  %v5745_v42 = vld [vmem:[%s7812_s1 + $0xcec] ss:$16 sps:$4 sm:$0xff]  }
 0x160   :  { %3831 = vmatprep.subr.bf16.mxu0 %v5649_v43  ;;  %4218 = vmatprep.subr.bf16.mxu1 %v5652_v44  ;;  %v5740_v43 = vld [vmem:[%s7812_s1 + $0xce0] ss:$16 sps:$4 sm:$0xff]   ;;  %v5743_v44 = vld [vmem:[%s7812_s1 + $0xce8] ss:$16 sps:$4 sm:$0xff]  }
 0x163   :  { %3832 = vmatpush1.bf16.msra.mxu0 %v5647_v45  ;;  %4219 = vmatpush1.bf16.msra.mxu1 %v5650_v46  ;;  %v5748_v45 = vld [vmem:[%s7812_s1 + $0xd04] ss:$16 sps:$4 sm:$0xff]   ;;  %v5751_v46 = vld [vmem:[%s7812_s1 + $0xd0c] ss:$16 sps:$4 sm:$0xff]  }
 0x164   :  { %3833 = vmatprep.subr.bf16.mxu0 %v5655_v47  ;;  %4220 = vmatprep.subr.bf16.mxu1 %v5658_v48  ;;  %v5746_v47 = vld [vmem:[%s7812_s1 + $0xd00] ss:$16 sps:$4 sm:$0xff]   ;;  %v5749_v48 = vld [vmem:[%s7812_s1 + $0xd08] ss:$16 sps:$4 sm:$0xff]  }
 0x167   :  { %3834 = vmatpush1.bf16.msra.mxu0 %v5653_v49  ;;  %4221 = vmatpush1.bf16.msra.mxu1 %v5656_v50  ;;  %v5754_v49 = vld [vmem:[%s7812_s1 + $0xd24] ss:$16 sps:$4 sm:$0xff]   ;;  %v5757_v50 = vld [vmem:[%s7812_s1 + $0xd2c] ss:$16 sps:$4 sm:$0xff]  }
 0x168   :  { %3835 = vmatprep.subr.bf16.mxu0 %v5661_v51  ;;  %4222 = vmatprep.subr.bf16.mxu1 %v5664_v52  ;;  %v5752_v51 = vld [vmem:[%s7812_s1 + $0xd20] ss:$16 sps:$4 sm:$0xff]   ;;  %v5755_v52 = vld [vmem:[%s7812_s1 + $0xd28] ss:$16 sps:$4 sm:$0xff]  }
 0x16b   :  { %3836 = vmatpush1.bf16.msra.mxu0 %v5659_v53  ;;  %4223 = vmatpush1.bf16.msra.mxu1 %v5662_v54  ;;  %v5760_v53 = vld [vmem:[%s7812_s1 + $0xd44] ss:$16 sps:$4 sm:$0xff]   ;;  %v5763_v54 = vld [vmem:[%s7812_s1 + $0xd4c] ss:$16 sps:$4 sm:$0xff]  }
 0x16c   :  { %3837 = vmatprep.subr.bf16.mxu0 %v5667_v55  ;;  %4224 = vmatprep.subr.bf16.mxu1 %v5670_v56  ;;  %v5758_v55 = vld [vmem:[%s7812_s1 + $0xd40] ss:$16 sps:$4 sm:$0xff]   ;;  %v5761_v56 = vld [vmem:[%s7812_s1 + $0xd48] ss:$16 sps:$4 sm:$0xff]  }
 0x16f   :  { %3838 = vmatpush1.bf16.msra.mxu0 %v5665_v57  ;;  %4225 = vmatpush1.bf16.msra.mxu1 %v5668_v58  ;;  %v5766_v57 = vld [vmem:[%s7812_s1 + $0xd64] ss:$16 sps:$4 sm:$0xff]   ;;  %v5769_v58 = vld [vmem:[%s7812_s1 + $0xd6c] ss:$16 sps:$4 sm:$0xff]  }
 0x170   :  { %3839 = vmatprep.subr.bf16.mxu0 %v5673_v59  ;;  %4226 = vmatprep.subr.bf16.mxu1 %v5676_v60  ;;  %v5764_v59 = vld [vmem:[%s7812_s1 + $0xd60] ss:$16 sps:$4 sm:$0xff]   ;;  %v5767_v60 = vld [vmem:[%s7812_s1 + $0xd68] ss:$16 sps:$4 sm:$0xff]  }
 0x173   :  { %3840 = vmatpush1.bf16.msra.mxu0 %v5671_v61  ;;  %4227 = vmatpush1.bf16.msra.mxu1 %v5674_v62  ;;  %v5772_v61 = vld [vmem:[%s7812_s1 + $0xd84] ss:$16 sps:$4 sm:$0xff]   ;;  %v5775_v62 = vld [vmem:[%s7812_s1 + $0xd8c] ss:$16 sps:$4 sm:$0xff]  }
 0x174   :  { %3841 = vmatprep.subr.bf16.mxu0 %v5679_v63  ;;  %4228 = vmatprep.subr.bf16.mxu1 %v5682_v0  ;;  %v5770_v63 = vld [vmem:[%s7812_s1 + $0xd80] ss:$16 sps:$4 sm:$0xff]   ;;  %v5773_v0 = vld [vmem:[%s7812_s1 + $0xd88] ss:$16 sps:$4 sm:$0xff]  }
 0x177   :  { %3842 = vmatpush1.bf16.msra.mxu0 %v5677_v1  ;;  %4229 = vmatpush1.bf16.msra.mxu1 %v5680_v2  ;;  %v5778_v1 = vld [vmem:[%s7812_s1 + $0xda4] ss:$16 sps:$4 sm:$0xff]   ;;  %v5781_v2 = vld [vmem:[%s7812_s1 + $0xdac] ss:$16 sps:$4 sm:$0xff]  }
 0x178   :  { %3843 = vmatprep.subr.bf16.mxu0 %v5685_v3  ;;  %4230 = vmatprep.subr.bf16.mxu1 %v5688_v4  ;;  %v5776_v3 = vld [vmem:[%s7812_s1 + $0xda0] ss:$16 sps:$4 sm:$0xff]   ;;  %v5779_v4 = vld [vmem:[%s7812_s1 + $0xda8] ss:$16 sps:$4 sm:$0xff]  }
 0x17b   :  { %3844 = vmatpush1.bf16.msra.mxu0 %v5683_v5  ;;  %4231 = vmatpush1.bf16.msra.mxu1 %v5686_v6  ;;  %v5784_v5 = vld [vmem:[%s7812_s1 + $0xdc4] ss:$16 sps:$4 sm:$0xff]   ;;  %v5787_v6 = vld [vmem:[%s7812_s1 + $0xdcc] ss:$16 sps:$4 sm:$0xff]  }
 0x17c   :  { %3845 = vmatprep.subr.bf16.mxu0 %v5691_v7  ;;  %4232 = vmatprep.subr.bf16.mxu1 %v5694_v8  ;;  %v5782_v7 = vld [vmem:[%s7812_s1 + $0xdc0] ss:$16 sps:$4 sm:$0xff]   ;;  %v5785_v8 = vld [vmem:[%s7812_s1 + $0xdc8] ss:$16 sps:$4 sm:$0xff]  }
 0x17f   :  { %3846 = vmatpush1.bf16.msra.mxu0 %v5689_v9  ;;  %4233 = vmatpush1.bf16.msra.mxu1 %v5692_v10  ;;  %v5790_v9 = vld [vmem:[%s7812_s1 + $0xde4] ss:$16 sps:$4 sm:$0xff]   ;;  %v5793_v10 = vld [vmem:[%s7812_s1 + $0xdec] ss:$16 sps:$4 sm:$0xff]  }
 0x180   :  { %3858 = vmatprep.subr.bf16.mxu0 %v5700_v11  ;;  %4245 = vmatprep.subr.bf16.mxu1 %v5703_v12  ;;  %v5788_v11 = vld [vmem:[%s7812_s1 + $0xde0] ss:$16 sps:$4 sm:$0xff]   ;;  %v5791_v12 = vld [vmem:[%s7812_s1 + $0xde8] ss:$16 sps:$4 sm:$0xff]  }
 0x182   :  { %3848 = vmatmul.mubr.bf16.vlgmr.msra.gmra.mrb[0].mxu0 %v5695_v13  ;;  %4235 = vmatmul.mubr.bf16.vlgmr.msra.gmra.mrb[0].mxu1 %v5695_v13  ;;  %v5799_v13 = vld [vmem:[%s7812_s1 + $0xe04] ss:$16 sps:$4 sm:$0xff]  }
 0x183   :  { %3859 = vmatpush1.bf16.msra.mxu0 %v5698_v14  ;;  %4246 = vmatpush1.bf16.msra.mxu1 %v5701_v15  ;;  %v5802_v14 = vld [vmem:[%s7812_s1 + $0xe0c] ss:$16 sps:$4 sm:$0xff]   ;;  %v5794_v15 = vld [vmem:[%s7813_s0 + $0x30] ss:$72 sps:$4 sm:$0xff]  }
 0x184   :  { %3860 = vmatprep.subr.bf16.mxu0 %v5706_v16  ;;  %4247 = vmatprep.subr.bf16.mxu1 %v5709_v17  ;;  %v5797_v16 = vld [vmem:[%s7812_s1 + $0xe00] ss:$16 sps:$4 sm:$0xff]   ;;  %v5800_v17 = vld [vmem:[%s7812_s1 + $0xe08] ss:$16 sps:$4 sm:$0xff]  }
 0x185   :  { %3890 = vmatprep.mubr.bf16.mxu0 %v5796_v18  ;;  %4277 = vmatprep.mubr.bf16.mxu1 %v5796_v18  ;;  %v5805_v18 = vld [vmem:[%s7812_s1 + $0xe24] ss:$16 sps:$4 sm:$0xff]  }
 0x187   :  { %3861 = vmatpush1.bf16.msra.mxu0 %v5704_v19  ;;  %4248 = vmatpush1.bf16.msra.mxu1 %v5707_v20  ;;  %v5808_v19 = vld [vmem:[%s7812_s1 + $0xe2c] ss:$16 sps:$4 sm:$0xff]  }
 0x188   :  { %3862 = vmatprep.subr.bf16.mxu0 %v5712_v21  ;;  %4249 = vmatprep.subr.bf16.mxu1 %v5715_v22  ;;  %v5895_v20 = vld [vmem:[%s7813_s0 + $0x3c] ss:$72 sps:$4 sm:$0xff]   ;;  %v5803_v21 = vld [vmem:[%s7812_s1 + $0xe20] ss:$16 sps:$4 sm:$0xff]   ;;  %v5806_v22 = vld [vmem:[%s7812_s1 + $0xe28] ss:$16 sps:$4 sm:$0xff]  }
 0x18b   :  { %3863 = vmatpush1.bf16.msra.mxu0 %v5710_v23  ;;  %4250 = vmatpush1.bf16.msra.mxu1 %v5713_v24  ;;  %v5811_v23 = vld [vmem:[%s7812_s1 + $0xe44] ss:$16 sps:$4 sm:$0xff]   ;;  %v5814_v24 = vld [vmem:[%s7812_s1 + $0xe4c] ss:$16 sps:$4 sm:$0xff]  }
 0x18c   :  { %3864 = vmatprep.subr.bf16.mxu0 %v5718_v25  ;;  %4251 = vmatprep.subr.bf16.mxu1 %v5721_v26  ;;  %v5809_v25 = vld [vmem:[%s7812_s1 + $0xe40] ss:$16 sps:$4 sm:$0xff]   ;;  %v5812_v26 = vld [vmem:[%s7812_s1 + $0xe48] ss:$16 sps:$4 sm:$0xff]  }
 0x18f   :  { %3865 = vmatpush1.bf16.msra.mxu0 %v5716_v27  ;;  %4252 = vmatpush1.bf16.msra.mxu1 %v5719_v28  ;;  %v5817_v27 = vld [vmem:[%s7812_s1 + $0xe64] ss:$16 sps:$4 sm:$0xff]   ;;  %v5820_v28 = vld [vmem:[%s7812_s1 + $0xe6c] ss:$16 sps:$4 sm:$0xff]  }
 0x190   :  { %3866 = vmatprep.subr.bf16.mxu0 %v5724_v29  ;;  %4253 = vmatprep.subr.bf16.mxu1 %v5727_v30  ;;  %v5815_v29 = vld [vmem:[%s7812_s1 + $0xe60] ss:$16 sps:$4 sm:$0xff]   ;;  %v5818_v30 = vld [vmem:[%s7812_s1 + $0xe68] ss:$16 sps:$4 sm:$0xff]  }
 0x193   :  { %3867 = vmatpush1.bf16.msra.mxu0 %v5722_v31  ;;  %4254 = vmatpush1.bf16.msra.mxu1 %v5725_v32  ;;  %v5823_v31 = vld [vmem:[%s7812_s1 + $0xe84] ss:$16 sps:$4 sm:$0xff]   ;;  %v5826_v32 = vld [vmem:[%s7812_s1 + $0xe8c] ss:$16 sps:$4 sm:$0xff]  }
 0x194   :  { %3868 = vmatprep.subr.bf16.mxu0 %v5730_v33  ;;  %4255 = vmatprep.subr.bf16.mxu1 %v5733_v34  ;;  %v5821_v33 = vld [vmem:[%s7812_s1 + $0xe80] ss:$16 sps:$4 sm:$0xff]   ;;  %v5824_v34 = vld [vmem:[%s7812_s1 + $0xe88] ss:$16 sps:$4 sm:$0xff]  }
 0x197   :  { %3869 = vmatpush1.bf16.msra.mxu0 %v5728_v35  ;;  %4256 = vmatpush1.bf16.msra.mxu1 %v5731_v36  ;;  %v5829_v35 = vld [vmem:[%s7812_s1 + $0xea4] ss:$16 sps:$4 sm:$0xff]   ;;  %v5832_v36 = vld [vmem:[%s7812_s1 + $0xeac] ss:$16 sps:$4 sm:$0xff]  }
 0x198   :  { %3870 = vmatprep.subr.bf16.mxu0 %v5736_v37  ;;  %4257 = vmatprep.subr.bf16.mxu1 %v5739_v38  ;;  %v5827_v37 = vld [vmem:[%s7812_s1 + $0xea0] ss:$16 sps:$4 sm:$0xff]   ;;  %v5830_v38 = vld [vmem:[%s7812_s1 + $0xea8] ss:$16 sps:$4 sm:$0xff]  }
 0x19b   :  { %3871 = vmatpush1.bf16.msra.mxu0 %v5734_v39  ;;  %4258 = vmatpush1.bf16.msra.mxu1 %v5737_v40  ;;  %v5835_v39 = vld [vmem:[%s7812_s1 + $0xec4] ss:$16 sps:$4 sm:$0xff]   ;;  %v5838_v40 = vld [vmem:[%s7812_s1 + $0xecc] ss:$16 sps:$4 sm:$0xff]  }
 0x19c   :  { %3872 = vmatprep.subr.bf16.mxu0 %v5742_v41  ;;  %4259 = vmatprep.subr.bf16.mxu1 %v5745_v42  ;;  %v5833_v41 = vld [vmem:[%s7812_s1 + $0xec0] ss:$16 sps:$4 sm:$0xff]   ;;  %v5836_v42 = vld [vmem:[%s7812_s1 + $0xec8] ss:$16 sps:$4 sm:$0xff]  }
 0x19f   :  { %3873 = vmatpush1.bf16.msra.mxu0 %v5740_v43  ;;  %4260 = vmatpush1.bf16.msra.mxu1 %v5743_v44  ;;  %v5841_v43 = vld [vmem:[%s7812_s1 + $0xee4] ss:$16 sps:$4 sm:$0xff]   ;;  %v5844_v44 = vld [vmem:[%s7812_s1 + $0xeec] ss:$16 sps:$4 sm:$0xff]  }
 0x1a0   :  { %3874 = vmatprep.subr.bf16.mxu0 %v5748_v45  ;;  %4261 = vmatprep.subr.bf16.mxu1 %v5751_v46  ;;  %v5839_v45 = vld [vmem:[%s7812_s1 + $0xee0] ss:$16 sps:$4 sm:$0xff]   ;;  %v5842_v46 = vld [vmem:[%s7812_s1 + $0xee8] ss:$16 sps:$4 sm:$0xff]  }
 0x1a3   :  { %3875 = vmatpush1.bf16.msra.mxu0 %v5746_v47  ;;  %4262 = vmatpush1.bf16.msra.mxu1 %v5749_v48  ;;  %v5847_v47 = vld [vmem:[%s7812_s1 + $0xf04] ss:$16 sps:$4 sm:$0xff]   ;;  %v5850_v48 = vld [vmem:[%s7812_s1 + $0xf0c] ss:$16 sps:$4 sm:$0xff]  }
 0x1a4   :  { %3876 = vmatprep.subr.bf16.mxu0 %v5754_v49  ;;  %4263 = vmatprep.subr.bf16.mxu1 %v5757_v50  ;;  %v5845_v49 = vld [vmem:[%s7812_s1 + $0xf00] ss:$16 sps:$4 sm:$0xff]   ;;  %v5848_v50 = vld [vmem:[%s7812_s1 + $0xf08] ss:$16 sps:$4 sm:$0xff]  }
 0x1a7   :  { %3877 = vmatpush1.bf16.msra.mxu0 %v5752_v51  ;;  %4264 = vmatpush1.bf16.msra.mxu1 %v5755_v52  ;;  %v5853_v51 = vld [vmem:[%s7812_s1 + $0xf24] ss:$16 sps:$4 sm:$0xff]   ;;  %v5856_v52 = vld [vmem:[%s7812_s1 + $0xf2c] ss:$16 sps:$4 sm:$0xff]  }
 0x1a8   :  { %3878 = vmatprep.subr.bf16.mxu0 %v5760_v53  ;;  %4265 = vmatprep.subr.bf16.mxu1 %v5763_v54  ;;  %v5851_v53 = vld [vmem:[%s7812_s1 + $0xf20] ss:$16 sps:$4 sm:$0xff]   ;;  %v5854_v54 = vld [vmem:[%s7812_s1 + $0xf28] ss:$16 sps:$4 sm:$0xff]  }
 0x1ab   :  { %3879 = vmatpush1.bf16.msra.mxu0 %v5758_v55  ;;  %4266 = vmatpush1.bf16.msra.mxu1 %v5761_v56  ;;  %v5859_v55 = vld [vmem:[%s7812_s1 + $0xf44] ss:$16 sps:$4 sm:$0xff]   ;;  %v5862_v56 = vld [vmem:[%s7812_s1 + $0xf4c] ss:$16 sps:$4 sm:$0xff]  }
 0x1ac   :  { %3880 = vmatprep.subr.bf16.mxu0 %v5766_v57  ;;  %4267 = vmatprep.subr.bf16.mxu1 %v5769_v58  ;;  %v5857_v57 = vld [vmem:[%s7812_s1 + $0xf40] ss:$16 sps:$4 sm:$0xff]   ;;  %v5860_v58 = vld [vmem:[%s7812_s1 + $0xf48] ss:$16 sps:$4 sm:$0xff]  }
 0x1af   :  { %3881 = vmatpush1.bf16.msra.mxu0 %v5764_v59  ;;  %4268 = vmatpush1.bf16.msra.mxu1 %v5767_v60  ;;  %v5865_v59 = vld [vmem:[%s7812_s1 + $0xf64] ss:$16 sps:$4 sm:$0xff]   ;;  %v5868_v60 = vld [vmem:[%s7812_s1 + $0xf6c] ss:$16 sps:$4 sm:$0xff]  }
 0x1b0   :  { %3882 = vmatprep.subr.bf16.mxu0 %v5772_v61  ;;  %4269 = vmatprep.subr.bf16.mxu1 %v5775_v62  ;;  %v5863_v61 = vld [vmem:[%s7812_s1 + $0xf60] ss:$16 sps:$4 sm:$0xff]   ;;  %v5866_v62 = vld [vmem:[%s7812_s1 + $0xf68] ss:$16 sps:$4 sm:$0xff]  }
 0x1b3   :  { %3883 = vmatpush1.bf16.msra.mxu0 %v5770_v63  ;;  %4270 = vmatpush1.bf16.msra.mxu1 %v5773_v0  ;;  %v5871_v63 = vld [vmem:[%s7812_s1 + $0xf84] ss:$16 sps:$4 sm:$0xff]   ;;  %v5874_v0 = vld [vmem:[%s7812_s1 + $0xf8c] ss:$16 sps:$4 sm:$0xff]  }
 0x1b4   :  { %3884 = vmatprep.subr.bf16.mxu0 %v5778_v1  ;;  %4271 = vmatprep.subr.bf16.mxu1 %v5781_v2  ;;  %v5869_v1 = vld [vmem:[%s7812_s1 + $0xf80] ss:$16 sps:$4 sm:$0xff]   ;;  %v5872_v2 = vld [vmem:[%s7812_s1 + $0xf88] ss:$16 sps:$4 sm:$0xff]  }
 0x1b7   :  { %3885 = vmatpush1.bf16.msra.mxu0 %v5776_v3  ;;  %4272 = vmatpush1.bf16.msra.mxu1 %v5779_v4  ;;  %v5877_v3 = vld [vmem:[%s7812_s1 + $0xfa4] ss:$16 sps:$4 sm:$0xff]   ;;  %v5880_v4 = vld [vmem:[%s7812_s1 + $0xfac] ss:$16 sps:$4 sm:$0xff]  }
 0x1b8   :  { %3886 = vmatprep.subr.bf16.mxu0 %v5784_v5  ;;  %4273 = vmatprep.subr.bf16.mxu1 %v5787_v6  ;;  %v5875_v5 = vld [vmem:[%s7812_s1 + $0xfa0] ss:$16 sps:$4 sm:$0xff]   ;;  %v5878_v6 = vld [vmem:[%s7812_s1 + $0xfa8] ss:$16 sps:$4 sm:$0xff]  }
 0x1bb   :  { %3887 = vmatpush1.bf16.msra.mxu0 %v5782_v7  ;;  %4274 = vmatpush1.bf16.msra.mxu1 %v5785_v8  ;;  %v5883_v7 = vld [vmem:[%s7812_s1 + $0xfc4] ss:$16 sps:$4 sm:$0xff]   ;;  %v5886_v8 = vld [vmem:[%s7812_s1 + $0xfcc] ss:$16 sps:$4 sm:$0xff]  }
 0x1bc   :  { %3888 = vmatprep.subr.bf16.mxu0 %v5790_v9  ;;  %4275 = vmatprep.subr.bf16.mxu1 %v5793_v10  ;;  %v5881_v9 = vld [vmem:[%s7812_s1 + $0xfc0] ss:$16 sps:$4 sm:$0xff]   ;;  %v5884_v10 = vld [vmem:[%s7812_s1 + $0xfc8] ss:$16 sps:$4 sm:$0xff]  }
 0x1bf   :  { %3889 = vmatpush1.bf16.msra.mxu0 %v5788_v11  ;;  %4276 = vmatpush1.bf16.msra.mxu1 %v5791_v12  ;;  %v5889_v11 = vld [vmem:[%s7812_s1 + $0xfe4] ss:$16 sps:$4 sm:$0xff]   ;;  %v5892_v12 = vld [vmem:[%s7812_s1 + $0xfec] ss:$16 sps:$4 sm:$0xff]  }
 0x1c0   :  { %3901 = vmatprep.subr.bf16.mxu0 %v5799_v13  ;;  %4288 = vmatprep.subr.bf16.mxu1 %v5802_v14  ;;  %v5887_v13 = vld [vmem:[%s7812_s1 + $0xfe0] ss:$16 sps:$4 sm:$0xff]   ;;  %v5890_v14 = vld [vmem:[%s7812_s1 + $0xfe8] ss:$16 sps:$4 sm:$0xff]  }
 0x1c2   :  { %3891 = vmatmul.mubr.bf16.vlgmr.msra.gmra.mrb[0].mxu0 %v5794_v15  ;;  %4278 = vmatmul.mubr.bf16.vlgmr.msra.gmra.mrb[0].mxu1 %v5794_v15  ;;  %v5898_v15 = vld [vmem:[%s7812_s1 + $0x1004] ss:$16 sps:$4 sm:$0xff]  }
 0x1c3   :  { %3902 = vmatpush1.bf16.msra.mxu0 %v5797_v16  ;;  %4289 = vmatpush1.bf16.msra.mxu1 %v5800_v17  ;;  %v5901_v16 = vld [vmem:[%s7812_s1 + $0x100c] ss:$16 sps:$4 sm:$0xff]   ;;  %v5893_v17 = vld [vmem:[%s7813_s0 + $0x38] ss:$72 sps:$4 sm:$0xff]  }
 0x1c4   :  { %3903 = vmatprep.subr.bf16.mxu0 %v5805_v18  ;;  %4290 = vmatprep.subr.bf16.mxu1 %v5808_v19  ;;  %v5896_v18 = vld [vmem:[%s7812_s1 + $0x1000] ss:$16 sps:$4 sm:$0xff]   ;;  %v5899_v19 = vld [vmem:[%s7812_s1 + $0x1008] ss:$16 sps:$4 sm:$0xff]  }
 0x1c5   :  { %3933 = vmatprep.mubr.bf16.mxu0 %v5895_v20  ;;  %4320 = vmatprep.mubr.bf16.mxu1 %v5895_v20  ;;  %v5904_v20 = vld [vmem:[%s7812_s1 + $0x1024] ss:$16 sps:$4 sm:$0xff]  }
 0x1c7   :  { %3904 = vmatpush1.bf16.msra.mxu0 %v5803_v21  ;;  %4291 = vmatpush1.bf16.msra.mxu1 %v5806_v22  ;;  %v5907_v21 = vld [vmem:[%s7812_s1 + $0x102c] ss:$16 sps:$4 sm:$0xff]  }
 0x1c8   :  { %3905 = vmatprep.subr.bf16.mxu0 %v5811_v23  ;;  %4292 = vmatprep.subr.bf16.mxu1 %v5814_v24  ;;  %v5994_v22 = vld [vmem:[%s7813_s0 + $0x44] ss:$72 sps:$4 sm:$0xff]   ;;  %v5902_v23 = vld [vmem:[%s7812_s1 + $0x1020] ss:$16 sps:$4 sm:$0xff]   ;;  %v5905_v24 = vld [vmem:[%s7812_s1 + $0x1028] ss:$16 sps:$4 sm:$0xff]  }
 0x1cb   :  { %3906 = vmatpush1.bf16.msra.mxu0 %v5809_v25  ;;  %4293 = vmatpush1.bf16.msra.mxu1 %v5812_v26  ;;  %v5910_v25 = vld [vmem:[%s7812_s1 + $0x1044] ss:$16 sps:$4 sm:$0xff]   ;;  %v5913_v26 = vld [vmem:[%s7812_s1 + $0x104c] ss:$16 sps:$4 sm:$0xff]  }
 0x1cc   :  { %3907 = vmatprep.subr.bf16.mxu0 %v5817_v27  ;;  %4294 = vmatprep.subr.bf16.mxu1 %v5820_v28  ;;  %v5908_v27 = vld [vmem:[%s7812_s1 + $0x1040] ss:$16 sps:$4 sm:$0xff]   ;;  %v5911_v28 = vld [vmem:[%s7812_s1 + $0x1048] ss:$16 sps:$4 sm:$0xff]  }
 0x1cf   :  { %3908 = vmatpush1.bf16.msra.mxu0 %v5815_v29  ;;  %4295 = vmatpush1.bf16.msra.mxu1 %v5818_v30  ;;  %v5916_v29 = vld [vmem:[%s7812_s1 + $0x1064] ss:$16 sps:$4 sm:$0xff]   ;;  %v5919_v30 = vld [vmem:[%s7812_s1 + $0x106c] ss:$16 sps:$4 sm:$0xff]  }
 0x1d0   :  { %3909 = vmatprep.subr.bf16.mxu0 %v5823_v31  ;;  %4296 = vmatprep.subr.bf16.mxu1 %v5826_v32  ;;  %v5914_v31 = vld [vmem:[%s7812_s1 + $0x1060] ss:$16 sps:$4 sm:$0xff]   ;;  %v5917_v32 = vld [vmem:[%s7812_s1 + $0x1068] ss:$16 sps:$4 sm:$0xff]  }
 0x1d3   :  { %3910 = vmatpush1.bf16.msra.mxu0 %v5821_v33  ;;  %4297 = vmatpush1.bf16.msra.mxu1 %v5824_v34  ;;  %v5922_v33 = vld [vmem:[%s7812_s1 + $0x1084] ss:$16 sps:$4 sm:$0xff]   ;;  %v5925_v34 = vld [vmem:[%s7812_s1 + $0x108c] ss:$16 sps:$4 sm:$0xff]  }
 0x1d4   :  { %3911 = vmatprep.subr.bf16.mxu0 %v5829_v35  ;;  %4298 = vmatprep.subr.bf16.mxu1 %v5832_v36  ;;  %v5920_v35 = vld [vmem:[%s7812_s1 + $0x1080] ss:$16 sps:$4 sm:$0xff]   ;;  %v5923_v36 = vld [vmem:[%s7812_s1 + $0x1088] ss:$16 sps:$4 sm:$0xff]  }
 0x1d7   :  { %3912 = vmatpush1.bf16.msra.mxu0 %v5827_v37  ;;  %4299 = vmatpush1.bf16.msra.mxu1 %v5830_v38  ;;  %v5928_v37 = vld [vmem:[%s7812_s1 + $0x10a4] ss:$16 sps:$4 sm:$0xff]   ;;  %v5931_v38 = vld [vmem:[%s7812_s1 + $0x10ac] ss:$16 sps:$4 sm:$0xff]  }
 0x1d8   :  { %3913 = vmatprep.subr.bf16.mxu0 %v5835_v39  ;;  %4300 = vmatprep.subr.bf16.mxu1 %v5838_v40  ;;  %v5926_v39 = vld [vmem:[%s7812_s1 + $0x10a0] ss:$16 sps:$4 sm:$0xff]   ;;  %v5929_v40 = vld [vmem:[%s7812_s1 + $0x10a8] ss:$16 sps:$4 sm:$0xff]  }
 0x1db   :  { %3914 = vmatpush1.bf16.msra.mxu0 %v5833_v41  ;;  %4301 = vmatpush1.bf16.msra.mxu1 %v5836_v42  ;;  %v5934_v41 = vld [vmem:[%s7812_s1 + $0x10c4] ss:$16 sps:$4 sm:$0xff]   ;;  %v5937_v42 = vld [vmem:[%s7812_s1 + $0x10cc] ss:$16 sps:$4 sm:$0xff]  }
 0x1dc   :  { %3915 = vmatprep.subr.bf16.mxu0 %v5841_v43  ;;  %4302 = vmatprep.subr.bf16.mxu1 %v5844_v44  ;;  %v5932_v43 = vld [vmem:[%s7812_s1 + $0x10c0] ss:$16 sps:$4 sm:$0xff]   ;;  %v5935_v44 = vld [vmem:[%s7812_s1 + $0x10c8] ss:$16 sps:$4 sm:$0xff]  }
 0x1df   :  { %3916 = vmatpush1.bf16.msra.mxu0 %v5839_v45  ;;  %4303 = vmatpush1.bf16.msra.mxu1 %v5842_v46  ;;  %v5940_v45 = vld [vmem:[%s7812_s1 + $0x10e4] ss:$16 sps:$4 sm:$0xff]   ;;  %v5943_v46 = vld [vmem:[%s7812_s1 + $0x10ec] ss:$16 sps:$4 sm:$0xff]  }
 0x1e0   :  { %3917 = vmatprep.subr.bf16.mxu0 %v5847_v47  ;;  %4304 = vmatprep.subr.bf16.mxu1 %v5850_v48  ;;  %v5938_v47 = vld [vmem:[%s7812_s1 + $0x10e0] ss:$16 sps:$4 sm:$0xff]   ;;  %v5941_v48 = vld [vmem:[%s7812_s1 + $0x10e8] ss:$16 sps:$4 sm:$0xff]  }
 0x1e3   :  { %3918 = vmatpush1.bf16.msra.mxu0 %v5845_v49  ;;  %4305 = vmatpush1.bf16.msra.mxu1 %v5848_v50  ;;  %v5946_v49 = vld [vmem:[%s7812_s1 + $0x1104] ss:$16 sps:$4 sm:$0xff]   ;;  %v5949_v50 = vld [vmem:[%s7812_s1 + $0x110c] ss:$16 sps:$4 sm:$0xff]  }
 0x1e4   :  { %3919 = vmatprep.subr.bf16.mxu0 %v5853_v51  ;;  %4306 = vmatprep.subr.bf16.mxu1 %v5856_v52  ;;  %v5944_v51 = vld [vmem:[%s7812_s1 + $0x1100] ss:$16 sps:$4 sm:$0xff]   ;;  %v5947_v52 = vld [vmem:[%s7812_s1 + $0x1108] ss:$16 sps:$4 sm:$0xff]  }
 0x1e7   :  { %3920 = vmatpush1.bf16.msra.mxu0 %v5851_v53  ;;  %4307 = vmatpush1.bf16.msra.mxu1 %v5854_v54  ;;  %v5952_v53 = vld [vmem:[%s7812_s1 + $0x1124] ss:$16 sps:$4 sm:$0xff]   ;;  %v5955_v54 = vld [vmem:[%s7812_s1 + $0x112c] ss:$16 sps:$4 sm:$0xff]  }
 0x1e8   :  { %3921 = vmatprep.subr.bf16.mxu0 %v5859_v55  ;;  %4308 = vmatprep.subr.bf16.mxu1 %v5862_v56  ;;  %v5950_v55 = vld [vmem:[%s7812_s1 + $0x1120] ss:$16 sps:$4 sm:$0xff]   ;;  %v5953_v56 = vld [vmem:[%s7812_s1 + $0x1128] ss:$16 sps:$4 sm:$0xff]  }
 0x1eb   :  { %3922 = vmatpush1.bf16.msra.mxu0 %v5857_v57  ;;  %4309 = vmatpush1.bf16.msra.mxu1 %v5860_v58  ;;  %v5958_v57 = vld [vmem:[%s7812_s1 + $0x1144] ss:$16 sps:$4 sm:$0xff]   ;;  %v5961_v58 = vld [vmem:[%s7812_s1 + $0x114c] ss:$16 sps:$4 sm:$0xff]  }
 0x1ec   :  { %3923 = vmatprep.subr.bf16.mxu0 %v5865_v59  ;;  %4310 = vmatprep.subr.bf16.mxu1 %v5868_v60  ;;  %v5956_v59 = vld [vmem:[%s7812_s1 + $0x1140] ss:$16 sps:$4 sm:$0xff]   ;;  %v5959_v60 = vld [vmem:[%s7812_s1 + $0x1148] ss:$16 sps:$4 sm:$0xff]  }
 0x1ef   :  { %3924 = vmatpush1.bf16.msra.mxu0 %v5863_v61  ;;  %4311 = vmatpush1.bf16.msra.mxu1 %v5866_v62  ;;  %v5964_v61 = vld [vmem:[%s7812_s1 + $0x1164] ss:$16 sps:$4 sm:$0xff]   ;;  %v5967_v62 = vld [vmem:[%s7812_s1 + $0x116c] ss:$16 sps:$4 sm:$0xff]  }
 0x1f0   :  { %3925 = vmatprep.subr.bf16.mxu0 %v5871_v63  ;;  %4312 = vmatprep.subr.bf16.mxu1 %v5874_v0  ;;  %v5962_v63 = vld [vmem:[%s7812_s1 + $0x1160] ss:$16 sps:$4 sm:$0xff]   ;;  %v5965_v0 = vld [vmem:[%s7812_s1 + $0x1168] ss:$16 sps:$4 sm:$0xff]  }
 0x1f3   :  { %3926 = vmatpush1.bf16.msra.mxu0 %v5869_v1  ;;  %4313 = vmatpush1.bf16.msra.mxu1 %v5872_v2  ;;  %v5970_v1 = vld [vmem:[%s7812_s1 + $0x1184] ss:$16 sps:$4 sm:$0xff]   ;;  %v5973_v2 = vld [vmem:[%s7812_s1 + $0x118c] ss:$16 sps:$4 sm:$0xff]  }
 0x1f4   :  { %3927 = vmatprep.subr.bf16.mxu0 %v5877_v3  ;;  %4314 = vmatprep.subr.bf16.mxu1 %v5880_v4  ;;  %v5968_v3 = vld [vmem:[%s7812_s1 + $0x1180] ss:$16 sps:$4 sm:$0xff]   ;;  %v5971_v4 = vld [vmem:[%s7812_s1 + $0x1188] ss:$16 sps:$4 sm:$0xff]  }
 0x1f7   :  { %3928 = vmatpush1.bf16.msra.mxu0 %v5875_v5  ;;  %4315 = vmatpush1.bf16.msra.mxu1 %v5878_v6  ;;  %v5976_v5 = vld [vmem:[%s7812_s1 + $0x11a4] ss:$16 sps:$4 sm:$0xff]   ;;  %v5979_v6 = vld [vmem:[%s7812_s1 + $0x11ac] ss:$16 sps:$4 sm:$0xff]  }
 0x1f8   :  { %3929 = vmatprep.subr.bf16.mxu0 %v5883_v7  ;;  %4316 = vmatprep.subr.bf16.mxu1 %v5886_v8  ;;  %v5974_v7 = vld [vmem:[%s7812_s1 + $0x11a0] ss:$16 sps:$4 sm:$0xff]   ;;  %v5977_v8 = vld [vmem:[%s7812_s1 + $0x11a8] ss:$16 sps:$4 sm:$0xff]  }
 0x1fb   :  { %3930 = vmatpush1.bf16.msra.mxu0 %v5881_v9  ;;  %4317 = vmatpush1.bf16.msra.mxu1 %v5884_v10  ;;  %v5982_v9 = vld [vmem:[%s7812_s1 + $0x11c4] ss:$16 sps:$4 sm:$0xff]   ;;  %v5985_v10 = vld [vmem:[%s7812_s1 + $0x11cc] ss:$16 sps:$4 sm:$0xff]  }
 0x1fc   :  { %3931 = vmatprep.subr.bf16.mxu0 %v5889_v11  ;;  %4318 = vmatprep.subr.bf16.mxu1 %v5892_v12  ;;  %v5980_v11 = vld [vmem:[%s7812_s1 + $0x11c0] ss:$16 sps:$4 sm:$0xff]   ;;  %v5983_v12 = vld [vmem:[%s7812_s1 + $0x11c8] ss:$16 sps:$4 sm:$0xff]  }
 0x1ff   :  { %3932 = vmatpush1.bf16.msra.mxu0 %v5887_v13  ;;  %4319 = vmatpush1.bf16.msra.mxu1 %v5890_v14  ;;  %v5988_v13 = vld [vmem:[%s7812_s1 + $0x11e4] ss:$16 sps:$4 sm:$0xff]   ;;  %v5991_v14 = vld [vmem:[%s7812_s1 + $0x11ec] ss:$16 sps:$4 sm:$0xff]  }
 0x200   :  { %3944 = vmatprep.subr.bf16.mxu0 %v5898_v15  ;;  %4331 = vmatprep.subr.bf16.mxu1 %v5901_v16  ;;  %v5986_v15 = vld [vmem:[%s7812_s1 + $0x11e0] ss:$16 sps:$4 sm:$0xff]   ;;  %v5989_v16 = vld [vmem:[%s7812_s1 + $0x11e8] ss:$16 sps:$4 sm:$0xff]  }
 0x202   :  { %3934 = vmatmul.mubr.bf16.vlgmr.msra.gmra.mrb[0].mxu0 %v5893_v17  ;;  %4321 = vmatmul.mubr.bf16.vlgmr.msra.gmra.mrb[0].mxu1 %v5893_v17  ;;  %v5992_v17 = vld [vmem:[%s7813_s0 + $0x40] ss:$72 sps:$4 sm:$0xff]  }
 0x203   :  { %3945 = vmatpush1.bf16.msra.mxu0 %v5896_v18  ;;  %4332 = vmatpush1.bf16.msra.mxu1 %v5899_v19  ;;  %v610_v18 = vlaneseq }
 0x204   :  { %3946 = vmatprep.subr.bf16.mxu0 %v5904_v20  ;;  %4333 = vmatprep.subr.bf16.mxu1 %v5907_v21 }
 0x205   :  { %3976 = vmatprep.mubr.bf16.mxu0 %v5994_v22  ;;  %4363 = vmatprep.mubr.bf16.mxu1 %v5994_v22  ;;  %v611_v19 = vshrl.u32 %v610_v18, 7  ;;  %v608_v22 = vld [vmem:[%s7814_s2] sm:$0xf] }
 0x207   :  { %3947 = vmatpush1.bf16.msra.mxu0 %v5902_v23  ;;  %4334 = vmatpush1.bf16.msra.mxu1 %v5905_v24  ;;  %v612_v20 = vsub.s32 0, %v611_v19  ;;  %v620_v21 = vsub.s32 2, %v611_v19  ;;  %v616_v23 = vsub.s32 1, %v611_v19  ;;  %v624_v24 = vsub.s32 3, %v611_v19 }
 0x208   :  { %3948 = vmatprep.subr.bf16.mxu0 %v5910_v25  ;;  %4335 = vmatprep.subr.bf16.mxu1 %v5913_v26 }
 0x209   :  { %v613_v25 = vrot.slane %v608_v22, %v612_v20  ;;  %v621_v26 = vrot.slane %v608_v22, %v620_v21 }
 0x20b   :  { %3949 = vmatpush1.bf16.msra.mxu0 %v5908_v27  ;;  %4336 = vmatpush1.bf16.msra.mxu1 %v5911_v28  ;;  %v617_v27 = vrot.slane %v608_v22, %v616_v23  ;;  %v625_v28 = vrot.slane %v608_v22, %v624_v24 }
 0x20c   :  { %3950 = vmatprep.subr.bf16.mxu0 %v5916_v29  ;;  %4337 = vmatprep.subr.bf16.mxu1 %v5919_v30 }
 0x20f   :  { %3951 = vmatpush1.bf16.msra.mxu0 %v5914_v31  ;;  %4338 = vmatpush1.bf16.msra.mxu1 %v5917_v32 }
 0x210   :  { %3952 = vmatprep.subr.bf16.mxu0 %v5922_v33  ;;  %4339 = vmatprep.subr.bf16.mxu1 %v5925_v34 }
 0x213   :  { %3953 = vmatpush1.bf16.msra.mxu0 %v5920_v35  ;;  %4340 = vmatpush1.bf16.msra.mxu1 %v5923_v36 }
 0x214   :  { %3954 = vmatprep.subr.bf16.mxu0 %v5928_v37  ;;  %4341 = vmatprep.subr.bf16.mxu1 %v5931_v38 }
 0x217   :  { %3955 = vmatpush1.bf16.msra.mxu0 %v5926_v39  ;;  %4342 = vmatpush1.bf16.msra.mxu1 %v5929_v40 }
 0x218   :  { %3956 = vmatprep.subr.bf16.mxu0 %v5934_v41  ;;  %4343 = vmatprep.subr.bf16.mxu1 %v5937_v42 }
 0x21b   :  { %3957 = vmatpush1.bf16.msra.mxu0 %v5932_v43  ;;  %4344 = vmatpush1.bf16.msra.mxu1 %v5935_v44 }
 0x21c   :  { %3958 = vmatprep.subr.bf16.mxu0 %v5940_v45  ;;  %4345 = vmatprep.subr.bf16.mxu1 %v5943_v46 }
 0x21f   :  { %3959 = vmatpush1.bf16.msra.mxu0 %v5938_v47  ;;  %4346 = vmatpush1.bf16.msra.mxu1 %v5941_v48 }
 0x220   :  { %3960 = vmatprep.subr.bf16.mxu0 %v5946_v49  ;;  %4347 = vmatprep.subr.bf16.mxu1 %v5949_v50 }
 0x223   :  { %3961 = vmatpush1.bf16.msra.mxu0 %v5944_v51  ;;  %4348 = vmatpush1.bf16.msra.mxu1 %v5947_v52 }
 0x224   :  { %3962 = vmatprep.subr.bf16.mxu0 %v5952_v53  ;;  %4349 = vmatprep.subr.bf16.mxu1 %v5955_v54 }
 0x227   :  { %3963 = vmatpush1.bf16.msra.mxu0 %v5950_v55  ;;  %4350 = vmatpush1.bf16.msra.mxu1 %v5953_v56 }
 0x228   :  { %3964 = vmatprep.subr.bf16.mxu0 %v5958_v57  ;;  %4351 = vmatprep.subr.bf16.mxu1 %v5961_v58 }
 0x22b   :  { %3965 = vmatpush1.bf16.msra.mxu0 %v5956_v59  ;;  %4352 = vmatpush1.bf16.msra.mxu1 %v5959_v60 }
 0x22c   :  { %3966 = vmatprep.subr.bf16.mxu0 %v5964_v61  ;;  %4353 = vmatprep.subr.bf16.mxu1 %v5967_v62 }
 0x22f   :  { %3967 = vmatpush1.bf16.msra.mxu0 %v5962_v63  ;;  %4354 = vmatpush1.bf16.msra.mxu1 %v5965_v0 }
 0x230   :  { %3968 = vmatprep.subr.bf16.mxu0 %v5970_v1  ;;  %4355 = vmatprep.subr.bf16.mxu1 %v5973_v2 }
 0x233   :  { %3969 = vmatpush1.bf16.msra.mxu0 %v5968_v3  ;;  %4356 = vmatpush1.bf16.msra.mxu1 %v5971_v4 }
 0x234   :  { %3970 = vmatprep.subr.bf16.mxu0 %v5976_v5  ;;  %4357 = vmatprep.subr.bf16.mxu1 %v5979_v6 }
 0x237   :  { %3971 = vmatpush1.bf16.msra.mxu0 %v5974_v7  ;;  %4358 = vmatpush1.bf16.msra.mxu1 %v5977_v8 }
 0x238   :  { %3972 = vmatprep.subr.bf16.mxu0 %v5982_v9  ;;  %4359 = vmatprep.subr.bf16.mxu1 %v5985_v10 }
 0x23b   :  { %3973 = vmatpush1.bf16.msra.mxu0 %v5980_v11  ;;  %4360 = vmatpush1.bf16.msra.mxu1 %v5983_v12 }
 0x23c   :  { %3974 = vmatprep.subr.bf16.mxu0 %v5988_v13  ;;  %4361 = vmatprep.subr.bf16.mxu1 %v5991_v14 }
 0x23f   :  { %3975 = vmatpush1.bf16.msra.mxu0 %v5986_v15  ;;  %4362 = vmatpush1.bf16.msra.mxu1 %v5989_v16 }
 0x242   :  { %3977 = vmatmul.mubr.bf16.vlgmr.msra.gmra.mrb[0].mxu0 %v5992_v17  ;;  %4364 = vmatmul.mubr.bf16.vlgmr.msra.gmra.mrb[0].mxu1 %v5992_v17 }
 0x315   :  { %v3978_v29 = vpop.f32.mrb[0].mxu0  ;;  %v4365_v30 = vpop.f32.mrb[0].mxu1 }
 0x316   :  { %v5032_v31 = vadd.f32 %v3978_v29, %v613_v25  ;;  %v5036_v32 = vadd.f32 %v4365_v30, %v621_v26  ;;  %v3980_v33 = vpop.f32.mrb[1].mxu0  ;;  %v4367_v34 = vpop.f32.mrb[1].mxu1 }
 0x317   :  { %v5033_v35 = vadd.f32 %v3980_v33, %v617_v27  ;;  %v5037_v36 = vadd.f32 %v4367_v34, %v625_v28  ;;  %v3982_v37 = vpop.f32.mrb[2].mxu0  ;;  %v4369_v38 = vpop.f32.mrb[2].mxu1 }
 0x318   :  { %vm4374_vm0 = vcmp.ge.f32.partialorder %v5032_v31, 0.0  ;;  %v4382_v39 = vmul.f32 0.1, %v5032_v31  ;;  %vm4376_vm1 = vcmp.ge.f32.partialorder %v5036_v32, 0.0  ;;  %v4384_v40 = vmul.f32 0.1, %v5036_v32 }
 0x319   :  { %vm4375_vm2 = vcmp.ge.f32.partialorder %v5033_v35, 0.0  ;;  %v4383_v41 = vmul.f32 0.1, %v5033_v35  ;;  %vm4377_vm3 = vcmp.ge.f32.partialorder %v5037_v36, 0.0  ;;  %v4385_v42 = vmul.f32 0.1, %v5037_v36 }
 0x31a   :  { %v4390_v43 = vsel %vm4374_vm0, %v5032_v31, %v4382_v39  ;;  %v4392_v44 = vsel %vm4376_vm1, %v5036_v32, %v4384_v40  ;;  %v5034_v45 = vadd.f32 %v3982_v37, %v613_v25  ;;  %v5038_v46 = vadd.f32 %v4369_v38, %v621_v26  ;;  %v3984_v47 = vpop.f32.mrb[3].mxu0  ;;  %v4371_v48 = vpop.f32.mrb[3].mxu1 }
 0x31b   :  { %v4391_v49 = vsel %vm4375_vm2, %v5033_v35, %v4383_v41  ;;  %v4393_v50 = vsel %vm4377_vm3, %v5037_v36, %v4385_v42  ;;  %v5035_v51 = vadd.f32 %v3984_v47, %v617_v27  ;;  %v5039_v52 = vadd.f32 %v4371_v48, %v625_v28 }
 0x31c   :  { %v5028_v53 = vpack.c.bf16 %v4391_v49, %v4390_v43  ;;  %v5029_v54 = vpack.c.bf16 %v4393_v50, %v4392_v44  ;;  %vm4378_vm4 = vcmp.ge.f32.partialorder %v5034_v45, 0.0  ;;  %v4386_v55 = vmul.f32 0.1, %v5034_v45 }
 0x31d   :  { %vm4380_vm5 = vcmp.ge.f32.partialorder %v5038_v46, 0.0  ;;  %v4388_v56 = vmul.f32 0.1, %v5038_v46  ;;  %vm4379_vm6 = vcmp.ge.f32.partialorder %v5035_v51, 0.0  ;;  %v4387_v57 = vmul.f32 0.1, %v5035_v51 }
 0x31e   :  { %4422 = vst [vmem:[%s7815_s3] sm:$0xff] %v5028_v53  ;;  %4423 = vst [vmem:[%s7815_s3 + $0x8] sm:$0xff] %v5029_v54  ;;  %v4394_v58 = vsel %vm4378_vm4, %v5034_v45, %v4386_v55  ;;  %vm4381_vm7 = vcmp.ge.f32.partialorder %v5039_v52, 0.0  ;;  %v4389_v59 = vmul.f32 0.1, %v5039_v52 }
 0x31f   :  { %v4396_v60 = vsel %vm4380_vm5, %v5038_v46, %v4388_v56  ;;  %v4395_v61 = vsel %vm4379_vm6, %v5035_v51, %v4387_v57 }
 0x320   :  { %v5030_v62 = vpack.c.bf16 %v4395_v61, %v4394_v58  ;;  %v4397_v63 = vsel %vm4381_vm7, %v5039_v52, %v4389_v59 }
 0x321   :  { %v5031_v0 = vpack.c.bf16 %v4397_v63, %v4396_v60 }
 0x322   :  { %4424 = vst [vmem:[%s7815_s3 + $0x10] sm:$0xff] %v5030_v62 }
 0x323   :  { %4425 = vst [vmem:[%s7815_s3 + $0x18] sm:$0xff] %v5031_v0 }

</bundles_post_ra>
